<compile_context>
chip_gen: v7x
topology: tpu7x:2x2x1
jax: 0.10.0
libtpu: 0.0.40
codegen_flags: <defaults>
</compile_context>

<pallas_src>
import jax
import jax.numpy as jnp
import numpy as np
from jax.experimental import pallas as pl
from jax.experimental.pallas import tpu as pltpu

EPS = 1e-5
C = 16            # channels of the block (fixed by the module)


def _msdsc_fused_kernel(xs_ref, cw_ref, bcat_ref, gb_ref, gsum_ref, gbc_ref,
                        psel_ref, o_ref):
    """Fused depthwise(3x3,5x5) + pointwise(1x1)+concat + BN + ReLU + 2x2 maxpool."""
    _, N, Hp, WC = xs_ref.shape           # xs: (5, N, H+4, W*C) pre-shifted packed input
    H = Hp - 4
    W = WC // C
    NH = N * H
    NHW = N * H * W
    HALF = (W // 2) * C

    # ---- depthwise convs: shifted multiply-accumulate in the lane-packed layout ----
    # xs[kw][n, hp, w*C+c] == x_pad2[n, hp, w+kw, c]; kh shifts are sublane-row slices.
    # cw_ref rows: [0:9] = 3x3 weights (tiled over W), [9:34] = 5x5 weights, [34] = bias.
    d3 = jnp.zeros((N, H, WC), jnp.float32)
    d5 = jnp.zeros((N, H, WC), jnp.float32)
    for kw in range(5):
        xk = xs_ref[kw]                                            # (N, Hp, W*C) f32
        for kh in range(5):                                        # 5x5, padding=2
            d5 = d5 + xk[:, kh:kh + H, :] * cw_ref[9 + kh * 5 + kw, :]
        if 1 <= kw <= 3:                                           # 3x3, padding=1
            for kh in range(3):
                d3 = d3 + xk[:, 1 + kh:1 + kh + H, :] * cw_ref[kh * 3 + (kw - 1), :]

    # ---- pointwise 1x1 convs + channel concat: single block-diagonal MXU matmul ----
    # bcat = [kron(I_W,[pw1|0]) ; kron(I_W,[0|pw2])] (bf16); bias row carries the folded
    # depthwise biases tiled over the W lane-groups.
    d = jnp.concatenate([d3.reshape(NH, WC), d5.reshape(NH, WC)], axis=1)   # (NH, 2*WC)
    y = (jnp.dot(d.astype(jnp.bfloat16), bcat_ref[...],
                 preferred_element_type=jnp.float32)
         + cw_ref[34:35, :])                                       # (NH, W*C), 16 ch packed

    # ---- BatchNorm2d (training batch stats, one-pass E[x]/E[x^2], kept in f32) ----
    sums = jnp.concatenate([jnp.sum(y, axis=0, keepdims=True),
                            jnp.sum(y * y, axis=0, keepdims=True)], axis=0)  # (2, W*C)
    st = jnp.dot(sums, gsum_ref[...], preferred_element_type=jnp.float32)    # (2, C)
    mean = st[0:1] / NHW
    var = st[1:2] / NHW - mean * mean                              # biased variance
    scale = gb_ref[0:1] * jax.lax.rsqrt(var + EPS)                 # (1, C)
    shift = gb_ref[1:2] - mean * scale                             # (1, C)

    # broadcast per-channel affine across the packed W*C lanes with ONE tiny matmul;
    # the sublane (row) broadcast of (1, W*C) is free in the VPU.
    ss = jnp.dot(jnp.concatenate([scale, shift], axis=0), gbc_ref[...],
                 preferred_element_type=jnp.float32)               # (2, W*C)
    yr = jnp.maximum(y * ss[0:1, :] + ss[1:2, :], 0.0)             # BN + ReLU

    # ---- 2x2 max pool ----
    # H direction: split rows and reduce. W direction (packed into lanes): one fused
    # even/odd selector matmul, then max over the two lane halves.
    th = jnp.max(yr.reshape(N, H // 2, 2, WC), axis=2).reshape(N * (H // 2), WC)
    pooled2 = jnp.dot(th.astype(jnp.bfloat16), psel_ref[...],
                      preferred_element_type=jnp.float32)          # (N*H/2, W*C)
    pooled = jnp.maximum(pooled2[:, :HALF], pooled2[:, HALF:])     # (N*H/2, (W/2)*C)

    o_ref[...] = pooled.reshape(o_ref.shape).astype(o_ref.dtype)


def init_params(key):
    ks = jax.random.split(key, 8)
    return {
        # depthwise weights stored as [kh*K + kw, channel]
        "w3": 0.1 * jax.random.normal(ks[0], (9, C), jnp.float32),
        "b3": 0.1 * jax.random.normal(ks[1], (1, C), jnp.float32),
        "w5": 0.1 * jax.random.normal(ks[2], (25, C), jnp.float32),
        "b5": 0.1 * jax.random.normal(ks[3], (1, C), jnp.float32),
        # pointwise 1x1 weights stored as [c_in, c_out]
        "pw1": 0.1 * jax.random.normal(ks[4], (C, 8), jnp.float32),
        "pb1": 0.1 * jax.random.normal(ks[5], (1, 8), jnp.float32),
        "pw2": 0.1 * jax.random.normal(ks[6], (C, 8), jnp.float32),
        "pb2": 0.1 * jax.random.normal(ks[7], (1, 8), jnp.float32),
        # BatchNorm2d default init
        "gamma": jnp.ones((1, C), jnp.float32),
        "beta": jnp.zeros((1, C), jnp.float32),
    }


def _pool_selectors(W):
    """Even/odd lane-group 0/1 selection matrices for the W-direction of the 2x2 pool."""
    se = np.zeros((W * C, (W // 2) * C), np.float32)
    so = np.zeros_like(se)
    for j in range(W // 2):
        for c in range(C):
            se[(2 * j) * C + c, j * C + c] = 1.0
            so[(2 * j + 1) * C + c, j * C + c] = 1.0
    return jnp.asarray(se), jnp.asarray(so)


def prepare_constants(p, W):
    """One-time, input-independent parameter prep (hoisted out of the per-call path)."""
    # depthwise weights tiled across the packed W*C lane axis + folded bias row
    w3t = jnp.tile(p["w3"], (1, W))                                  # (9,  W*C)
    w5t = jnp.tile(p["w5"], (1, W))                                  # (25, W*C)
    fused_bias = jnp.concatenate([p["pb1"][0] + p["b3"][0] @ p["pw1"],
                                  p["pb2"][0] + p["b5"][0] @ p["pw2"]], axis=0)  # (16,)
    pbp = jnp.tile(fused_bias.reshape(1, C), (1, W))                 # (1, W*C)
    cw = jnp.concatenate([w3t, w5t, pbp], axis=0).astype(jnp.float32)  # (35, W*C)

    # pointwise 1x1 convs + channel concat as one stacked block-diagonal matrix (bf16)
    pwcat1 = jnp.concatenate([p["pw1"], jnp.zeros((C, 8), jnp.float32)], axis=1)  # (16,16)
    pwcat2 = jnp.concatenate([jnp.zeros((C, 8), jnp.float32), p["pw2"]], axis=1)  # (16,16)
    eye_w = jnp.eye(W, dtype=jnp.float32)
    bcat = jnp.concatenate([jnp.kron(eye_w, pwcat1),
                            jnp.kron(eye_w, pwcat2)], axis=0).astype(jnp.bfloat16)  # (2WC,WC)

    # BN gamma/beta, per-channel reduce / broadcast matrices (kept f32 for BN accuracy)
    gb = jnp.concatenate([p["gamma"], p["beta"]], axis=0).astype(jnp.float32)   # (2, C)
    eye_c = jnp.eye(C, dtype=jnp.float32)
    gsum = jnp.tile(eye_c, (W, 1))                                   # (W*C, C)
    gbc = jnp.tile(eye_c, (1, W))                                    # (C, W*C)

    # fused even/odd pool selector (bf16, exactly representable 0/1 entries)
    se, so = _pool_selectors(W)
    psel = jnp.concatenate([se, so], axis=1).astype(jnp.bfloat16)    # (W*C, W*C)

    return {"cw": cw, "bcat": bcat, "gb": gb, "gsum": gsum, "gbc": gbc, "psel": psel}


def msdsc_forward(x_nchw, consts):
    x = jnp.transpose(x_nchw, (0, 2, 3, 1)).astype(jnp.float32)     # NCHW -> NHWC
    N, H, W, Cc = x.shape
    assert Cc == C and H % 2 == 0 and W % 2 == 0
    Hp = H + 4
    WC = W * C

    # pad for the 5x5 path, then build 5 W-shifted lane-packed copies:
    # xs[s][n, hp, w*C + c] = x_pad2[n, hp, w + s, c]
    xpad = jnp.pad(x, ((0, 0), (2, 2), (2, 2), (0, 0)))
    xs = jnp.stack([xpad[:, :, s:s + W, :].reshape(N, Hp, WC) for s in range(5)], axis=0)

    out_packed = pl.pallas_call(
        _msdsc_fused_kernel,
        out_shape=jax.ShapeDtypeStruct((N, H // 2, (W // 2) * C), jnp.float32),
        grid_spec=pltpu.PrefetchScalarGridSpec(
            num_scalar_prefetch=0,
            grid=(1,),
            in_specs=[
                pl.BlockSpec((5, N, Hp, WC), lambda i: (0, 0, 0, 0)),    # xs (pre-shifted)
                pl.BlockSpec((35, WC), lambda i: (0, 0)),                # w3/w5/bias pack
                pl.BlockSpec((2 * WC, WC), lambda i: (0, 0)),            # stacked pw blocks
                pl.BlockSpec((2, C), lambda i: (0, 0)),                  # gamma/beta
                pl.BlockSpec((WC, C), lambda i: (0, 0)),                 # channel-sum matrix
                pl.BlockSpec((C, WC), lambda i: (0, 0)),                 # channel-broadcast
                pl.BlockSpec((WC, WC), lambda i: (0, 0)),                # fused pool selector
            ],
            out_specs=pl.BlockSpec((N, H // 2, (W // 2) * C), lambda i: (0, 0, 0)),
        ),
        compiler_params=pltpu.CompilerParams(dimension_semantics=("arbitrary",)),
    )(xs, consts["cw"], consts["bcat"], consts["gb"], consts["gsum"],
      consts["gbc"], consts["psel"])

    out = out_packed.reshape(N, H // 2, W // 2, C)
    return jnp.transpose(out, (0, 3, 1, 2))                          # NHWC -> NCHW


def reference_forward(x_nchw, p):
    """Pure-JAX reference with identical semantics (for validation)."""
    x = jnp.transpose(x_nchw, (0, 2, 3, 1))
    dn = ("NHWC", "HWIO", "NHWC")
    k3 = p["w3"].reshape(3, 3, C)[:, :, None, :]
    k5 = p["w5"].reshape(5, 5, C)[:, :, None, :]
    d3 = jax.lax.conv_general_dilated(x, k3, (1, 1), ((1, 1), (1, 1)),
                                      dimension_numbers=dn, feature_group_count=C) + p["b3"][0]
    d5 = jax.lax.conv_general_dilated(x, k5, (1, 1), ((2, 2), (2, 2)),
                                      dimension_numbers=dn, feature_group_count=C) + p["b5"][0]
    a1 = jnp.einsum("nhwc,co->nhwo", d3, p["pw1"]) + p["pb1"][0]
    a2 = jnp.einsum("nhwc,co->nhwo", d5, p["pw2"]) + p["pb2"][0]
    y = jnp.concatenate([a1, a2], axis=-1)
    mean = jnp.mean(y, axis=(0, 1, 2))
    var = jnp.mean(jnp.square(y - mean), axis=(0, 1, 2))
    yn = (y - mean) * jax.lax.rsqrt(var + EPS) * p["gamma"][0] + p["beta"][0]
    yr = jnp.maximum(yn, 0.0)
    N, H, W, Cc = yr.shape
    o = jnp.max(yr.reshape(N, H // 2, 2, W // 2, 2, Cc), axis=(2, 4))
    return jnp.transpose(o, (0, 3, 1, 2))


if __name__ == "__main__":
    key = jax.random.PRNGKey(0)
    kx, kp = jax.random.split(key)
    # NCHW input as the PyTorch module expects: batch=2, channels=16, spatial=16x16
    x = jax.random.normal(kx, (2, 16, 16, 16), jnp.float32)
    params = init_params(kp)

    # One-time parameter prep (kron builds, tiles, selectors) — NOT in the per-call path.
    consts = jax.tree_util.tree_map(jax.block_until_ready, prepare_constants(params, W=16))

    fwd = jax.jit(msdsc_forward)
    out = jax.block_until_ready(fwd(x, consts))
    assert out.shape == (2, 16, 8, 8)

    ref = reference_forward(x, params)
    np.testing.assert_allclose(np.asarray(out), np.asarray(ref), rtol=5e-2, atol=5e-2)

    print("KERNEL_OK")
</pallas_src>

<mosaic_0001>
module attributes {stable_mosaic.version = 11 : i64} {
  func.func @_msdsc_fused_kernel(%arg0: i32, %arg1: memref<5x2x20x256xf32, #tpu.memory_space<vmem>>, %arg2: memref<35x256xf32, #tpu.memory_space<vmem>>, %arg3: memref<512x256xbf16, #tpu.memory_space<vmem>>, %arg4: memref<2x16xf32, #tpu.memory_space<vmem>>, %arg5: memref<256x16xf32, #tpu.memory_space<vmem>>, %arg6: memref<16x256xf32, #tpu.memory_space<vmem>>, %arg7: memref<256x256xbf16, #tpu.memory_space<vmem>>, %arg8: memref<2x8x128xf32, #tpu.memory_space<vmem>>) attributes {dimension_semantics = [#tpu.dimension_semantics<arbitrary>], iteration_bounds = array<i64: 1>, scalar_prefetch = 0 : i64, scratch_operands = 0 : i64, tpu.core_type = #tpu.core_type<tc>, window_params = [{pipeline_mode = #tpu.pipeline_mode<synchronous>, transform_indices = @transform_0, window_bounds = array<i64: 5, 2, 20, 256>}, {pipeline_mode = #tpu.pipeline_mode<synchronous>, transform_indices = @transform_1, window_bounds = array<i64: 35, 256>}, {pipeline_mode = #tpu.pipeline_mode<synchronous>, transform_indices = @transform_2, window_bounds = array<i64: 512, 256>}, {pipeline_mode = #tpu.pipeline_mode<synchronous>, transform_indices = @transform_3, window_bounds = array<i64: 2, 16>}, {pipeline_mode = #tpu.pipeline_mode<synchronous>, transform_indices = @transform_4, window_bounds = array<i64: 256, 16>}, {pipeline_mode = #tpu.pipeline_mode<synchronous>, transform_indices = @transform_5, window_bounds = array<i64: 16, 256>}, {pipeline_mode = #tpu.pipeline_mode<synchronous>, transform_indices = @transform_6, window_bounds = array<i64: 256, 256>}, {pipeline_mode = #tpu.pipeline_mode<synchronous>, transform_indices = @transform_7, window_bounds = array<i64: 2, 8, 128>}]} {
    %cst = arith.constant 0.000000e+00 : f32
    %0 = vector.broadcast %cst : f32 to vector<2x16x256xf32>
    %cst_0 = arith.constant 0.000000e+00 : f32
    %1 = vector.broadcast %cst_0 : f32 to vector<2x16x256xf32>
    %c0 = arith.constant 0 : index
    %c0_1 = arith.constant 0 : index
    %c0_2 = arith.constant 0 : index
    %c0_3 = arith.constant 0 : index
    %2 = vector.load %arg1[%c0, %c0_1, %c0_2, %c0_3] : memref<5x2x20x256xf32, #tpu.memory_space<vmem>>, vector<1x2x20x256xf32>
    %3 = vector.shape_cast %2 : vector<1x2x20x256xf32> to vector<2x20x256xf32>
    %4 = vector.extract_strided_slice %3 {offsets = [0, 0, 0], sizes = [2, 16, 256], strides = [1, 1, 1]} : vector<2x20x256xf32> to vector<2x16x256xf32>
    %c9 = arith.constant 9 : index
    %c0_4 = arith.constant 0 : index
    %5 = vector.load %arg2[%c9, %c0_4] : memref<35x256xf32, #tpu.memory_space<vmem>>, vector<1x256xf32>
    %6 = vector.shape_cast %5 : vector<1x256xf32> to vector<256xf32>
    %7 = vector.shape_cast %6 : vector<256xf32> to vector<1x1x256xf32>
    %8 = vector.broadcast %7 : vector<1x1x256xf32> to vector<2x16x256xf32>
    %9 = arith.mulf %4, %8 : vector<2x16x256xf32>
    %10 = arith.addf %1, %9 : vector<2x16x256xf32>
    %11 = vector.extract_strided_slice %3 {offsets = [0, 1, 0], sizes = [2, 16, 256], strides = [1, 1, 1]} : vector<2x20x256xf32> to vector<2x16x256xf32>
    %c14 = arith.constant 14 : index
    %c0_5 = arith.constant 0 : index
    %12 = vector.load %arg2[%c14, %c0_5] : memref<35x256xf32, #tpu.memory_space<vmem>>, vector<1x256xf32>
    %13 = vector.shape_cast %12 : vector<1x256xf32> to vector<256xf32>
    %14 = vector.shape_cast %13 : vector<256xf32> to vector<1x1x256xf32>
    %15 = vector.broadcast %14 : vector<1x1x256xf32> to vector<2x16x256xf32>
    %16 = arith.mulf %11, %15 : vector<2x16x256xf32>
    %17 = arith.addf %10, %16 : vector<2x16x256xf32>
    %18 = vector.extract_strided_slice %3 {offsets = [0, 2, 0], sizes = [2, 16, 256], strides = [1, 1, 1]} : vector<2x20x256xf32> to vector<2x16x256xf32>
    %c19 = arith.constant 19 : index
    %c0_6 = arith.constant 0 : index
    %19 = vector.load %arg2[%c19, %c0_6] : memref<35x256xf32, #tpu.memory_space<vmem>>, vector<1x256xf32>
    %20 = vector.shape_cast %19 : vector<1x256xf32> to vector<256xf32>
    %21 = vector.shape_cast %20 : vector<256xf32> to vector<1x1x256xf32>
    %22 = vector.broadcast %21 : vector<1x1x256xf32> to vector<2x16x256xf32>
    %23 = arith.mulf %18, %22 : vector<2x16x256xf32>
    %24 = arith.addf %17, %23 : vector<2x16x256xf32>
    %25 = vector.extract_strided_slice %3 {offsets = [0, 3, 0], sizes = [2, 16, 256], strides = [1, 1, 1]} : vector<2x20x256xf32> to vector<2x16x256xf32>
    %c24 = arith.constant 24 : index
    %c0_7 = arith.constant 0 : index
    %26 = vector.load %arg2[%c24, %c0_7] : memref<35x256xf32, #tpu.memory_space<vmem>>, vector<1x256xf32>
    %27 = vector.shape_cast %26 : vector<1x256xf32> to vector<256xf32>
    %28 = vector.shape_cast %27 : vector<256xf32> to vector<1x1x256xf32>
    %29 = vector.broadcast %28 : vector<1x1x256xf32> to vector<2x16x256xf32>
    %30 = arith.mulf %25, %29 : vector<2x16x256xf32>
    %31 = arith.addf %24, %30 : vector<2x16x256xf32>
    %32 = vector.extract_strided_slice %3 {offsets = [0, 4, 0], sizes = [2, 16, 256], strides = [1, 1, 1]} : vector<2x20x256xf32> to vector<2x16x256xf32>
    %c29 = arith.constant 29 : index
    %c0_8 = arith.constant 0 : index
    %33 = vector.load %arg2[%c29, %c0_8] : memref<35x256xf32, #tpu.memory_space<vmem>>, vector<1x256xf32>
    %34 = vector.shape_cast %33 : vector<1x256xf32> to vector<256xf32>
    %35 = vector.shape_cast %34 : vector<256xf32> to vector<1x1x256xf32>
    %36 = vector.broadcast %35 : vector<1x1x256xf32> to vector<2x16x256xf32>
    %37 = arith.mulf %32, %36 : vector<2x16x256xf32>
    %38 = arith.addf %31, %37 : vector<2x16x256xf32>
    %c1 = arith.constant 1 : index
    %c0_9 = arith.constant 0 : index
    %c0_10 = arith.constant 0 : index
    %c0_11 = arith.constant 0 : index
    %39 = vector.load %arg1[%c1, %c0_9, %c0_10, %c0_11] : memref<5x2x20x256xf32, #tpu.memory_space<vmem>>, vector<1x2x20x256xf32>
    %40 = vector.shape_cast %39 : vector<1x2x20x256xf32> to vector<2x20x256xf32>
    %41 = vector.extract_strided_slice %40 {offsets = [0, 0, 0], sizes = [2, 16, 256], strides = [1, 1, 1]} : vector<2x20x256xf32> to vector<2x16x256xf32>
    %c10 = arith.constant 10 : index
    %c0_12 = arith.constant 0 : index
    %42 = vector.load %arg2[%c10, %c0_12] : memref<35x256xf32, #tpu.memory_space<vmem>>, vector<1x256xf32>
    %43 = vector.shape_cast %42 : vector<1x256xf32> to vector<256xf32>
    %44 = vector.shape_cast %43 : vector<256xf32> to vector<1x1x256xf32>
    %45 = vector.broadcast %44 : vector<1x1x256xf32> to vector<2x16x256xf32>
    %46 = arith.mulf %41, %45 : vector<2x16x256xf32>
    %47 = arith.addf %38, %46 : vector<2x16x256xf32>
    %48 = vector.extract_strided_slice %40 {offsets = [0, 1, 0], sizes = [2, 16, 256], strides = [1, 1, 1]} : vector<2x20x256xf32> to vector<2x16x256xf32>
    %c15 = arith.constant 15 : index
    %c0_13 = arith.constant 0 : index
    %49 = vector.load %arg2[%c15, %c0_13] : memref<35x256xf32, #tpu.memory_space<vmem>>, vector<1x256xf32>
    %50 = vector.shape_cast %49 : vector<1x256xf32> to vector<256xf32>
    %51 = vector.shape_cast %50 : vector<256xf32> to vector<1x1x256xf32>
    %52 = vector.broadcast %51 : vector<1x1x256xf32> to vector<2x16x256xf32>
    %53 = arith.mulf %48, %52 : vector<2x16x256xf32>
    %54 = arith.addf %47, %53 : vector<2x16x256xf32>
    %55 = vector.extract_strided_slice %40 {offsets = [0, 2, 0], sizes = [2, 16, 256], strides = [1, 1, 1]} : vector<2x20x256xf32> to vector<2x16x256xf32>
    %c20 = arith.constant 20 : index
    %c0_14 = arith.constant 0 : index
    %56 = vector.load %arg2[%c20, %c0_14] : memref<35x256xf32, #tpu.memory_space<vmem>>, vector<1x256xf32>
    %57 = vector.shape_cast %56 : vector<1x256xf32> to vector<256xf32>
    %58 = vector.shape_cast %57 : vector<256xf32> to vector<1x1x256xf32>
    %59 = vector.broadcast %58 : vector<1x1x256xf32> to vector<2x16x256xf32>
    %60 = arith.mulf %55, %59 : vector<2x16x256xf32>
    %61 = arith.addf %54, %60 : vector<2x16x256xf32>
    %62 = vector.extract_strided_slice %40 {offsets = [0, 3, 0], sizes = [2, 16, 256], strides = [1, 1, 1]} : vector<2x20x256xf32> to vector<2x16x256xf32>
    %c25 = arith.constant 25 : index
    %c0_15 = arith.constant 0 : index
    %63 = vector.load %arg2[%c25, %c0_15] : memref<35x256xf32, #tpu.memory_space<vmem>>, vector<1x256xf32>
    %64 = vector.shape_cast %63 : vector<1x256xf32> to vector<256xf32>
    %65 = vector.shape_cast %64 : vector<256xf32> to vector<1x1x256xf32>
    %66 = vector.broadcast %65 : vector<1x1x256xf32> to vector<2x16x256xf32>
    %67 = arith.mulf %62, %66 : vector<2x16x256xf32>
    %68 = arith.addf %61, %67 : vector<2x16x256xf32>
    %69 = vector.extract_strided_slice %40 {offsets = [0, 4, 0], sizes = [2, 16, 256], strides = [1, 1, 1]} : vector<2x20x256xf32> to vector<2x16x256xf32>
    %c30 = arith.constant 30 : index
    %c0_16 = arith.constant 0 : index
    %70 = vector.load %arg2[%c30, %c0_16] : memref<35x256xf32, #tpu.memory_space<vmem>>, vector<1x256xf32>
    %71 = vector.shape_cast %70 : vector<1x256xf32> to vector<256xf32>
    %72 = vector.shape_cast %71 : vector<256xf32> to vector<1x1x256xf32>
    %73 = vector.broadcast %72 : vector<1x1x256xf32> to vector<2x16x256xf32>
    %74 = arith.mulf %69, %73 : vector<2x16x256xf32>
    %75 = arith.addf %68, %74 : vector<2x16x256xf32>
    %76 = vector.extract_strided_slice %40 {offsets = [0, 1, 0], sizes = [2, 16, 256], strides = [1, 1, 1]} : vector<2x20x256xf32> to vector<2x16x256xf32>
    %c0_17 = arith.constant 0 : index
    %c0_18 = arith.constant 0 : index
    %77 = vector.load %arg2[%c0_17, %c0_18] : memref<35x256xf32, #tpu.memory_space<vmem>>, vector<1x256xf32>
    %78 = vector.shape_cast %77 : vector<1x256xf32> to vector<256xf32>
    %79 = vector.shape_cast %78 : vector<256xf32> to vector<1x1x256xf32>
    %80 = vector.broadcast %79 : vector<1x1x256xf32> to vector<2x16x256xf32>
    %81 = arith.mulf %76, %80 : vector<2x16x256xf32>
    %82 = arith.addf %0, %81 : vector<2x16x256xf32>
    %83 = vector.extract_strided_slice %40 {offsets = [0, 2, 0], sizes = [2, 16, 256], strides = [1, 1, 1]} : vector<2x20x256xf32> to vector<2x16x256xf32>
    %c3 = arith.constant 3 : index
    %c0_19 = arith.constant 0 : index
    %84 = vector.load %arg2[%c3, %c0_19] : memref<35x256xf32, #tpu.memory_space<vmem>>, vector<1x256xf32>
    %85 = vector.shape_cast %84 : vector<1x256xf32> to vector<256xf32>
    %86 = vector.shape_cast %85 : vector<256xf32> to vector<1x1x256xf32>
    %87 = vector.broadcast %86 : vector<1x1x256xf32> to vector<2x16x256xf32>
    %88 = arith.mulf %83, %87 : vector<2x16x256xf32>
    %89 = arith.addf %82, %88 : vector<2x16x256xf32>
    %90 = vector.extract_strided_slice %40 {offsets = [0, 3, 0], sizes = [2, 16, 256], strides = [1, 1, 1]} : vector<2x20x256xf32> to vector<2x16x256xf32>
    %c6 = arith.constant 6 : index
    %c0_20 = arith.constant 0 : index
    %91 = vector.load %arg2[%c6, %c0_20] : memref<35x256xf32, #tpu.memory_space<vmem>>, vector<1x256xf32>
    %92 = vector.shape_cast %91 : vector<1x256xf32> to vector<256xf32>
    %93 = vector.shape_cast %92 : vector<256xf32> to vector<1x1x256xf32>
    %94 = vector.broadcast %93 : vector<1x1x256xf32> to vector<2x16x256xf32>
    %95 = arith.mulf %90, %94 : vector<2x16x256xf32>
    %96 = arith.addf %89, %95 : vector<2x16x256xf32>
    %c2 = arith.constant 2 : index
    %c0_21 = arith.constant 0 : index
    %c0_22 = arith.constant 0 : index
    %c0_23 = arith.constant 0 : index
    %97 = vector.load %arg1[%c2, %c0_21, %c0_22, %c0_23] : memref<5x2x20x256xf32, #tpu.memory_space<vmem>>, vector<1x2x20x256xf32>
    %98 = vector.shape_cast %97 : vector<1x2x20x256xf32> to vector<2x20x256xf32>
    %99 = vector.extract_strided_slice %98 {offsets = [0, 0, 0], sizes = [2, 16, 256], strides = [1, 1, 1]} : vector<2x20x256xf32> to vector<2x16x256xf32>
    %c11 = arith.constant 11 : index
    %c0_24 = arith.constant 0 : index
    %100 = vector.load %arg2[%c11, %c0_24] : memref<35x256xf32, #tpu.memory_space<vmem>>, vector<1x256xf32>
    %101 = vector.shape_cast %100 : vector<1x256xf32> to vector<256xf32>
    %102 = vector.shape_cast %101 : vector<256xf32> to vector<1x1x256xf32>
    %103 = vector.broadcast %102 : vector<1x1x256xf32> to vector<2x16x256xf32>
    %104 = arith.mulf %99, %103 : vector<2x16x256xf32>
    %105 = arith.addf %75, %104 : vector<2x16x256xf32>
    %106 = vector.extract_strided_slice %98 {offsets = [0, 1, 0], sizes = [2, 16, 256], strides = [1, 1, 1]} : vector<2x20x256xf32> to vector<2x16x256xf32>
    %c16 = arith.constant 16 : index
    %c0_25 = arith.constant 0 : index
    %107 = vector.load %arg2[%c16, %c0_25] : memref<35x256xf32, #tpu.memory_space<vmem>>, vector<1x256xf32>
    %108 = vector.shape_cast %107 : vector<1x256xf32> to vector<256xf32>
    %109 = vector.shape_cast %108 : vector<256xf32> to vector<1x1x256xf32>
    %110 = vector.broadcast %109 : vector<1x1x256xf32> to vector<2x16x256xf32>
    %111 = arith.mulf %106, %110 : vector<2x16x256xf32>
    %112 = arith.addf %105, %111 : vector<2x16x256xf32>
    %113 = vector.extract_strided_slice %98 {offsets = [0, 2, 0], sizes = [2, 16, 256], strides = [1, 1, 1]} : vector<2x20x256xf32> to vector<2x16x256xf32>
    %c21 = arith.constant 21 : index
    %c0_26 = arith.constant 0 : index
    %114 = vector.load %arg2[%c21, %c0_26] : memref<35x256xf32, #tpu.memory_space<vmem>>, vector<1x256xf32>
    %115 = vector.shape_cast %114 : vector<1x256xf32> to vector<256xf32>
    %116 = vector.shape_cast %115 : vector<256xf32> to vector<1x1x256xf32>
    %117 = vector.broadcast %116 : vector<1x1x256xf32> to vector<2x16x256xf32>
    %118 = arith.mulf %113, %117 : vector<2x16x256xf32>
    %119 = arith.addf %112, %118 : vector<2x16x256xf32>
    %120 = vector.extract_strided_slice %98 {offsets = [0, 3, 0], sizes = [2, 16, 256], strides = [1, 1, 1]} : vector<2x20x256xf32> to vector<2x16x256xf32>
    %c26 = arith.constant 26 : index
    %c0_27 = arith.constant 0 : index
    %121 = vector.load %arg2[%c26, %c0_27] : memref<35x256xf32, #tpu.memory_space<vmem>>, vector<1x256xf32>
    %122 = vector.shape_cast %121 : vector<1x256xf32> to vector<256xf32>
    %123 = vector.shape_cast %122 : vector<256xf32> to vector<1x1x256xf32>
    %124 = vector.broadcast %123 : vector<1x1x256xf32> to vector<2x16x256xf32>
    %125 = arith.mulf %120, %124 : vector<2x16x256xf32>
    %126 = arith.addf %119, %125 : vector<2x16x256xf32>
    %127 = vector.extract_strided_slice %98 {offsets = [0, 4, 0], sizes = [2, 16, 256], strides = [1, 1, 1]} : vector<2x20x256xf32> to vector<2x16x256xf32>
    %c31 = arith.constant 31 : index
    %c0_28 = arith.constant 0 : index
    %128 = vector.load %arg2[%c31, %c0_28] : memref<35x256xf32, #tpu.memory_space<vmem>>, vector<1x256xf32>
    %129 = vector.shape_cast %128 : vector<1x256xf32> to vector<256xf32>
    %130 = vector.shape_cast %129 : vector<256xf32> to vector<1x1x256xf32>
    %131 = vector.broadcast %130 : vector<1x1x256xf32> to vector<2x16x256xf32>
    %132 = arith.mulf %127, %131 : vector<2x16x256xf32>
    %133 = arith.addf %126, %132 : vector<2x16x256xf32>
    %134 = vector.extract_strided_slice %98 {offsets = [0, 1, 0], sizes = [2, 16, 256], strides = [1, 1, 1]} : vector<2x20x256xf32> to vector<2x16x256xf32>
    %c1_29 = arith.constant 1 : index
    %c0_30 = arith.constant 0 : index
    %135 = vector.load %arg2[%c1_29, %c0_30] : memref<35x256xf32, #tpu.memory_space<vmem>>, vector<1x256xf32>
    %136 = vector.shape_cast %135 : vector<1x256xf32> to vector<256xf32>
    %137 = vector.shape_cast %136 : vector<256xf32> to vector<1x1x256xf32>
    %138 = vector.broadcast %137 : vector<1x1x256xf32> to vector<2x16x256xf32>
    %139 = arith.mulf %134, %138 : vector<2x16x256xf32>
    %140 = arith.addf %96, %139 : vector<2x16x256xf32>
    %141 = vector.extract_strided_slice %98 {offsets = [0, 2, 0], sizes = [2, 16, 256], strides = [1, 1, 1]} : vector<2x20x256xf32> to vector<2x16x256xf32>
    %c4 = arith.constant 4 : index
    %c0_31 = arith.constant 0 : index
    %142 = vector.load %arg2[%c4, %c0_31] : memref<35x256xf32, #tpu.memory_space<vmem>>, vector<1x256xf32>
    %143 = vector.shape_cast %142 : vector<1x256xf32> to vector<256xf32>
    %144 = vector.shape_cast %143 : vector<256xf32> to vector<1x1x256xf32>
    %145 = vector.broadcast %144 : vector<1x1x256xf32> to vector<2x16x256xf32>
    %146 = arith.mulf %141, %145 : vector<2x16x256xf32>
    %147 = arith.addf %140, %146 : vector<2x16x256xf32>
    %148 = vector.extract_strided_slice %98 {offsets = [0, 3, 0], sizes = [2, 16, 256], strides = [1, 1, 1]} : vector<2x20x256xf32> to vector<2x16x256xf32>
    %c7 = arith.constant 7 : index
    %c0_32 = arith.constant 0 : index
    %149 = vector.load %arg2[%c7, %c0_32] : memref<35x256xf32, #tpu.memory_space<vmem>>, vector<1x256xf32>
    %150 = vector.shape_cast %149 : vector<1x256xf32> to vector<256xf32>
    %151 = vector.shape_cast %150 : vector<256xf32> to vector<1x1x256xf32>
    %152 = vector.broadcast %151 : vector<1x1x256xf32> to vector<2x16x256xf32>
    %153 = arith.mulf %148, %152 : vector<2x16x256xf32>
    %154 = arith.addf %147, %153 : vector<2x16x256xf32>
    %c3_33 = arith.constant 3 : index
    %c0_34 = arith.constant 0 : index
    %c0_35 = arith.constant 0 : index
    %c0_36 = arith.constant 0 : index
    %155 = vector.load %arg1[%c3_33, %c0_34, %c0_35, %c0_36] : memref<5x2x20x256xf32, #tpu.memory_space<vmem>>, vector<1x2x20x256xf32>
    %156 = vector.shape_cast %155 : vector<1x2x20x256xf32> to vector<2x20x256xf32>
    %157 = vector.extract_strided_slice %156 {offsets = [0, 0, 0], sizes = [2, 16, 256], strides = [1, 1, 1]} : vector<2x20x256xf32> to vector<2x16x256xf32>
    %c12 = arith.constant 12 : index
    %c0_37 = arith.constant 0 : index
    %158 = vector.load %arg2[%c12, %c0_37] : memref<35x256xf32, #tpu.memory_space<vmem>>, vector<1x256xf32>
    %159 = vector.shape_cast %158 : vector<1x256xf32> to vector<256xf32>
    %160 = vector.shape_cast %159 : vector<256xf32> to vector<1x1x256xf32>
    %161 = vector.broadcast %160 : vector<1x1x256xf32> to vector<2x16x256xf32>
    %162 = arith.mulf %157, %161 : vector<2x16x256xf32>
    %163 = arith.addf %133, %162 : vector<2x16x256xf32>
    %164 = vector.extract_strided_slice %156 {offsets = [0, 1, 0], sizes = [2, 16, 256], strides = [1, 1, 1]} : vector<2x20x256xf32> to vector<2x16x256xf32>
    %c17 = arith.constant 17 : index
    %c0_38 = arith.constant 0 : index
    %165 = vector.load %arg2[%c17, %c0_38] : memref<35x256xf32, #tpu.memory_space<vmem>>, vector<1x256xf32>
    %166 = vector.shape_cast %165 : vector<1x256xf32> to vector<256xf32>
    %167 = vector.shape_cast %166 : vector<256xf32> to vector<1x1x256xf32>
    %168 = vector.broadcast %167 : vector<1x1x256xf32> to vector<2x16x256xf32>
    %169 = arith.mulf %164, %168 : vector<2x16x256xf32>
    %170 = arith.addf %163, %169 : vector<2x16x256xf32>
    %171 = vector.extract_strided_slice %156 {offsets = [0, 2, 0], sizes = [2, 16, 256], strides = [1, 1, 1]} : vector<2x20x256xf32> to vector<2x16x256xf32>
    %c22 = arith.constant 22 : index
    %c0_39 = arith.constant 0 : index
    %172 = vector.load %arg2[%c22, %c0_39] : memref<35x256xf32, #tpu.memory_space<vmem>>, vector<1x256xf32>
    %173 = vector.shape_cast %172 : vector<1x256xf32> to vector<256xf32>
    %174 = vector.shape_cast %173 : vector<256xf32> to vector<1x1x256xf32>
    %175 = vector.broadcast %174 : vector<1x1x256xf32> to vector<2x16x256xf32>
    %176 = arith.mulf %171, %175 : vector<2x16x256xf32>
    %177 = arith.addf %170, %176 : vector<2x16x256xf32>
    %178 = vector.extract_strided_slice %156 {offsets = [0, 3, 0], sizes = [2, 16, 256], strides = [1, 1, 1]} : vector<2x20x256xf32> to vector<2x16x256xf32>
    %c27 = arith.constant 27 : index
    %c0_40 = arith.constant 0 : index
    %179 = vector.load %arg2[%c27, %c0_40] : memref<35x256xf32, #tpu.memory_space<vmem>>, vector<1x256xf32>
    %180 = vector.shape_cast %179 : vector<1x256xf32> to vector<256xf32>
    %181 = vector.shape_cast %180 : vector<256xf32> to vector<1x1x256xf32>
    %182 = vector.broadcast %181 : vector<1x1x256xf32> to vector<2x16x256xf32>
    %183 = arith.mulf %178, %182 : vector<2x16x256xf32>
    %184 = arith.addf %177, %183 : vector<2x16x256xf32>
    %185 = vector.extract_strided_slice %156 {offsets = [0, 4, 0], sizes = [2, 16, 256], strides = [1, 1, 1]} : vector<2x20x256xf32> to vector<2x16x256xf32>
    %c32 = arith.constant 32 : index
    %c0_41 = arith.constant 0 : index
    %186 = vector.load %arg2[%c32, %c0_41] : memref<35x256xf32, #tpu.memory_space<vmem>>, vector<1x256xf32>
    %187 = vector.shape_cast %186 : vector<1x256xf32> to vector<256xf32>
    %188 = vector.shape_cast %187 : vector<256xf32> to vector<1x1x256xf32>
    %189 = vector.broadcast %188 : vector<1x1x256xf32> to vector<2x16x256xf32>
    %190 = arith.mulf %185, %189 : vector<2x16x256xf32>
    %191 = arith.addf %184, %190 : vector<2x16x256xf32>
    %192 = vector.extract_strided_slice %156 {offsets = [0, 1, 0], sizes = [2, 16, 256], strides = [1, 1, 1]} : vector<2x20x256xf32> to vector<2x16x256xf32>
    %c2_42 = arith.constant 2 : index
    %c0_43 = arith.constant 0 : index
    %193 = vector.load %arg2[%c2_42, %c0_43] : memref<35x256xf32, #tpu.memory_space<vmem>>, vector<1x256xf32>
    %194 = vector.shape_cast %193 : vector<1x256xf32> to vector<256xf32>
    %195 = vector.shape_cast %194 : vector<256xf32> to vector<1x1x256xf32>
    %196 = vector.broadcast %195 : vector<1x1x256xf32> to vector<2x16x256xf32>
    %197 = arith.mulf %192, %196 : vector<2x16x256xf32>
    %198 = arith.addf %154, %197 : vector<2x16x256xf32>
    %199 = vector.extract_strided_slice %156 {offsets = [0, 2, 0], sizes = [2, 16, 256], strides = [1, 1, 1]} : vector<2x20x256xf32> to vector<2x16x256xf32>
    %c5 = arith.constant 5 : index
    %c0_44 = arith.constant 0 : index
    %200 = vector.load %arg2[%c5, %c0_44] : memref<35x256xf32, #tpu.memory_space<vmem>>, vector<1x256xf32>
    %201 = vector.shape_cast %200 : vector<1x256xf32> to vector<256xf32>
    %202 = vector.shape_cast %201 : vector<256xf32> to vector<1x1x256xf32>
    %203 = vector.broadcast %202 : vector<1x1x256xf32> to vector<2x16x256xf32>
    %204 = arith.mulf %199, %203 : vector<2x16x256xf32>
    %205 = arith.addf %198, %204 : vector<2x16x256xf32>
    %206 = vector.extract_strided_slice %156 {offsets = [0, 3, 0], sizes = [2, 16, 256], strides = [1, 1, 1]} : vector<2x20x256xf32> to vector<2x16x256xf32>
    %c8 = arith.constant 8 : index
    %c0_45 = arith.constant 0 : index
    %207 = vector.load %arg2[%c8, %c0_45] : memref<35x256xf32, #tpu.memory_space<vmem>>, vector<1x256xf32>
    %208 = vector.shape_cast %207 : vector<1x256xf32> to vector<256xf32>
    %209 = vector.shape_cast %208 : vector<256xf32> to vector<1x1x256xf32>
    %210 = vector.broadcast %209 : vector<1x1x256xf32> to vector<2x16x256xf32>
    %211 = arith.mulf %206, %210 : vector<2x16x256xf32>
    %212 = arith.addf %205, %211 : vector<2x16x256xf32>
    %c4_46 = arith.constant 4 : index
    %c0_47 = arith.constant 0 : index
    %c0_48 = arith.constant 0 : index
    %c0_49 = arith.constant 0 : index
    %213 = vector.load %arg1[%c4_46, %c0_47, %c0_48, %c0_49] : memref<5x2x20x256xf32, #tpu.memory_space<vmem>>, vector<1x2x20x256xf32>
    %214 = vector.shape_cast %213 : vector<1x2x20x256xf32> to vector<2x20x256xf32>
    %215 = vector.extract_strided_slice %214 {offsets = [0, 0, 0], sizes = [2, 16, 256], strides = [1, 1, 1]} : vector<2x20x256xf32> to vector<2x16x256xf32>
    %c13 = arith.constant 13 : index
    %c0_50 = arith.constant 0 : index
    %216 = vector.load %arg2[%c13, %c0_50] : memref<35x256xf32, #tpu.memory_space<vmem>>, vector<1x256xf32>
    %217 = vector.shape_cast %216 : vector<1x256xf32> to vector<256xf32>
    %218 = vector.shape_cast %217 : vector<256xf32> to vector<1x1x256xf32>
    %219 = vector.broadcast %218 : vector<1x1x256xf32> to vector<2x16x256xf32>
    %220 = arith.mulf %215, %219 : vector<2x16x256xf32>
    %221 = arith.addf %191, %220 : vector<2x16x256xf32>
    %222 = vector.extract_strided_slice %214 {offsets = [0, 1, 0], sizes = [2, 16, 256], strides = [1, 1, 1]} : vector<2x20x256xf32> to vector<2x16x256xf32>
    %c18 = arith.constant 18 : index
    %c0_51 = arith.constant 0 : index
    %223 = vector.load %arg2[%c18, %c0_51] : memref<35x256xf32, #tpu.memory_space<vmem>>, vector<1x256xf32>
    %224 = vector.shape_cast %223 : vector<1x256xf32> to vector<256xf32>
    %225 = vector.shape_cast %224 : vector<256xf32> to vector<1x1x256xf32>
    %226 = vector.broadcast %225 : vector<1x1x256xf32> to vector<2x16x256xf32>
    %227 = arith.mulf %222, %226 : vector<2x16x256xf32>
    %228 = arith.addf %221, %227 : vector<2x16x256xf32>
    %229 = vector.extract_strided_slice %214 {offsets = [0, 2, 0], sizes = [2, 16, 256], strides = [1, 1, 1]} : vector<2x20x256xf32> to vector<2x16x256xf32>
    %c23 = arith.constant 23 : index
    %c0_52 = arith.constant 0 : index
    %230 = vector.load %arg2[%c23, %c0_52] : memref<35x256xf32, #tpu.memory_space<vmem>>, vector<1x256xf32>
    %231 = vector.shape_cast %230 : vector<1x256xf32> to vector<256xf32>
    %232 = vector.shape_cast %231 : vector<256xf32> to vector<1x1x256xf32>
    %233 = vector.broadcast %232 : vector<1x1x256xf32> to vector<2x16x256xf32>
    %234 = arith.mulf %229, %233 : vector<2x16x256xf32>
    %235 = arith.addf %228, %234 : vector<2x16x256xf32>
    %236 = vector.extract_strided_slice %214 {offsets = [0, 3, 0], sizes = [2, 16, 256], strides = [1, 1, 1]} : vector<2x20x256xf32> to vector<2x16x256xf32>
    %c28 = arith.constant 28 : index
    %c0_53 = arith.constant 0 : index
    %237 = vector.load %arg2[%c28, %c0_53] : memref<35x256xf32, #tpu.memory_space<vmem>>, vector<1x256xf32>
    %238 = vector.shape_cast %237 : vector<1x256xf32> to vector<256xf32>
    %239 = vector.shape_cast %238 : vector<256xf32> to vector<1x1x256xf32>
    %240 = vector.broadcast %239 : vector<1x1x256xf32> to vector<2x16x256xf32>
    %241 = arith.mulf %236, %240 : vector<2x16x256xf32>
    %242 = arith.addf %235, %241 : vector<2x16x256xf32>
    %243 = vector.extract_strided_slice %214 {offsets = [0, 4, 0], sizes = [2, 16, 256], strides = [1, 1, 1]} : vector<2x20x256xf32> to vector<2x16x256xf32>
    %c33 = arith.constant 33 : index
    %c0_54 = arith.constant 0 : index
    %244 = vector.load %arg2[%c33, %c0_54] : memref<35x256xf32, #tpu.memory_space<vmem>>, vector<1x256xf32>
    %245 = vector.shape_cast %244 : vector<1x256xf32> to vector<256xf32>
    %246 = vector.shape_cast %245 : vector<256xf32> to vector<1x1x256xf32>
    %247 = vector.broadcast %246 : vector<1x1x256xf32> to vector<2x16x256xf32>
    %248 = arith.mulf %243, %247 : vector<2x16x256xf32>
    %249 = arith.addf %242, %248 : vector<2x16x256xf32>
    %250 = vector.shape_cast %212 : vector<2x16x256xf32> to vector<32x256xf32>
    %251 = vector.shape_cast %249 : vector<2x16x256xf32> to vector<32x256xf32>
    %252 = tpu.concatenate %250, %251 in 1 : vector<32x256xf32>, vector<32x256xf32> -> vector<32x512xf32>
    %253 = arith.truncf %252 : vector<32x512xf32> to vector<32x512xbf16>
    %c0_55 = arith.constant 0 : index
    %c0_56 = arith.constant 0 : index
    %254 = vector.load %arg3[%c0_55, %c0_56] : memref<512x256xbf16, #tpu.memory_space<vmem>>, vector<512x256xbf16>
    %cst_57 = arith.constant dense<0.000000e+00> : vector<32x256xf32>
    %255 = tpu.matmul %253, %254, %cst_57 {dimension_numbers = #tpu.dot_dimension_numbers<[1], [0], [0], [1], [0, 0, 1, 1], [], []>} : vector<32x512xbf16>, vector<512x256xbf16>, vector<32x256xf32> -> vector<32x256xf32>
    %c34 = arith.constant 34 : index
    %c0_58 = arith.constant 0 : index
    %256 = vector.load %arg2[%c34, %c0_58] : memref<35x256xf32, #tpu.memory_space<vmem>>, vector<1x256xf32>
    %257 = vector.broadcast %256 : vector<1x256xf32> to vector<32x256xf32>
    %258 = arith.addf %255, %257 : vector<32x256xf32>
    %cst_59 = arith.constant dense<0.000000e+00> : vector<256xf32>
    %259 = vector.multi_reduction <add>, %258, %cst_59 [0] : vector<32x256xf32> to vector<256xf32>
    %260 = vector.shape_cast %259 : vector<256xf32> to vector<1x256xf32>
    %261 = arith.mulf %258, %258 : vector<32x256xf32>
    %cst_60 = arith.constant dense<0.000000e+00> : vector<256xf32>
    %262 = vector.multi_reduction <add>, %261, %cst_60 [0] : vector<32x256xf32> to vector<256xf32>
    %263 = vector.shape_cast %262 : vector<256xf32> to vector<1x256xf32>
    %264 = tpu.concatenate %260, %263 in 0 : vector<1x256xf32>, vector<1x256xf32> -> vector<2x256xf32>
    %c0_61 = arith.constant 0 : index
    %c0_62 = arith.constant 0 : index
    %265 = vector.load %arg5[%c0_61, %c0_62] : memref<256x16xf32, #tpu.memory_space<vmem>>, vector<256x16xf32>
    %cst_63 = arith.constant dense<0.000000e+00> : vector<2x16xf32>
    %266 = tpu.matmul %264, %265, %cst_63 {dimension_numbers = #tpu.dot_dimension_numbers<[1], [0], [0], [1], [0, 0, 1, 1], [], []>} : vector<2x256xf32>, vector<256x16xf32>, vector<2x16xf32> -> vector<2x16xf32>
    %267 = vector.extract_strided_slice %266 {offsets = [0, 0], sizes = [1, 16], strides = [1, 1]} : vector<2x16xf32> to vector<1x16xf32>
    %cst_64 = arith.constant 5.120000e+02 : f32
    %268 = vector.broadcast %cst_64 : f32 to vector<1x16xf32>
    %269 = arith.divf %267, %268 : vector<1x16xf32>
    %270 = vector.extract_strided_slice %266 {offsets = [1, 0], sizes = [1, 16], strides = [1, 1]} : vector<2x16xf32> to vector<1x16xf32>
    %cst_65 = arith.constant 5.120000e+02 : f32
    %271 = vector.broadcast %cst_65 : f32 to vector<1x16xf32>
    %272 = arith.divf %270, %271 : vector<1x16xf32>
    %273 = arith.mulf %269, %269 : vector<1x16xf32>
    %274 = arith.subf %272, %273 : vector<1x16xf32>
    %c0_66 = arith.constant 0 : index
    %c0_67 = arith.constant 0 : index
    %275 = vector.load %arg4[%c0_66, %c0_67] : memref<2x16xf32, #tpu.memory_space<vmem>>, vector<1x16xf32>
    %cst_68 = arith.constant 9.99999974E-6 : f32
    %276 = vector.broadcast %cst_68 : f32 to vector<1x16xf32>
    %277 = arith.addf %274, %276 : vector<1x16xf32>
    %278 = math.rsqrt %277 : vector<1x16xf32>
    %279 = arith.mulf %275, %278 : vector<1x16xf32>
    %c1_69 = arith.constant 1 : index
    %c0_70 = arith.constant 0 : index
    %280 = vector.load %arg4[%c1_69, %c0_70] : memref<2x16xf32, #tpu.memory_space<vmem>>, vector<1x16xf32>
    %281 = arith.mulf %269, %279 : vector<1x16xf32>
    %282 = arith.subf %280, %281 : vector<1x16xf32>
    %283 = tpu.concatenate %279, %282 in 0 : vector<1x16xf32>, vector<1x16xf32> -> vector<2x16xf32>
    %c0_71 = arith.constant 0 : index
    %c0_72 = arith.constant 0 : index
    %284 = vector.load %arg6[%c0_71, %c0_72] : memref<16x256xf32, #tpu.memory_space<vmem>>, vector<16x256xf32>
    %cst_73 = arith.constant dense<0.000000e+00> : vector<2x256xf32>
    %285 = tpu.matmul %283, %284, %cst_73 {dimension_numbers = #tpu.dot_dimension_numbers<[1], [0], [0], [1], [0, 0, 1, 1], [], []>} : vector<2x16xf32>, vector<16x256xf32>, vector<2x256xf32> -> vector<2x256xf32>
    %286 = vector.extract_strided_slice %285 {offsets = [0, 0], sizes = [1, 256], strides = [1, 1]} : vector<2x256xf32> to vector<1x256xf32>
    %287 = vector.broadcast %286 : vector<1x256xf32> to vector<32x256xf32>
    %288 = arith.mulf %258, %287 : vector<32x256xf32>
    %289 = vector.extract_strided_slice %285 {offsets = [1, 0], sizes = [1, 256], strides = [1, 1]} : vector<2x256xf32> to vector<1x256xf32>
    %290 = vector.broadcast %289 : vector<1x256xf32> to vector<32x256xf32>
    %291 = arith.addf %288, %290 : vector<32x256xf32>
    %cst_74 = arith.constant 0.000000e+00 : f32
    %292 = vector.broadcast %cst_74 : f32 to vector<32x256xf32>
    %293 = arith.maximumf %291, %292 : vector<32x256xf32>
    %294 = vector.shape_cast %293 : vector<32x256xf32> to vector<2x8x2x256xf32>
    %cst_75 = arith.constant dense<0xFF800000> : vector<2x8x256xf32>
    %295 = vector.multi_reduction <maximumf>, %294, %cst_75 [2] : vector<2x8x2x256xf32> to vector<2x8x256xf32>
    %296 = vector.shape_cast %295 : vector<2x8x256xf32> to vector<16x256xf32>
    %297 = arith.truncf %296 : vector<16x256xf32> to vector<16x256xbf16>
    %c0_76 = arith.constant 0 : index
    %c0_77 = arith.constant 0 : index
    %298 = vector.load %arg7[%c0_76, %c0_77] : memref<256x256xbf16, #tpu.memory_space<vmem>>, vector<256x256xbf16>
    %cst_78 = arith.constant dense<0.000000e+00> : vector<16x256xf32>
    %299 = tpu.matmul %297, %298, %cst_78 {dimension_numbers = #tpu.dot_dimension_numbers<[1], [0], [0], [1], [0, 0, 1, 1], [], []>} : vector<16x256xbf16>, vector<256x256xbf16>, vector<16x256xf32> -> vector<16x256xf32>
    %300 = vector.extract_strided_slice %299 {offsets = [0, 0], sizes = [16, 128], strides = [1, 1]} : vector<16x256xf32> to vector<16x128xf32>
    %301 = vector.extract_strided_slice %299 {offsets = [0, 128], sizes = [16, 128], strides = [1, 1]} : vector<16x256xf32> to vector<16x128xf32>
    %302 = arith.maximumf %300, %301 : vector<16x128xf32>
    %303 = vector.shape_cast %302 : vector<16x128xf32> to vector<2x8x128xf32>
    %c0_79 = arith.constant 0 : index
    %c0_80 = arith.constant 0 : index
    %c0_81 = arith.constant 0 : index
    %304 = vector.load %arg8[%c0_79, %c0_80, %c0_81] : memref<2x8x128xf32, #tpu.memory_space<vmem>>, vector<2x8x128xf32>
    tpu.vector_store %arg8[%c0_79, %c0_80, %c0_81], %303 {strides = array<i32>} : memref<2x8x128xf32, #tpu.memory_space<vmem>>, vector<2x8x128xf32>,
    return
  }
  func.func @transform_0(%arg0: i32) -> (i32, i32, i32, i32) {
    %c0_i32 = arith.constant 0 : i32
    %c0_i32_0 = arith.constant 0 : i32
    %c0_i32_1 = arith.constant 0 : i32
    %c0_i32_2 = arith.constant 0 : i32
    %c0_i32_3 = arith.constant 0 : i32
    return %c0_i32, %c0_i32_0, %c0_i32_1, %c0_i32_2 : i32, i32, i32, i32
  }
  func.func @transform_1(%arg0: i32) -> (i32, i32) {
    %c0_i32 = arith.constant 0 : i32
    %c0_i32_0 = arith.constant 0 : i32
    %c0_i32_1 = arith.constant 0 : i32
    return %c0_i32, %c0_i32_0 : i32, i32
  }
  func.func @transform_2(%arg0: i32) -> (i32, i32) {
    %c0_i32 = arith.constant 0 : i32
    %c0_i32_0 = arith.constant 0 : i32
    %c0_i32_1 = arith.constant 0 : i32
    return %c0_i32, %c0_i32_0 : i32, i32
  }
  func.func @transform_3(%arg0: i32) -> (i32, i32) {
    %c0_i32 = arith.constant 0 : i32
    %c0_i32_0 = arith.constant 0 : i32
    %c0_i32_1 = arith.constant 0 : i32
    return %c0_i32, %c0_i32_0 : i32, i32
  }
  func.func @transform_4(%arg0: i32) -> (i32, i32) {
    %c0_i32 = arith.constant 0 : i32
    %c0_i32_0 = arith.constant 0 : i32
    %c0_i32_1 = arith.constant 0 : i32
    return %c0_i32, %c0_i32_0 : i32, i32
  }
  func.func @transform_5(%arg0: i32) -> (i32, i32) {
    %c0_i32 = arith.constant 0 : i32
    %c0_i32_0 = arith.constant 0 : i32
    %c0_i32_1 = arith.constant 0 : i32
    return %c0_i32, %c0_i32_0 : i32, i32
  }
  func.func @transform_6(%arg0: i32) -> (i32, i32) {
    %c0_i32 = arith.constant 0 : i32
    %c0_i32_0 = arith.constant 0 : i32
    %c0_i32_1 = arith.constant 0 : i32
    return %c0_i32, %c0_i32_0 : i32, i32
  }
  func.func @transform_7(%arg0: i32) -> (i32, i32, i32) {
    %c0_i32 = arith.constant 0 : i32
    %c0_i32_0 = arith.constant 0 : i32
    %c0_i32_1 = arith.constant 0 : i32
    %c0_i32_2 = arith.constant 0 : i32
    return %c0_i32, %c0_i32_0, %c0_i32_1 : i32, i32, i32
  }
}

</mosaic_0001>

<bundles_post_ra>
// kernel: msdsc_forward.1
= control target key start
LH: loop header
LB: loop body
LE: loop exit
PB: predicated region body
PF: predicated region fallthrough
CT: control target
= control target key end

     0   :  { %v41_v9 = vlaneseq  ;;  %vm104_vm0 = vcmask 1046528   ;;  %vm178_vm1 = vcmask 1045504   ;;  %vm252_vm2 = vcmask 1044480   ;;  %s6518_s2 = inlined_call_operand.vmem [shape: bf16[512,256], index: 2, kind: input, shape index: {}]   ;;  %s6519_s0 = inlined_call_operand.vmem [shape: f32[5,2,20,256], index: 0, kind: input, shape index: {}]   ;;  %s6520_s1 = inlined_call_operand.vmem [shape: f32[35,256], index: 1, kind: input, shape index: {}]   ;;  %s6521_s4 = inlined_call_operand.vmem [shape: f32[256,16], index: 4, kind: input, shape index: {}]   ;;  %s6522_s5 = inlined_call_operand.vmem [shape: f32[16,256], index: 5, kind: input, shape index: {}]   ;;  %s6523_s6 = inlined_call_operand.vmem [shape: bf16[256,256], index: 6, kind: input, shape index: {}]   ;;  %s6524_s3 = inlined_call_operand.vmem [shape: f32[2,16], index: 3, kind: input, shape index: {}]   ;;  %s6525_s7 = inlined_call_operand.vmem [shape: f32[2,8,128], index: 7, kind: output, shape index: {}]  }
   0x1   :  { %v4246_v0 = vld [vmem:[%s6518_s2 + $0x4] ss:$8 sps:$4 sm:$0xff]   ;;  %v4248_v1 = vld [vmem:[%s6518_s2] ss:$8 sps:$4 sm:$0xff]   ;;  %v4249_v2 = vld [vmem:[%s6518_s2 + $0x14] ss:$8 sps:$4 sm:$0xff]  }
   0x2   :  { %2740 = vmatprep.subr.bf16.mxu0 %v4246_v0  ;;  %v4251_v3 = vld [vmem:[%s6518_s2 + $0x10] ss:$8 sps:$4 sm:$0xff]   ;;  %v4252_v4 = vld [vmem:[%s6518_s2 + $0x24] ss:$8 sps:$4 sm:$0xff]   ;;  %v4254_v5 = vld [vmem:[%s6518_s2 + $0x20] ss:$8 sps:$4 sm:$0xff]  }
   0x3   :  { %2741 = vmatpush1.bf16.msra.mxu0 %v4248_v1  ;;  %v4255_v6 = vld [vmem:[%s6518_s2 + $0x34] ss:$8 sps:$4 sm:$0xff]   ;;  %v4257_v7 = vld [vmem:[%s6518_s2 + $0x30] ss:$8 sps:$4 sm:$0xff]   ;;  %v4258_v8 = vld [vmem:[%s6518_s2 + $0x44] ss:$8 sps:$4 sm:$0xff]  }
   0x4   :  { %2742 = vmatprep.subr.bf16.mxu0 %v4249_v2  ;;  %v4260_v10 = vld [vmem:[%s6518_s2 + $0x40] ss:$8 sps:$4 sm:$0xff]   ;;  %v4261_v11 = vld [vmem:[%s6518_s2 + $0x54] ss:$8 sps:$4 sm:$0xff]   ;;  %v4502_v12 = vshrl.u32 %v41_v9, 7  ;;  %vm326_vm3 = vcmask 1043456  }
   0x5   :  { %v4263_v13 = vld [vmem:[%s6518_s2 + $0x50] ss:$8 sps:$4 sm:$0xff]   ;;  %v4264_v14 = vld [vmem:[%s6518_s2 + $0x64] ss:$8 sps:$4 sm:$0xff]   ;;  %v4266_v15 = vld [vmem:[%s6518_s2 + $0x60] ss:$8 sps:$4 sm:$0xff]  }
   0x6   :  { %6568 = vst [vmem:[#allocation2_spill] sm:$0xff] %v4502_v12  ;;  %v4514_v16 = vsub.s32 0, %v4502_v12  ;;  %v4517_v17 = vsub.s32 1, %v4502_v12  ;;  %v4267_v18 = vld [vmem:[%s6518_s2 + $0x74] ss:$8 sps:$4 sm:$0xff]   ;;  %v3984_v19 = vld [vmem:[%s6519_s0 + $0x68] sm:$0xff] }
   0x7   :  { %2743 = vmatpush1.bf16.msra.mxu0 %v4251_v3  ;;  %v3986_v20 = vld [vmem:[%s6519_s0 + $0x78] sm:$0xff]  ;;  %v3988_v21 = vld [vmem:[%s6519_s0 + $0x88] sm:$0xf]  ;;  %v3997_v25 = vld [vmem:[%s6520_s1 + $0x24] ss:$8 sm:$0x3] }
   0x8   :  { %2744 = vmatprep.subr.bf16.mxu0 %v4252_v4  ;;  %6569 = vst [vmem:[#allocation3_spill] sm:$0xff] %v4514_v16  ;;  %6570 = vst [vmem:[#allocation4_spill] sm:$0xff] %v4517_v17  ;;  %v3996_v22 = vld [vmem:[%s6520_s1 + $0x17] ss:$8 sm:$0x3]  ;;  %v4547_v27 = vrot.slane %v3997_v25, %v4514_v16  ;;  %v4550_v28 = vrot.slane %v3997_v25, %v4517_v17  ;;  %v4003_v48 = vld [vmem:[%s6519_s0 + $0xc8] sm:$0xff] }
   0x9   :  { %v4535_v23 = vrot.slane %v3996_v22, %v4514_v16  ;;  %v4538_v24 = vrot.slane %v3996_v22, %v4517_v17  ;;  %v697_v26 = vld [vmem:[%s6520_s1] ss:$8 sm:$0x3]  ;;  %v4000_v31 = vld [vmem:[%s6520_s1 + $0x3] ss:$8 sm:$0x3] }
   0xa   :  { %v4553_v29 = vrot.slane %v697_v26, %v4514_v16  ;;  %v4556_v30 = vrot.slane %v697_v26, %v4517_v17  ;;  %v4001_v32 = vld [vmem:[%s6520_s1 + $0x6] ss:$8 sm:$0x3]  ;;  %v4568_v34 = vrot.slane %v4000_v31, %v4514_v16  ;;  %v4571_v35 = vrot.slane %v4000_v31, %v4517_v17  ;;  %v4019_v37 = vld [vmem:[%s6520_s1 + $0x1] ss:$8 sm:$0x3] }
   0xb   :  { %2745 = vmatpush1.bf16.msra.mxu0 %v4254_v5  ;;  %v4565_v33 = vmul.f32 %v3988_v21, %v4538_v24  ;;  %v4574_v36 = vrot.slane %v4001_v32, %v4514_v16  ;;  %v4580_v38 = vmul.f32 %v3988_v21, %v4550_v28  ;;  %v4020_v42 = vld [vmem:[%s6520_s1 + $0x4] ss:$8 sm:$0x3]  ;;  %v4269_v43 = vld [vmem:[%s6518_s2 + $0x70] ss:$8 sps:$4 sm:$0xff]   ;;  %v4602_v50 = vrot.slane %v4001_v32, %v4517_v17 }
   0xc   :  { %2746 = vmatprep.subr.bf16.mxu0 %v4255_v6  ;;  %v710_v39 = vmul.f32 %v3984_v19, %v4556_v30  ;;  %v712_v40 = vmul.f32 %v3986_v20, %v4556_v30  ;;  %v714_v41 = vmul.f32 %v3988_v21, %v4556_v30  ;;  %v747_v45 = vmul.f32 %v3984_v19, %v4571_v35  ;;  %v4270_v49 = vld [vmem:[%s6518_s2 + $0x84] ss:$8 sps:$4 sm:$0xff]   ;;  %v4005_v51 = vld [vmem:[%s6519_s0 + $0xd8] sm:$0xff]  ;;  %v4007_v62 = vld [vmem:[%s6519_s0 + $0xe8] sm:$0xf] }
   0xd   :  { %v749_v46 = vmul.f32 %v3986_v20, %v4571_v35  ;;  %v751_v47 = vmul.f32 %v3988_v21, %v4571_v35  ;;  %v4608_v52 = vrot.slane %v4019_v37, %v4514_v16  ;;  %v4611_v53 = vrot.slane %v4019_v37, %v4517_v17  ;;  %v4272_v0 = vld [vmem:[%s6518_s2 + $0x80] ss:$8 sps:$4 sm:$0xff]   ;;  %v4021_v5 = vld [vmem:[%s6520_s1 + $0x7] ss:$8 sm:$0x3] }
   0xe   :  { %v4614_v54 = vrot.slane %v4020_v42, %v4514_v16  ;;  %v773_v55 = vrot.slane %v747_v45, 1  ;;  %v4617_v58 = vrot.slane %v4020_v42, %v4517_v17  ;;  %v828_v59 = vmul.f32 %v3984_v19, %v4602_v50  ;;  %v4273_v6 = vld [vmem:[%s6518_s2 + $0x94] ss:$8 sps:$4 sm:$0xff]   ;;  %v4275_v22 = vld [vmem:[%s6518_s2 + $0x90] ss:$8 sps:$4 sm:$0xff]  }
   0xf   :  { %2747 = vmatpush1.bf16.msra.mxu0 %v4257_v7  ;;  %v774_v56 = vrot.slane %v749_v46, 1  ;;  %v778_v57 = vrot.slane %v751_v47, 1  ;;  %v830_v60 = vmul.f32 %v3986_v20, %v4602_v50  ;;  %v832_v61 = vmul.f32 %v3988_v21, %v4602_v50  ;;  %v4039_v37 = vld [vmem:[%s6520_s1 + $0x2] ss:$8 sm:$0x3] }
  0x10   :  { %2748 = vmatprep.subr.bf16.mxu0 %v4258_v8  ;;  %v1243_v63 = vmul.f32 %v4003_v48, %v4611_v53  ;;  %v1245_v4 = vmul.f32 %v4005_v51, %v4611_v53  ;;  %v854_v9 = vrot.slane %v828_v59, 2  ;;  %v1284_v19 = vmul.f32 %v4007_v62, %v4617_v58  ;;  %v4278_v45 = vld [vmem:[%s6518_s2 + $0xa0] ss:$8 sps:$4 sm:$0xff]  }
  0x11   :  { %v775_v1 = vsel %vm104_vm0, %v773_v55, %v774_v56  ;;  %v779_v2 = vsel %vm104_vm0, %v774_v56, %v778_v57  ;;  %v807_v3 = vadd.f32 %v778_v57, %v714_v41  ;;  %v4644_v20 = vrot.slane %v4021_v5, %v4514_v16  ;;  %v4040_v56 = vld [vmem:[%s6520_s1 + $0x5] ss:$8 sm:$0x3]  ;;  %v4279_v57 = vld [vmem:[%s6518_s2 + $0xb4] ss:$8 sps:$4 sm:$0xff]  }
  0x12   :  { %v803_v7 = vadd.f32 %v775_v1, %v710_v39  ;;  %v805_v8 = vadd.f32 %v779_v2, %v712_v40  ;;  %v4647_v21 = vrot.slane %v4021_v5, %v4517_v17  ;;  %v4276_v39 = vld [vmem:[%s6518_s2 + $0xa4] ss:$8 sps:$4 sm:$0xff]   ;;  %v1311_v42 = vrot.slane %v1284_v19, 1  ;;  %v4025_v2 = vld [vmem:[%s6519_s0 + $0x138] sm:$0xff] }
  0x13   :  { %2749 = vmatpush1.bf16.msra.mxu0 %v4260_v10  ;;  %v855_v10 = vrot.slane %v830_v60, 2  ;;  %v4683_v5 = vrot.slane %v4039_v37, %v4514_v16  ;;  %vm2890_vm4 = vcmask 1040384   ;;  %vm3020_vm5 = vcmask 130048  }
  0x14   :  { %2750 = vmatprep.subr.bf16.mxu0 %v4261_v11  ;;  %v859_v11 = vrot.slane %v832_v61, 2  ;;  %v1365_v55 = vmul.f32 %v4007_v62, %v4647_v21  ;;  %vm3375_vm6 = vcmask 1041408   ;;  %vm3728_vm7 = vcmask 1041409  }
  0x15   :  { %vm3730_vm8 = vcmask 1042434   ;;  %vm3732_vm9 = vcmask 1043459   ;;  %vm3734_vm10 = vcmask 1044484   ;;  %vm3736_vm11 = vcmask 1045509  }
  0x16   :  { %v860_v25 = vsel %vm178_vm1, %v855_v10, %v859_v11  ;;  %v888_v31 = vadd.f32 %v859_v11, %v807_v3  ;;  %v1392_v1 = vrot.slane %v1365_v55, 2  ;;  %v4694_v11 = vrot.slane %v4040_v56, %v4517_v17  ;;  %v4284_v55 = vld [vmem:[%s6518_s2 + $0xc0] ss:$8 sps:$4 sm:$0xff]  }
  0x17   :  { %2751 = vmatpush1.bf16.msra.mxu0 %v4263_v13  ;;  %v1247_v13 = vmul.f32 %v4007_v62, %v4611_v53  ;;  %v886_v40 = vadd.f32 %v860_v25, %v805_v8  ;;  %vm3738_vm12 = vcmask 1046534   ;;  %vm3740_vm13 = vcmask 1047559  }
  0x18   :  { %2752 = vmatprep.subr.bf16.mxu0 %v4264_v14  ;;  %v1280_v14 = vmul.f32 %v4003_v48, %v4617_v58 }
  0x19   :  { %v1259_v47 = vadd.f32 %v1247_v13, %v888_v31  ;;  %v1257_v59 = vadd.f32 %v1245_v4, %v886_v40  ;;  %v4027_v4 = vld [vmem:[%s6519_s0 + $0x148] sm:$0xf]  ;;  %v4041_v13 = vld [vmem:[%s6520_s1 + $0x10] ss:$8 sm:$0x3]  ;;  %v1815_v31 = vmul.f32 %v4025_v2, %v4694_v11 }
  0x1a   :  { %v1306_v32 = vrot.slane %v1280_v14, 1 }
  0x1b   :  { %2753 = vmatpush1.bf16.msra.mxu0 %v4266_v15  ;;  %v1282_v15 = vmul.f32 %v4005_v51, %v4617_v58 }
  0x1c   :  { %2754 = vmatprep.subr.bf16.mxu0 %v4267_v18  ;;  %v856_v18 = vsel %vm178_vm1, %v854_v9, %v855_v10 }
  0x1d   :  { %v884_v26 = vadd.f32 %v856_v18, %v803_v7  ;;  %v1307_v41 = vrot.slane %v1282_v15, 1  ;;  %v4689_v7 = vrot.slane %v4040_v56, %v4514_v16 }
  0x1f   :  { %2755 = vmatpush1.bf16.msra.mxu0 %v4269_v43  ;;  %v1361_v43 = vmul.f32 %v4003_v48, %v4647_v21  ;;  %v1255_v46 = vadd.f32 %v1243_v63, %v884_v26  ;;  %v1308_v48 = vsel %vm104_vm0, %v1306_v32, %v1307_v41  ;;  %v1312_v60 = vsel %vm104_vm0, %v1307_v41, %v1311_v42 }
  0x20   :  { %2756 = vmatprep.subr.bf16.mxu0 %v4270_v49  ;;  %v1363_v49 = vmul.f32 %v4005_v51, %v4647_v21  ;;  %v4023_v51 = vld [vmem:[%s6519_s0 + $0x128] sm:$0xff]  ;;  %v1340_v63 = vadd.f32 %v1311_v42, %v1259_v47  ;;  %v1338_v3 = vadd.f32 %v1312_v60, %v1257_v59  ;;  %v1817_v32 = vmul.f32 %v4027_v4, %v4694_v11  ;;  %v4732_v60 = vld [vmem:[%s6520_s1 + $0x31] ss:$8 sm:$0x3] }
  0x21   :  { %v1387_v61 = vrot.slane %v1361_v43, 2  ;;  %v1336_v62 = vadd.f32 %v1308_v48, %v1255_v46  ;;  %v1813_v26 = vmul.f32 %v4023_v51, %v4694_v11  ;;  %v4712_v41 = vrot.slane %v4041_v13, %v4514_v16 }
  0x22   :  { %v1421_v10 = vadd.f32 %v1392_v1, %v1340_v63  ;;  %v4715_v42 = vrot.slane %v4041_v13, %v4517_v17  ;;  %v1840_v46 = vrot.slane %v1815_v31, 1  ;;  %v1844_v47 = vrot.slane %v1817_v32, 1  ;;  %v4287_v31 = vld [vmem:[%s6518_s2 + $0xd0] ss:$8 sps:$4 sm:$0xff]  }
  0x23   :  { %2757 = vmatpush1.bf16.msra.mxu0 %v4272_v0  ;;  %v1388_v0 = vrot.slane %v1363_v49, 2  ;;  %v3987_v49 = vld [vmem:[%s6519_s0 + $0x80] sm:$0xf] }
  0x24   :  { %2758 = vmatprep.subr.bf16.mxu0 %v4273_v6  ;;  %v4686_v6 = vrot.slane %v4039_v37, %v4517_v17  ;;  %v4282_v37 = vld [vmem:[%s6518_s2 + $0xc4] ss:$8 sps:$4 sm:$0xff]   ;;  %v1894_v56 = vmul.f32 %v4023_v51, %v4715_v42  ;;  %v1898_v59 = vmul.f32 %v4027_v4, %v4715_v42  ;;  %v4727_v48 = vmul.f32 %v3987_v49, %v4535_v23 }
  0x25   :  { %v1389_v8 = vsel %vm178_vm1, %v1387_v61, %v1388_v0  ;;  %v1393_v9 = vsel %vm178_vm1, %v1388_v0, %v1392_v1  ;;  %v4742_v0 = vld [vmem:[%s6520_s1 + $0x36] ss:$8 sm:$0x3] }
  0x26   :  { %v1417_v14 = vadd.f32 %v1389_v8, %v1336_v62  ;;  %v1419_v15 = vadd.f32 %v1393_v9, %v1338_v3  ;;  %v1776_v18 = vmul.f32 %v4023_v51, %v4686_v6  ;;  %v1778_v19 = vmul.f32 %v4025_v2, %v4686_v6  ;;  %v4285_v1 = vld [vmem:[%s6518_s2 + $0xd4] ss:$8 sps:$4 sm:$0xff]   ;;  %v3983_v9 = vld [vmem:[%s6519_s0 + $0x60] sm:$0xff] }
  0x27   :  { %2759 = vmatpush1.bf16.msra.mxu0 %v4275_v22  ;;  %v4281_v22 = vld [vmem:[%s6518_s2 + $0xb0] ss:$8 sps:$4 sm:$0xff]   ;;  %v1780_v25 = vmul.f32 %v4027_v4, %v4686_v6  ;;  %v1845_v62 = vsel %vm104_vm0, %v1840_v46, %v1844_v47  ;;  %v4737_v51 = vmul.f32 %v3987_v49, %v4547_v27  ;;  %v1920_v4 = vrot.slane %v1894_v56, 2  ;;  %v4784_v56 = vld [vmem:[%s6520_s1 + $0x20] ss:$8 sm:$0x3] }
  0x28   :  { %2760 = vmatprep.subr.bf16.mxu0 %v4276_v39  ;;  %v1788_v39 = vadd.f32 %v1776_v18, %v1417_v14  ;;  %v1790_v40 = vadd.f32 %v1778_v19, %v1419_v15  ;;  %v1925_v13 = vrot.slane %v1898_v59, 2  ;;  %v4757_v18 = vrot.slane %v4732_v60, %v4514_v16 }
  0x29   :  { %v1792_v43 = vadd.f32 %v1780_v25, %v1421_v10  ;;  %6571 = vst [vmem:[#allocation5_spill] sm:$0xff] %v4737_v51  ;;  %v3985_v10 = vld [vmem:[%s6519_s0 + $0x70] sm:$0xff]  ;;  %v709_v25 = vmul.f32 %v3983_v9, %v4553_v29 }
  0x2a   :  { %v1871_v3 = vadd.f32 %v1845_v62, %v1790_v40  ;;  %v4771_v40 = vmul.f32 %v3987_v49, %v4757_v18  ;;  %v748_v62 = vmul.f32 %v3985_v10, %v4568_v34 }
  0x2b   :  { %2761 = vmatpush1.bf16.msra.mxu0 %v4278_v45  ;;  %v1839_v45 = vrot.slane %v1813_v26, 1  ;;  %v1873_v63 = vadd.f32 %v1844_v47, %v1792_v43  ;;  %v711_v26 = vmul.f32 %v3985_v10, %v4553_v29  ;;  %v4288_v43 = vld [vmem:[%s6518_s2 + $0xe4] ss:$8 sps:$4 sm:$0xff]   ;;  %v713_v47 = vmul.f32 %v3987_v49, %v4553_v29 }
  0x2c   :  { %2762 = vmatprep.subr.bf16.mxu0 %v4279_v57  ;;  %v1896_v57 = vmul.f32 %v4025_v2, %v4715_v42  ;;  %6572 = vst [vmem:[#allocation6_spill] sm:$0xff] %v4771_v40 }
  0x2d   :  { %v1841_v61 = vsel %vm104_vm0, %v1839_v45, %v1840_v46 }
  0x2e   :  { %v1869_v2 = vadd.f32 %v1841_v61, %v1788_v39  ;;  %v1921_v8 = vrot.slane %v1896_v57, 2  ;;  %v1954_v39 = vadd.f32 %v1925_v13, %v1873_v63 }
  0x2f   :  { %2763 = vmatpush1.bf16.msra.mxu0 %v4281_v22  ;;  %v4762_v22 = vrot.slane %v4742_v0, %v4514_v16 }
  0x30   :  { %2764 = vmatprep.subr.bf16.mxu0 %v4282_v37  ;;  %v1922_v19 = vsel %vm178_vm1, %v1920_v4, %v1921_v8  ;;  %v1926_v32 = vsel %vm178_vm1, %v1921_v8, %v1925_v13  ;;  %v2315_v59 = vrot.slane %v1954_v39, 1  ;;  %v4290_v4 = vld [vmem:[%s6518_s2 + $0xe0] ss:$8 sps:$4 sm:$0xff]   ;;  %v771_v8 = vrot.slane %v748_v62, 1 }
  0x31   :  { %v1950_v37 = vadd.f32 %v1922_v19, %v1869_v2  ;;  %v1952_v45 = vadd.f32 %v1926_v32, %v1871_v3  ;;  %v4777_v46 = vmul.f32 %v3987_v49, %v4762_v22  ;;  %v827_v3 = vmul.f32 %v3983_v9, %v4574_v36 }
  0x32   :  { %v829_v13 = vmul.f32 %v3985_v10, %v4574_v36  ;;  %v831_v19 = vmul.f32 %v3987_v49, %v4574_v36  ;;  %v4797_v32 = vrot.slane %v4784_v56, %v4514_v16  ;;  %v4006_v10 = vld [vmem:[%s6519_s0 + $0xe0] sm:$0xf] }
  0x33   :  { %2765 = vmatpush1.bf16.msra.mxu0 %v4284_v55  ;;  %v746_v55 = vmul.f32 %v3983_v9, %v4568_v34  ;;  %v2310_v57 = vrot.slane %v1950_v37, 1  ;;  %v2311_v63 = vrot.slane %v1952_v45, 1  ;;  %v4291_v37 = vld [vmem:[%s6518_s2 + $0xf4] ss:$8 sps:$4 sm:$0xff]   ;;  %v851_v45 = vrot.slane %v827_v3, 2 }
  0x34   :  { %2766 = vmatprep.subr.bf16.mxu0 %v4285_v1  ;;  %v750_v1 = vmul.f32 %v3987_v49, %v4568_v34  ;;  %6573 = vst [vmem:[#allocation7_spill] sm:$0xff] %v4797_v32  ;;  %v852_v62 = vrot.slane %v829_v13, 2  ;;  %v857_v61 = vrot.slane %v831_v19, 2  ;;  %v4293_v3 = vld [vmem:[%s6518_s2 + $0xf0] ss:$8 sps:$4 sm:$0xff]  }
  0x35   :  { %v770_v2 = vrot.slane %v746_v55, 1  ;;  %v2312_v9 = vsel %vm104_vm0, %v2310_v57, %v2311_v63  ;;  %v4296_v19 = vld [vmem:[%s6518_s2 + $0x104] ss:$8 sps:$4 sm:$0xff]  }
  0x36   :  { %v776_v39 = vrot.slane %v750_v1, 1  ;;  %v4004_v1 = vld [vmem:[%s6519_s0 + $0xd0] sm:$0xff] }
  0x37   :  { %2767 = vmatpush1.bf16.msra.mxu0 %v4287_v31  ;;  %v2316_v31 = vsel %vm104_vm0, %v2311_v63, %v2315_v59  ;;  %v772_v55 = vsel %vm104_vm0, %v770_v2, %v771_v8  ;;  %v4002_v63 = vld [vmem:[%s6519_s0 + $0xc0] sm:$0xff]  ;;  %v4821_v2 = vmul.f32 %v4006_v10, %v4797_v32  ;;  %v1362_v12 = vmul.f32 %v4004_v1, %v4644_v20 }
  0x38   :  { %2768 = vmatprep.subr.bf16.mxu0 %v4288_v43  ;;  %v2336_v49 = vpack.c.bf16 %v2316_v31, %v2312_v9  ;;  %v4811_v43 = vld [vmem:[%s6520_s1 + $0x25] ss:$8 sm:$0x3]  ;;  %v777_v57 = vsel %vm104_vm0, %v771_v8, %v776_v39  ;;  %v802_v15 = vadd.f32 %v772_v55, %v709_v25  ;;  %v806_v59 = vadd.f32 %v776_v39, %v713_v47 }
  0x39   :  { %6574 = vst [vmem:[#allocation8_spill] sm:$0xff] %v4821_v2  ;;  %v804_v8 = vadd.f32 %v777_v57, %v711_v26  ;;  %v853_v25 = vsel %vm178_vm1, %v851_v45, %v852_v62  ;;  %v858_v47 = vsel %vm178_vm1, %v852_v62, %v857_v61  ;;  %v4835_v39 = vrot.slane %v4811_v43, %v4514_v16  ;;  %v4026_v2 = vld [vmem:[%s6519_s0 + $0x140] sm:$0xf] }
  0x3a   :  { %2772 = vmatprep.mubr.bf16.mxu0 %v2336_v49  ;;  %v883_v9 = vadd.f32 %v853_v25, %v802_v15  ;;  %v887_v31 = vadd.f32 %v857_v61, %v806_v59  ;;  %v1242_v45 = vmul.f32 %v4002_v63, %v4608_v52  ;;  %v1244_v49 = vmul.f32 %v4004_v1, %v4608_v52  ;;  %v4024_v59 = vld [vmem:[%s6519_s0 + $0x130] sm:$0xff] }
  0x3b   :  { %2769 = vmatpush1.bf16.msra.mxu0 %v4290_v4  ;;  %6575 = vst [vmem:[#allocation9_spill] sm:$0xff] %v4835_v39  ;;  %v885_v26 = vadd.f32 %v858_v47, %v804_v8  ;;  %v1246_v55 = vmul.f32 %v4006_v10, %v4608_v52  ;;  %v4844_v15 = vmul.f32 %v4006_v10, %v4835_v39 }
  0x3c   :  { %2770 = vmatprep.subr.bf16.mxu0 %v4291_v37  ;;  %v4022_v37 = vld [vmem:[%s6519_s0 + $0x120] sm:$0xff]  ;;  %v1279_v61 = vmul.f32 %v4002_v63, %v4614_v54  ;;  %v1281_v62 = vmul.f32 %v4004_v1, %v4614_v54  ;;  %v1283_v57 = vmul.f32 %v4006_v10, %v4614_v54  ;;  %v1254_v8 = vadd.f32 %v1242_v45, %v883_v9 }
  0x3d   :  { %6576 = vst [vmem:[#allocation10_spill] sm:$0xff] %v4844_v15  ;;  %v1256_v25 = vadd.f32 %v1244_v49, %v885_v26  ;;  %v1258_v47 = vadd.f32 %v1246_v55, %v887_v31  ;;  %v1360_v4 = vmul.f32 %v4002_v63, %v4644_v20  ;;  %v1364_v15 = vmul.f32 %v4006_v10, %v4644_v20 }
  0x3e   :  { %v1303_v14 = vrot.slane %v1279_v61, 1  ;;  %v1304_v13 = vrot.slane %v1281_v62, 1  ;;  %v1309_v44 = vrot.slane %v1283_v57, 1  ;;  %v1777_v9 = vmul.f32 %v4024_v59, %v4683_v5 }
  0x3f   :  { %2771 = vmatpush1.bf16.msra.mxu0 %v4293_v3  ;;  %v1384_v39 = vrot.slane %v1360_v4, 2  ;;  %v1775_v3 = vmul.f32 %v4022_v37, %v4683_v5  ;;  %v1385_v26 = vrot.slane %v1362_v12, 2  ;;  %v1390_v1 = vrot.slane %v1364_v15, 2 }
  0x40   :  { %2793 = vmatprep.subr.bf16.mxu0 %v4296_v19  ;;  %v1305_v31 = vsel %vm104_vm0, %v1303_v14, %v1304_v13  ;;  %v1310_v63 = vsel %vm104_vm0, %v1304_v13, %v1309_v44  ;;  %v1339_v19 = vadd.f32 %v1309_v44, %v1258_v47  ;;  %v1779_v55 = vmul.f32 %v4026_v2, %v4683_v5 }
  0x41   :  { %v1335_v45 = vadd.f32 %v1305_v31, %v1254_v8  ;;  %v1337_v49 = vadd.f32 %v1310_v63, %v1256_v25  ;;  %v1386_v61 = vsel %vm178_vm1, %v1384_v39, %v1385_v26  ;;  %v1812_v10 = vmul.f32 %v4022_v37, %v4689_v7 }
  0x42   :  { %v1814_v4 = vmul.f32 %v4024_v59, %v4689_v7  ;;  %v1816_v62 = vmul.f32 %v4026_v2, %v4689_v7  ;;  %v1391_v57 = vsel %vm178_vm1, %v1385_v26, %v1390_v1  ;;  %v1420_v32 = vadd.f32 %v1390_v1, %v1339_v19 }
  0x43   :  { %v1416_v14 = vadd.f32 %v1386_v61, %v1335_v45  ;;  %v1893_v44 = vmul.f32 %v4022_v37, %v4712_v41  ;;  %v1418_v12 = vadd.f32 %v1391_v57, %v1337_v49  ;;  %v1836_v13 = vrot.slane %v1812_v10, 1  ;;  %v3990_v49 = vld [vmem:[%s6519_s0 + $0x98] sm:$0xff] }
  0x44   :  { %v1837_v8 = vrot.slane %v1814_v4, 1  ;;  %v1842_v15 = vrot.slane %v1816_v62, 1  ;;  %v1791_v47 = vadd.f32 %v1779_v55, %v1420_v32  ;;  %v1895_v39 = vmul.f32 %v4024_v59, %v4712_v41  ;;  %v3992_v32 = vld [vmem:[%s6519_s0 + $0xa8] sm:$0xff] }
  0x45   :  { %v1787_v25 = vadd.f32 %v1775_v3, %v1416_v14  ;;  %v1897_v31 = vmul.f32 %v4026_v2, %v4712_v41  ;;  %v1789_v63 = vadd.f32 %v1777_v9, %v1418_v12  ;;  %v1917_v26 = vrot.slane %v1893_v44, 2  ;;  %v3994_v2 = vld [vmem:[%s6519_s0 + $0xb8] sm:$0xf] }
  0x46   :  { %v1838_v40 = vsel %vm104_vm0, %v1836_v13, %v1837_v8  ;;  %v1843_v51 = vsel %vm104_vm0, %v1837_v8, %v1842_v15  ;;  %v1872_v19 = vadd.f32 %v1842_v15, %v1791_v47  ;;  %v1918_v1 = vrot.slane %v1895_v39, 2 }
  0x47   :  { %v1868_v45 = vadd.f32 %v1838_v40, %v1787_v25  ;;  %v1923_v37 = vrot.slane %v1897_v31, 2  ;;  %v1870_v59 = vadd.f32 %v1843_v51, %v1789_v63  ;;  %v716_v3 = vmul.f32 %v3990_v49, %v4556_v30  ;;  %v4009_v51 = vld [vmem:[%s6519_s0 + $0xf8] sm:$0xff] }
  0x48   :  { %v718_v40 = vmul.f32 %v3992_v32, %v4556_v30  ;;  %v720_v9 = vmul.f32 %v3994_v2, %v4556_v30  ;;  %v1919_v55 = vsel %vm178_vm1, %v1917_v26, %v1918_v1  ;;  %v753_v4 = vmul.f32 %v3990_v49, %v4571_v35 }
  0x49   :  { %v1924_v61 = vsel %vm178_vm1, %v1918_v1, %v1923_v37  ;;  %v1953_v10 = vadd.f32 %v1923_v37, %v1872_v19  ;;  %v1949_v62 = vadd.f32 %v1919_v55, %v1868_v45  ;;  %v755_v14 = vmul.f32 %v3992_v32, %v4571_v35  ;;  %v4013_v45 = vld [vmem:[%s6519_s0 + $0x118] sm:$0xf]  ;;  %v4294_v1 = vld [vmem:[%s6518_s2 + $0x100] ss:$8 sps:$4 sm:$0xff]  }
  0x4a   :  { %v1951_v57 = vadd.f32 %v1924_v61, %v1870_v59  ;;  %v757_v44 = vmul.f32 %v3994_v2, %v4571_v35  ;;  %v783_v13 = vrot.slane %v753_v4, 1  ;;  %v834_v30 = vmul.f32 %v3990_v49, %v4602_v50  ;;  %v4011_v35 = vld [vmem:[%s6519_s0 + $0x108] sm:$0xff]  ;;  %v4299_v59 = vld [vmem:[%s6518_s2 + $0x114] ss:$8 sps:$4 sm:$0xff]  }
  0x4b   :  { %v2313_v12 = vrot.slane %v1953_v10, 1  ;;  %v836_v8 = vmul.f32 %v3992_v32, %v4602_v50  ;;  %v2307_v15 = vrot.slane %v1949_v62, 1  ;;  %v784_v47 = vrot.slane %v755_v14, 1 }
  0x4c   :  { %v2308_v25 = vrot.slane %v1951_v57, 1  ;;  %v788_v39 = vrot.slane %v757_v44, 1  ;;  %v838_v31 = vmul.f32 %v3994_v2, %v4602_v50  ;;  %v864_v63 = vrot.slane %v834_v30, 2 }
  0x4d   :  { %v865_v26 = vrot.slane %v836_v8, 2  ;;  %v1249_v19 = vmul.f32 %v4009_v51, %v4611_v53  ;;  %v785_v49 = vsel %vm104_vm0, %v783_v13, %v784_v47  ;;  %v1251_v57 = vmul.f32 %v4011_v35, %v4611_v53 }
  0x4e   :  { %v2309_v37 = vsel %vm104_vm0, %v2307_v15, %v2308_v25  ;;  %v2314_v50 = vsel %vm104_vm0, %v2308_v25, %v2313_v12  ;;  %v789_v32 = vsel %vm104_vm0, %v784_v47, %v788_v39  ;;  %v809_v55 = vadd.f32 %v785_v49, %v716_v3  ;;  %v4297_v3 = vld [vmem:[%s6518_s2 + $0x110] ss:$8 sps:$4 sm:$0xff]  }
  0x4f   :  { %v2335_v2 = vpack.c.bf16 %v2314_v50, %v2309_v37  ;;  %v811_v61 = vadd.f32 %v789_v32, %v718_v40  ;;  %v813_v10 = vadd.f32 %v788_v39, %v720_v9  ;;  %v866_v4 = vsel %vm178_vm1, %v864_v63, %v865_v26  ;;  %v4029_v15 = vld [vmem:[%s6519_s0 + $0x158] sm:$0xff] }
  0x50   :  { %v869_v62 = vrot.slane %v838_v31, 2  ;;  %v1253_v14 = vmul.f32 %v4013_v45, %v4611_v53  ;;  %v890_v44 = vadd.f32 %v866_v4, %v809_v55  ;;  %v1286_v12 = vmul.f32 %v4009_v51, %v4617_v58  ;;  %v4033_v37 = vld [vmem:[%s6519_s0 + $0x178] sm:$0xf] }
  0x51   :  { %2773 = vmatmul.mubr.bf16.vlgmr.msra.gmra.mrb[0].mxu0 %v2335_v2  ;;  %v1288_v13 = vmul.f32 %v4011_v35, %v4617_v58  ;;  %v1290_v30 = vmul.f32 %v4013_v45, %v4617_v58  ;;  %v1367_v8 = vmul.f32 %v4009_v51, %v4647_v21  ;;  %v1369_v53 = vmul.f32 %v4011_v35, %v4647_v21  ;;  %v4302_v58 = vld [vmem:[%s6518_s2 + $0x124] ss:$8 sps:$4 sm:$0xff]  }
  0x52   :  { %2794 = vmatpush1.bf16.msra.mxu0 %v4294_v1  ;;  %v870_v40 = vsel %vm178_vm1, %v865_v26, %v869_v62  ;;  %v894_v9 = vadd.f32 %v869_v62, %v813_v10  ;;  %v1261_v47 = vadd.f32 %v1249_v19, %v890_v44  ;;  %v1316_v39 = vrot.slane %v1286_v12, 1  ;;  %v4031_v35 = vld [vmem:[%s6519_s0 + $0x168] sm:$0xff] }
  0x53   :  { %2795 = vmatprep.subr.bf16.mxu0 %v4299_v59  ;;  %v892_v25 = vadd.f32 %v870_v40, %v811_v61  ;;  %v1317_v31 = vrot.slane %v1288_v13, 1  ;;  %v1321_v26 = vrot.slane %v1290_v30, 1  ;;  %v1371_v1 = vmul.f32 %v4013_v45, %v4647_v21  ;;  %v4300_v21 = vld [vmem:[%s6518_s2 + $0x120] ss:$8 sps:$4 sm:$0xff]   ;;  %v4305_v61 = vld [vmem:[%s6518_s2 + $0x134] ss:$8 sps:$4 sm:$0xff]  }
  0x54   :  { %v1265_v63 = vadd.f32 %v1253_v14, %v894_v9  ;;  %v1397_v51 = vrot.slane %v1367_v8, 2  ;;  %v1398_v32 = vrot.slane %v1369_v53, 2  ;;  %v1782_v19 = vmul.f32 %v4029_v15, %v4686_v6  ;;  %v4303_v8 = vld [vmem:[%s6518_s2 + $0x130] ss:$8 sps:$4 sm:$0xff]  }
  0x55   :  { %v1263_v50 = vadd.f32 %v1251_v57, %v892_v25  ;;  %v1318_v49 = vsel %vm104_vm0, %v1316_v39, %v1317_v31  ;;  %v1322_v45 = vsel %vm104_vm0, %v1317_v31, %v1321_v26  ;;  %v1402_v55 = vrot.slane %v1371_v1, 2 }
  0x56   :  { %2796 = vmatpush1.bf16.msra.mxu0 %v4297_v3  ;;  %v1342_v2 = vadd.f32 %v1318_v49, %v1261_v47  ;;  %v1346_v59 = vadd.f32 %v1321_v26, %v1265_v63  ;;  %v1399_v4 = vsel %vm178_vm1, %v1397_v51, %v1398_v32  ;;  %v1784_v62 = vmul.f32 %v4031_v35, %v4686_v6  ;;  %v4308_v47 = vld [vmem:[%s6518_s2 + $0x144] ss:$8 sps:$4 sm:$0xff]   ;;  %v3989_v63 = vld [vmem:[%s6519_s0 + $0x90] sm:$0xff] }
  0x57   :  { %2797 = vmatprep.subr.bf16.mxu0 %v4302_v58  ;;  %v1344_v10 = vadd.f32 %v1322_v45, %v1263_v50  ;;  %v1786_v57 = vmul.f32 %v4033_v37, %v4686_v6  ;;  %v1403_v14 = vsel %vm178_vm1, %v1398_v32, %v1402_v55  ;;  %v1819_v13 = vmul.f32 %v4029_v15, %v4694_v11  ;;  %v3991_v26 = vld [vmem:[%s6519_s0 + $0xa0] sm:$0xff] }
  0x58   :  { %v1423_v44 = vadd.f32 %v1399_v4, %v1342_v2  ;;  %v1427_v12 = vadd.f32 %v1402_v55, %v1346_v59  ;;  %v1821_v3 = vmul.f32 %v4031_v35, %v4694_v11  ;;  %v1823_v40 = vmul.f32 %v4033_v37, %v4694_v11 }
  0x59   :  { %v1425_v30 = vadd.f32 %v1403_v14, %v1344_v10  ;;  %v1900_v9 = vmul.f32 %v4029_v15, %v4715_v42  ;;  %v1849_v58 = vrot.slane %v1819_v13, 1  ;;  %v1902_v25 = vmul.f32 %v4031_v35, %v4715_v42 }
  0x5a   :  { %2798 = vmatpush1.bf16.msra.mxu0 %v4300_v21  ;;  %v1794_v53 = vadd.f32 %v1782_v19, %v1423_v44  ;;  %v1798_v6 = vadd.f32 %v1786_v57, %v1427_v12  ;;  %v1850_v31 = vrot.slane %v1821_v3, 1  ;;  %v1854_v11 = vrot.slane %v1823_v40, 1  ;;  %v4306_v21 = vld [vmem:[%s6518_s2 + $0x140] ss:$8 sps:$4 sm:$0xff]  }
  0x5b   :  { %2799 = vmatprep.subr.bf16.mxu0 %v4305_v61  ;;  %v1796_v39 = vadd.f32 %v1784_v62, %v1425_v30  ;;  %v1904_v15 = vmul.f32 %v4033_v37, %v4715_v42  ;;  %v1930_v1 = vrot.slane %v1900_v9, 2  ;;  %v1931_v51 = vrot.slane %v1902_v25, 2  ;;  %v3993_v37 = vld [vmem:[%s6519_s0 + $0xb0] sm:$0xf]  ;;  %v4311_v61 = vld [vmem:[%s6518_s2 + $0x154] ss:$8 sps:$4 sm:$0xff]  }
  0x5c   :  { %v715_v35 = vmul.f32 %v3989_v63, %v4553_v29  ;;  %v717_v50 = vmul.f32 %v3991_v26, %v4553_v29  ;;  %v1851_v49 = vsel %vm104_vm0, %v1849_v58, %v1850_v31  ;;  %v1855_v32 = vsel %vm104_vm0, %v1850_v31, %v1854_v11  ;;  %v4309_v30 = vld [vmem:[%s6518_s2 + $0x150] ss:$8 sps:$4 sm:$0xff]  }
  0x5d   :  { %v1879_v19 = vadd.f32 %v1854_v11, %v1798_v6  ;;  %v1935_v42 = vrot.slane %v1904_v15, 2  ;;  %v1875_v45 = vadd.f32 %v1851_v49, %v1794_v53  ;;  %v1877_v2 = vadd.f32 %v1855_v32, %v1796_v39  ;;  %v4010_v11 = vld [vmem:[%s6519_s0 + $0x100] sm:$0xff]  ;;  %v4012_v15 = vld [vmem:[%s6519_s0 + $0x110] sm:$0xf] }
  0x5e   :  { %2800 = vmatpush1.bf16.msra.mxu0 %v4303_v8  ;;  %v1932_v59 = vsel %vm178_vm1, %v1930_v1, %v1931_v51  ;;  %v719_v55 = vmul.f32 %v3993_v37, %v4553_v29  ;;  %v752_v62 = vmul.f32 %v3989_v63, %v4568_v34  ;;  %v754_v57 = vmul.f32 %v3991_v26, %v4568_v34  ;;  %v4008_v29 = vld [vmem:[%s6519_s0 + $0xf0] sm:$0xff] }
  0x5f   :  { %2801 = vmatprep.subr.bf16.mxu0 %v4308_v47  ;;  %v1936_v10 = vsel %vm178_vm1, %v1931_v51, %v1935_v42  ;;  %v1960_v4 = vadd.f32 %v1935_v42, %v1879_v19  ;;  %v1956_v14 = vadd.f32 %v1932_v59, %v1875_v45  ;;  %v756_v12 = vmul.f32 %v3993_v37, %v4568_v34  ;;  %v4314_v34 = vld [vmem:[%s6518_s2 + $0x164] ss:$8 sps:$4 sm:$0xff]  }
  0x60   :  { %v1958_v44 = vadd.f32 %v1936_v10, %v1877_v2  ;;  %v833_v13 = vmul.f32 %v3989_v63, %v4574_v36  ;;  %v780_v40 = vrot.slane %v752_v62, 1  ;;  %v781_v9 = vrot.slane %v754_v57, 1  ;;  %v4055_v10 = vld [vmem:[%s6520_s1 + $0x22] ss:$8 sm:$0x3] }
  0x61   :  { %v2325_v3 = vrot.slane %v1960_v4, 1  ;;  %v835_v8 = vmul.f32 %v3991_v26, %v4574_v36  ;;  %v2320_v53 = vrot.slane %v1956_v14, 1  ;;  %v786_v58 = vrot.slane %v756_v12, 1  ;;  %v4028_v14 = vld [vmem:[%s6519_s0 + $0x150] sm:$0xff] }
  0x62   :  { %2802 = vmatpush1.bf16.msra.mxu0 %v4306_v21  ;;  %v2321_v6 = vrot.slane %v1958_v44, 1  ;;  %v837_v25 = vmul.f32 %v3993_v37, %v4574_v36  ;;  %v782_v47 = vsel %vm104_vm0, %v780_v40, %v781_v9  ;;  %v861_v39 = vrot.slane %v833_v13, 2  ;;  %v4312_v37 = vld [vmem:[%s6518_s2 + $0x160] ss:$8 sps:$4 sm:$0xff]  }
  0x63   :  { %2803 = vmatprep.subr.bf16.mxu0 %v4311_v61  ;;  %v862_v31 = vrot.slane %v835_v8, 2  ;;  %v1248_v63 = vmul.f32 %v4008_v29, %v4608_v52  ;;  %v787_v36 = vsel %vm104_vm0, %v781_v9, %v786_v58  ;;  %v808_v51 = vadd.f32 %v782_v47, %v715_v35  ;;  %v4317_v35 = vld [vmem:[%s6518_s2 + $0x174] ss:$8 sps:$4 sm:$0xff]  }
  0x64   :  { %v2322_v26 = vsel %vm104_vm0, %v2320_v53, %v2321_v6  ;;  %v2326_v1 = vsel %vm104_vm0, %v2321_v6, %v2325_v3  ;;  %v810_v32 = vadd.f32 %v787_v36, %v717_v50  ;;  %v812_v19 = vadd.f32 %v786_v58, %v719_v55  ;;  %v4320_v53 = vld [vmem:[%s6518_s2 + $0x184] ss:$8 sps:$4 sm:$0xff]   ;;  %v4318_v36 = vld [vmem:[%s6518_s2 + $0x180] ss:$8 sps:$4 sm:$0xff]  }
  0x65   :  { %v2340_v49 = vpack.c.bf16 %v2326_v1, %v2322_v26  ;;  %v863_v42 = vsel %vm178_vm1, %v861_v39, %v862_v31  ;;  %v867_v21 = vrot.slane %v837_v25, 2  ;;  %v1250_v2 = vmul.f32 %v4010_v11, %v4608_v52 }
  0x66   :  { %2804 = vmatpush1.bf16.msra.mxu0 %v4309_v30  ;;  %v889_v45 = vadd.f32 %v863_v42, %v808_v51  ;;  %v1252_v59 = vmul.f32 %v4012_v15, %v4608_v52  ;;  %v1285_v50 = vmul.f32 %v4008_v29, %v4614_v54  ;;  %v1287_v55 = vmul.f32 %v4010_v11, %v4614_v54  ;;  %v4323_v42 = vld [vmem:[%s6518_s2 + $0x194] ss:$8 sps:$4 sm:$0xff]  }
  0x67   :  { %2805 = vmatprep.subr.bf16.mxu0 %v4314_v34  ;;  %2782 = vmatprep.mubr.bf16.mxu0 %v2340_v49  ;;  %v1289_v61 = vmul.f32 %v4012_v15, %v4614_v54  ;;  %v868_v4 = vsel %vm178_vm1, %v862_v31, %v867_v21  ;;  %v893_v62 = vadd.f32 %v867_v21, %v812_v19  ;;  %v4315_v54 = vld [vmem:[%s6518_s2 + $0x170] ss:$8 sps:$4 sm:$0xff]  }
  0x68   :  { %v1260_v57 = vadd.f32 %v1248_v63, %v889_v45  ;;  %v1366_v52 = vmul.f32 %v4008_v29, %v4644_v20  ;;  %v891_v44 = vadd.f32 %v868_v4, %v810_v32  ;;  %v1313_v12 = vrot.slane %v1285_v50, 1  ;;  %v4030_v29 = vld [vmem:[%s6519_s0 + $0x160] sm:$0xff]  ;;  %v4032_v34 = vld [vmem:[%s6519_s0 + $0x170] sm:$0xf] }
  0x69   :  { %v1314_v13 = vrot.slane %v1287_v55, 1  ;;  %v1319_v30 = vrot.slane %v1289_v61, 1  ;;  %v1264_v3 = vadd.f32 %v1252_v59, %v893_v62  ;;  %v1368_v40 = vmul.f32 %v4010_v11, %v4644_v20 }
  0x6a   :  { %2806 = vmatpush1.bf16.msra.mxu0 %v4312_v37  ;;  %v1370_v9 = vmul.f32 %v4012_v15, %v4644_v20  ;;  %v1394_v8 = vrot.slane %v1366_v52, 2  ;;  %v1262_v6 = vadd.f32 %v1250_v2, %v891_v44  ;;  %v1781_v20 = vmul.f32 %v4028_v14, %v4683_v5  ;;  %v3978_v2 = vld [vmem:[%s6520_s1 + $0x11] ss:$8 sm:$0x3] }
  0x6b   :  { %2807 = vmatprep.subr.bf16.mxu0 %v4317_v35  ;;  %v1315_v58 = vsel %vm104_vm0, %v1313_v12, %v1314_v13  ;;  %v1320_v25 = vsel %vm104_vm0, %v1314_v13, %v1319_v30  ;;  %v1345_v39 = vadd.f32 %v1319_v30, %v1264_v3  ;;  %v1395_v31 = vrot.slane %v1368_v40, 2  ;;  %v4321_v52 = vld [vmem:[%s6518_s2 + $0x190] ss:$8 sps:$4 sm:$0xff]  }
  0x6c   :  { %v1341_v47 = vadd.f32 %v1315_v58, %v1260_v57  ;;  %v1400_v11 = vrot.slane %v1370_v9, 2  ;;  %v1343_v15 = vadd.f32 %v1320_v25, %v1262_v6  ;;  %v1783_v63 = vmul.f32 %v4030_v29, %v4683_v5  ;;  %v3980_v9 = vld [vmem:[%s6520_s1 + $0x23] ss:$8 sm:$0x3] }
  0x6d   :  { %v1785_v26 = vmul.f32 %v4032_v34, %v4683_v5  ;;  %v1818_v1 = vmul.f32 %v4028_v14, %v4689_v7  ;;  %v1396_v51 = vsel %vm178_vm1, %v1394_v8, %v1395_v31  ;;  %v1820_v19 = vmul.f32 %v4030_v29, %v4689_v7 }
  0x6e   :  { %2808 = vmatpush1.bf16.msra.mxu0 %v4315_v54  ;;  %v1401_v49 = vsel %vm178_vm1, %v1395_v31, %v1400_v11  ;;  %v1426_v32 = vadd.f32 %v1400_v11, %v1345_v39  ;;  %v1422_v5 = vadd.f32 %v1396_v51, %v1341_v47  ;;  %v1822_v21 = vmul.f32 %v4032_v34, %v4689_v7  ;;  %v3979_v7 = vld [vmem:[%s6520_s1 + $0x16] ss:$8 sm:$0x3]  ;;  %v5103_v39 = vld [vmem:[%s6519_s0 + $0x28] sm:$0xf] }
  0x6f   :  { %2809 = vmatprep.subr.bf16.mxu0 %v4320_v53  ;;  %v1424_v37 = vadd.f32 %v1401_v49, %v1343_v15  ;;  %v1846_v45 = vrot.slane %v1818_v1, 1  ;;  %v1847_v35 = vrot.slane %v1820_v19, 1  ;;  %v1899_v50 = vmul.f32 %v4028_v14, %v4712_v41  ;;  %v5091_v53 = vld [vmem:[%s6519_s0 + $0x18] sm:$0xff]  ;;  %v4324_v15 = vld [vmem:[%s6518_s2 + $0x1a0] ss:$8 sps:$4 sm:$0xff]  }
  0x70   :  { %v1797_v59 = vadd.f32 %v1785_v26, %v1426_v32  ;;  %v1901_v55 = vmul.f32 %v4030_v29, %v4712_v41  ;;  %v1793_v61 = vadd.f32 %v1781_v20, %v1422_v5  ;;  %v1852_v62 = vrot.slane %v1822_v21, 1  ;;  %v3981_v11 = vld [vmem:[%s6520_s1 + $0x30] ss:$8 sm:$0x3]  ;;  %v4329_v49 = vld [vmem:[%s6518_s2 + $0x1b4] ss:$8 sps:$4 sm:$0xff]  }
  0x71   :  { %v1795_v4 = vadd.f32 %v1783_v63, %v1424_v37  ;;  %v1903_v57 = vmul.f32 %v4032_v34, %v4712_v41  ;;  %v1848_v44 = vsel %vm104_vm0, %v1846_v45, %v1847_v35  ;;  %v1927_v12 = vrot.slane %v1899_v50, 2  ;;  %v4326_v41 = vld [vmem:[%s6518_s2 + $0x1a4] ss:$8 sps:$4 sm:$0xff]   ;;  %v3982_v51 = vld [vmem:[%s6520_s1 + $0x35] ss:$8 sm:$0x3] }
  0x72   :  { %2810 = vmatpush1.bf16.msra.mxu0 %v4318_v36  ;;  %v1928_v14 = vrot.slane %v1901_v55, 2  ;;  %v5073_v13 = vrot.slane %v3978_v2, %v4514_v16  ;;  %v1853_v30 = vsel %vm104_vm0, %v1847_v35, %v1852_v62  ;;  %v1874_v54 = vadd.f32 %v1848_v44, %v1793_v61  ;;  %v5086_v34 = vld [vmem:[%s6519_s0 + $0x8] sm:$0xff]  ;;  %v4327_v61 = vld [vmem:[%s6518_s2 + $0x1b0] ss:$8 sps:$4 sm:$0xff]  }
  0x73   :  { %2811 = vmatprep.subr.bf16.mxu0 %v4323_v42  ;;  %v1878_v3 = vadd.f32 %v1852_v62, %v1797_v59  ;;  %v1933_v40 = vrot.slane %v1903_v57, 2  ;;  %v1876_v8 = vadd.f32 %v1853_v30, %v1795_v4  ;;  %v5094_v6 = vrot.slane %v3978_v2, %v4517_v17  ;;  %v3995_v30 = vld [vmem:[%s6520_s1 + $0x12] ss:$8 sm:$0x3] }
  0x74   :  { %v1929_v29 = vsel %vm178_vm1, %v1927_v12, %v1928_v14  ;;  %v5097_v58 = vrot.slane %v3979_v7, %v4514_v16  ;;  %v5106_v31 = vrot.slane %v3979_v7, %v4517_v17  ;;  %v5119_v36 = vrot.slane %v3980_v9, %v4514_v16 }
  0x75   :  { %v1934_v25 = vsel %vm178_vm1, %v1928_v14, %v1933_v40  ;;  %v1955_v20 = vadd.f32 %v1929_v29, %v1874_v54  ;;  %v1959_v47 = vadd.f32 %v1933_v40, %v1878_v3  ;;  %v52_v26 = vmul.f32 %v5094_v6, %v5086_v34 }
  0x76   :  { %2812 = vmatpush1.bf16.msra.mxu0 %v4321_v52  ;;  %v1957_v63 = vadd.f32 %v1934_v25, %v1876_v8  ;;  %v54_v1 = vmul.f32 %v5094_v6, %v5091_v53  ;;  %v81_v42 = vmul.f32 %v5106_v31, %v5086_v34  ;;  %v83_v5 = vmul.f32 %v5106_v31, %v5091_v53  ;;  %v4332_v52 = vld [vmem:[%s6518_s2 + $0x1c4] ss:$8 sps:$4 sm:$0xff]  }
  0x77   :  { %2813 = vmatprep.subr.bf16.mxu0 %v4326_v41  ;;  %v2317_v32 = vrot.slane %v1955_v20, 1  ;;  %v2323_v19 = vrot.slane %v1959_v47, 1  ;;  %v85_v21 = vmul.f32 %v5106_v31, %v5103_v39  ;;  %v5134_v45 = vrot.slane %v3980_v9, %v4517_v17  ;;  %v4330_v47 = vld [vmem:[%s6518_s2 + $0x1c0] ss:$8 sps:$4 sm:$0xff]  }
  0x78   :  { %v2318_v37 = vrot.slane %v1957_v63, 1  ;;  %v5137_v2 = vrot.slane %v3981_v11, %v4514_v16  ;;  %v108_v59 = vrot.slane %v81_v42, 1  ;;  %v109_v35 = vrot.slane %v83_v5, 1 }
  0x79   :  { %v5140_v50 = vrot.slane %v3981_v11, %v4517_v17  ;;  %v5143_v55 = vrot.slane %v3982_v51, %v4514_v16  ;;  %v113_v57 = vrot.slane %v85_v21, 1  ;;  %v155_v7 = vmul.f32 %v5134_v45, %v5086_v34 }
  0x7a   :  { %2814 = vmatpush1.bf16.msra.mxu0 %v4324_v15  ;;  %v2319_v4 = vsel %vm104_vm0, %v2317_v32, %v2318_v37  ;;  %v2324_v62 = vsel %vm104_vm0, %v2318_v37, %v2323_v19  ;;  %v110_v12 = vsel %vm104_vm0, %v108_v59, %v109_v35  ;;  %v157_v14 = vmul.f32 %v5134_v45, %v5091_v53 }
  0x7b   :  { %2815 = vmatprep.subr.bf16.mxu0 %v4329_v49  ;;  %v2339_v44 = vpack.c.bf16 %v2324_v62, %v2319_v4  ;;  %v159_v41 = vmul.f32 %v5134_v45, %v5103_v39  ;;  %v114_v54 = vsel %vm104_vm0, %v109_v35, %v113_v57  ;;  %v134_v3 = vadd.f32 %v110_v12, %v52_v26  ;;  %v4392_v4 = vld [vmem:[%s6519_s0 + $0x68] sm:$0xff]  ;;  %v4333_v57 = vld [vmem:[%s6518_s2 + $0x1d0] ss:$8 sps:$4 sm:$0xff]  }
  0x7c   :  { %v182_v40 = vrot.slane %v155_v7, 2  ;;  %v229_v9 = vmul.f32 %v5140_v50, %v5086_v34  ;;  %v136_v8 = vadd.f32 %v114_v54, %v54_v1  ;;  %v183_v29 = vrot.slane %v157_v14, 2  ;;  %v4335_v1 = vld [vmem:[%s6518_s2 + $0x1d4] ss:$8 sps:$4 sm:$0xff]  }
  0x7d   :  { %2783 = vmatmul.mubr.bf16.gmra.mrb[4].mxu0 %v2339_v44  ;;  %v187_v25 = vrot.slane %v159_v41, 2  ;;  %v231_v20 = vmul.f32 %v5140_v50, %v5091_v53  ;;  %v233_v11 = vmul.f32 %v5140_v50, %v5103_v39  ;;  %v5174_v63 = vrot.slane %v3982_v51, %v4517_v17  ;;  %v4338_v44 = vld [vmem:[%s6518_s2 + $0x1e4] ss:$8 sps:$4 sm:$0xff]  }
  0x7e   :  { %2816 = vmatpush1.bf16.msra.mxu0 %v4327_v61  ;;  %v256_v15 = vrot.slane %v229_v9, 3  ;;  %v5177_v26 = vrot.slane %v3995_v30, %v4514_v16  ;;  %v184_v49 = vsel %vm178_vm1, %v182_v40, %v183_v29  ;;  %v5185_v42 = vrot.slane %v3995_v30, %v4517_v17 }
  0x7f   :  { %2817 = vmatprep.subr.bf16.mxu0 %v4332_v52  ;;  %v188_v32 = vsel %vm178_vm1, %v183_v29, %v187_v25  ;;  %v257_v19 = vrot.slane %v231_v20, 3  ;;  %v208_v5 = vadd.f32 %v184_v49, %v134_v3  ;;  %v261_v51 = vrot.slane %v233_v11, 3 }
  0x80   :  { %v210_v37 = vadd.f32 %v188_v32, %v136_v8  ;;  %v303_v21 = vmul.f32 %v5174_v63, %v5086_v34  ;;  %v305_v35 = vmul.f32 %v5174_v63, %v5091_v53  ;;  %v307_v61 = vmul.f32 %v5174_v63, %v5103_v39  ;;  %v4393_v53 = vld [vmem:[%s6519_s0 + $0x78] sm:$0xff] }
  0x81   :  { %v258_v59 = vsel %vm252_vm2, %v256_v15, %v257_v19  ;;  %v390_v62 = vmul.f32 %v4392_v4, %v5185_v42  ;;  %v262_v34 = vsel %vm252_vm2, %v257_v19, %v261_v51  ;;  %v392_v39 = vmul.f32 %v4393_v53, %v5185_v42 }
  0x82   :  { %2818 = vmatpush1.bf16.msra.mxu0 %v4330_v47  ;;  %v282_v7 = vadd.f32 %v258_v59, %v208_v5  ;;  %v330_v52 = vrot.slane %v303_v21, 4  ;;  %v284_v12 = vadd.f32 %v262_v34, %v210_v37  ;;  %v331_v14 = vrot.slane %v305_v35, 4  ;;  %v4336_v47 = vld [vmem:[%s6518_s2 + $0x1e0] ss:$8 sps:$4 sm:$0xff]  }
  0x83   :  { %2819 = vmatprep.subr.bf16.mxu0 %v4335_v1  ;;  %v335_v41 = vrot.slane %v307_v61, 4  ;;  %v419_v30 = vmul.f32 %v4392_v4, %v4538_v24  ;;  %v421_v54 = vmul.f32 %v4393_v53, %v4538_v24  ;;  %v492_v3 = vmul.f32 %v4392_v4, %v4550_v28  ;;  %v4394_v5 = vld [vmem:[%s6519_s0 + $0x88] sm:$0xf] }
  0x84   :  { %v494_v40 = vmul.f32 %v4393_v53, %v4550_v28  ;;  %v5215_v9 = vrot.slane %v4732_v60, %v4517_v17  ;;  %v332_v8 = vsel %vm326_vm3, %v330_v52, %v331_v14  ;;  %v5221_v20 = vrot.slane %v4742_v0, %v4517_v17  ;;  %v4341_v60 = vld [vmem:[%s6518_s2 + $0x1f4] ss:$8 sps:$4 sm:$0xff]  }
  0x85   :  { %v336_v29 = vsel %vm326_vm3, %v331_v14, %v335_v41  ;;  %v445_v25 = vrot.slane %v419_v30, 1  ;;  %v356_v11 = vadd.f32 %v332_v8, %v282_v7  ;;  %v446_v1 = vrot.slane %v421_v54, 1 }
  0x86   :  { %6577 = vst [vmem:[#allocation11_spill] sm:$0xff] %v5215_v9  ;;  %6578 = vst [vmem:[#allocation12_spill] sm:$0xff] %v5221_v20  ;;  %2820 = vmatpush1.bf16.msra.mxu0 %v4333_v57  ;;  %v358_v15 = vadd.f32 %v336_v29, %v284_v12  ;;  %v518_v49 = vrot.slane %v492_v3, 2  ;;  %v519_v32 = vrot.slane %v494_v40, 2  ;;  %v565_v19 = vmul.f32 %v4392_v4, %v5215_v9 }
  0x87   :  { %2821 = vmatprep.subr.bf16.mxu0 %v4338_v44  ;;  %v567_v0 = vmul.f32 %v4393_v53, %v5215_v9  ;;  %v569_v37 = vmul.f32 %v4394_v5, %v5215_v9  ;;  %v398_v51 = vadd.f32 %v390_v62, %v356_v11  ;;  %v447_v59 = vsel %vm104_vm0, %v445_v25, %v446_v1  ;;  %v4014_v57 = vld [vmem:[%s6520_s1 + $0x13] ss:$8 sm:$0x3]  ;;  %v4017_v40 = vld [vmem:[%s6520_s1 + $0x32] ss:$8 sm:$0x3] }
  0x88   :  { %v400_v21 = vadd.f32 %v392_v39, %v358_v15  ;;  %v6579_v35 = vrot.slane %v4565_v33, 1  ;;  %v520_v34 = vsel %vm178_vm1, %v518_v49, %v519_v32  ;;  %v6580_v7 = vrot.slane %v4580_v38, 2  ;;  %v4339_v62 = vld [vmem:[%s6518_s2 + $0x1f0] ss:$8 sps:$4 sm:$0xff]  }
  0x89   :  { %v591_v44 = vrot.slane %v565_v19, 3  ;;  %v592_v12 = vrot.slane %v567_v0, 3  ;;  %v471_v33 = vadd.f32 %v447_v59, %v398_v51  ;;  %v596_v14 = vrot.slane %v569_v37, 3  ;;  %v4396_v37 = vld [vmem:[%s6519_s0 + $0xd8] sm:$0xff] }
  0x8a   :  { %v451_v61 = vsel %vm104_vm0, %v446_v1, %v6579_v35  ;;  %v524_v52 = vsel %vm178_vm1, %v519_v32, %v6580_v7  ;;  %2822 = vmatpush1.bf16.msra.mxu0 %v4336_v47  ;;  %v638_v41 = vmul.f32 %v4392_v4, %v5221_v20  ;;  %v640_v54 = vmul.f32 %v4393_v53, %v5221_v20 }
  0x8b   :  { %v473_v39 = vadd.f32 %v451_v61, %v400_v21  ;;  %2823 = vmatprep.subr.bf16.mxu0 %v4341_v60  ;;  %v593_v30 = vsel %vm252_vm2, %v591_v44, %v592_v12  ;;  %v642_v38 = vmul.f32 %v4394_v5, %v5221_v20  ;;  %v5254_v3 = vrot.slane %v4014_v57, %v4514_v16  ;;  %v4395_v5 = vld [vmem:[%s6519_s0 + $0xc8] sm:$0xff]  ;;  %v4018_v44 = vld [vmem:[%s6520_s1 + $0x37] ss:$8 sm:$0x3] }
  0x8c   :  { %v544_v8 = vadd.f32 %v520_v34, %v471_v33  ;;  %v597_v25 = vsel %vm252_vm2, %v592_v12, %v596_v14  ;;  %v664_v47 = vrot.slane %v638_v41, 4  ;;  %v665_v4 = vrot.slane %v640_v54, 4  ;;  %v4397_v61 = vld [vmem:[%s6519_s0 + $0xe8] sm:$0xf] }
  0x8d   :  { %v546_v29 = vadd.f32 %v524_v52, %v473_v39  ;;  %v669_v11 = vrot.slane %v642_v38, 4  ;;  %v5261_v15 = vrot.slane %v4014_v57, %v4517_v17  ;;  %v5265_v53 = vrot.slane %v4784_v56, %v4517_v17 }
  0x8e   :  { %2824 = vmatpush1.bf16.msra.mxu0 %v4339_v62  ;;  %v617_v1 = vadd.f32 %v593_v30, %v544_v8  ;;  %v5269_v60 = vrot.slane %v4811_v43, %v4517_v17  ;;  %v5272_v32 = vrot.slane %v4017_v40, %v4514_v16  ;;  %v666_v19 = vsel %vm326_vm3, %v664_v47, %v665_v4 }
  0x8f   :  { %6581 = vst [vmem:[#allocation13_spill] sm:$0xff] %v5261_v15  ;;  %6582 = vst [vmem:[#allocation14_spill] sm:$0xff] %v5265_v53  ;;  %v619_v49 = vadd.f32 %v597_v25, %v546_v29  ;;  %v670_v0 = vsel %vm326_vm3, %v665_v4, %v669_v11  ;;  %v922_v56 = vmul.f32 %v4395_v5, %v5261_v15 }
  0x90   :  { %6583 = vst [vmem:[#allocation15_spill] sm:$0xff] %v5269_v60  ;;  %v924_v43 = vmul.f32 %v4396_v37, %v5261_v15  ;;  %v690_v51 = vadd.f32 %v666_v19, %v617_v1  ;;  %v951_v59 = vmul.f32 %v4395_v5, %v5265_v53  ;;  %v953_v35 = vmul.f32 %v4396_v37, %v5265_v53 }
  0x91   :  { %v692_v21 = vadd.f32 %v670_v0, %v619_v49  ;;  %v955_v57 = vmul.f32 %v4397_v61, %v5265_v53  ;;  %v1024_v34 = vmul.f32 %v4395_v5, %v5269_v60  ;;  %v1026_v7 = vmul.f32 %v4396_v37, %v5269_v60 }
  0x92   :  { %v1028_v52 = vmul.f32 %v4397_v61, %v5269_v60  ;;  %v930_v12 = vadd.f32 %v922_v56, %v690_v51  ;;  %v977_v33 = vrot.slane %v951_v59, 1  ;;  %v978_v39 = vrot.slane %v953_v35, 1  ;;  %v4034_v56 = vld [vmem:[%s6520_s1 + $0x14] ss:$8 sm:$0x3] }
  0x93   :  { %v932_v62 = vadd.f32 %v924_v43, %v692_v21  ;;  %v982_v14 = vrot.slane %v955_v57, 1  ;;  %v1050_v41 = vrot.slane %v1024_v34, 2  ;;  %v1051_v30 = vrot.slane %v1026_v7, 2  ;;  %v4035_v35 = vld [vmem:[%s6520_s1 + $0x21] ss:$8 sm:$0x3] }
  0x94   :  { %v1055_v54 = vrot.slane %v1028_v52, 2  ;;  %v979_v38 = vsel %vm104_vm0, %v977_v33, %v978_v39  ;;  %v5298_v8 = vrot.slane %v4017_v40, %v4517_v17  ;;  %v5301_v29 = vrot.slane %v4018_v44, %v4514_v16 }
  0x95   :  { %v5304_v25 = vrot.slane %v4018_v44, %v4517_v17  ;;  %v983_v47 = vsel %vm104_vm0, %v978_v39, %v982_v14  ;;  %v1003_v4 = vadd.f32 %v979_v38, %v930_v12  ;;  %v1052_v11 = vsel %vm178_vm1, %v1050_v41, %v1051_v30  ;;  %v4037_v41 = vld [vmem:[%s6520_s1 + $0x33] ss:$8 sm:$0x3] }
  0x96   :  { %6584 = vst [vmem:[#allocation16_spill] sm:$0xff] %v5298_v8  ;;  %v1056_v1 = vsel %vm178_vm1, %v1051_v30, %v1055_v54  ;;  %v1005_v49 = vadd.f32 %v983_v47, %v932_v62  ;;  %v1097_v19 = vmul.f32 %v4395_v5, %v5298_v8  ;;  %v1099_v0 = vmul.f32 %v4396_v37, %v5298_v8 }
  0x97   :  { %6585 = vst [vmem:[#allocation17_spill] sm:$0xff] %v5304_v25  ;;  %v1101_v40 = vmul.f32 %v4397_v61, %v5298_v8  ;;  %v1076_v43 = vadd.f32 %v1052_v11, %v1003_v4  ;;  %v1170_v51 = vmul.f32 %v4395_v5, %v5304_v25  ;;  %v1172_v21 = vmul.f32 %v4396_v37, %v5304_v25  ;;  %v4036_v5 = vld [vmem:[%s6520_s1 + $0x26] ss:$8 sm:$0x3] }
  0x98   :  { %v1174_v59 = vmul.f32 %v4397_v61, %v5304_v25  ;;  %v1078_v57 = vadd.f32 %v1056_v1, %v1005_v49  ;;  %v1123_v34 = vrot.slane %v1097_v19, 3  ;;  %v1124_v7 = vrot.slane %v1099_v0, 3  ;;  %v4398_v4 = vld [vmem:[%s6519_s0 + $0x128] sm:$0xff]  ;;  %v4399_v1 = vld [vmem:[%s6519_s0 + $0x138] sm:$0xff] }
  0x99   :  { %v1128_v52 = vrot.slane %v1101_v40, 3  ;;  %v1196_v44 = vrot.slane %v1170_v51, 4  ;;  %v1197_v12 = vrot.slane %v1172_v21, 4  ;;  %v5322_v33 = vrot.slane %v4034_v56, %v4514_v16 }
  0x9a   :  { %v1201_v62 = vrot.slane %v1174_v59, 4  ;;  %v1125_v37 = vsel %vm252_vm2, %v1123_v34, %v1124_v7  ;;  %v5330_v39 = vrot.slane %v4034_v56, %v4517_v17  ;;  %v5333_v14 = vrot.slane %v4035_v35, %v4514_v16 }
  0x9b   :  { %v1129_v61 = vsel %vm252_vm2, %v1124_v7, %v1128_v52  ;;  %v1149_v30 = vadd.f32 %v1125_v37, %v1076_v43  ;;  %v1198_v38 = vsel %vm326_vm3, %v1196_v44, %v1197_v12  ;;  %v5349_v19 = vrot.slane %v4035_v35, %v4517_v17  ;;  %v4400_v35 = vld [vmem:[%s6519_s0 + $0x148] sm:$0xf] }
  0x9c   :  { %6586 = vst [vmem:[#allocation18_spill] sm:$0xff] %v5330_v39  ;;  %v1151_v54 = vadd.f32 %v1129_v61, %v1078_v57  ;;  %v1202_v47 = vsel %vm326_vm3, %v1197_v12, %v1201_v62  ;;  %v1455_v11 = vmul.f32 %v4398_v4, %v5330_v39  ;;  %v1457_v49 = vmul.f32 %v4399_v1, %v5330_v39 }
  0x9d   :  { %6587 = vst [vmem:[#allocation19_spill] sm:$0xff] %v5349_v19  ;;  %v5352_v0 = vrot.slane %v4036_v5, %v4514_v16  ;;  %v1222_v40 = vadd.f32 %v1198_v38, %v1149_v30  ;;  %v5355_v43 = vrot.slane %v4036_v5, %v4517_v17  ;;  %v5358_v51 = vrot.slane %v4037_v41, %v4514_v16 }
  0x9e   :  { %v1224_v56 = vadd.f32 %v1202_v47, %v1151_v54  ;;  %v1484_v21 = vmul.f32 %v4398_v4, %v5349_v19  ;;  %v1486_v59 = vmul.f32 %v4399_v1, %v5349_v19  ;;  %v1488_v57 = vmul.f32 %v4400_v35, %v5349_v19 }
  0x9f   :  { %6588 = vst [vmem:[#allocation20_spill] sm:$0xff] %v5355_v43  ;;  %v5367_v34 = vrot.slane %v4037_v41, %v4517_v17  ;;  %v1463_v7 = vadd.f32 %v1455_v11, %v1222_v40  ;;  %v1557_v44 = vmul.f32 %v4398_v4, %v5355_v43  ;;  %v1559_v12 = vmul.f32 %v4399_v1, %v5355_v43  ;;  %v4038_v41 = vld [vmem:[%s6520_s1 + $0x40] ss:$8 sm:$0x3] }
  0xa0   :  { %v1465_v52 = vadd.f32 %v1457_v49, %v1224_v56  ;;  %v1510_v62 = vrot.slane %v1484_v21, 1  ;;  %v1511_v5 = vrot.slane %v1486_v59, 1  ;;  %v1515_v37 = vrot.slane %v1488_v57, 1  ;;  %v4054_v21 = vld [vmem:[%s6520_s1 + $0x15] ss:$8 sm:$0x3] }
  0xa1   :  { %6589 = vst [vmem:[#allocation21_spill] sm:$0xff] %v5367_v34  ;;  %v1561_v61 = vmul.f32 %v4400_v35, %v5355_v43  ;;  %v1583_v30 = vrot.slane %v1557_v44, 2  ;;  %v1584_v54 = vrot.slane %v1559_v12, 2  ;;  %v1630_v38 = vmul.f32 %v4398_v4, %v5367_v34 }
  0xa2   :  { %v1632_v47 = vmul.f32 %v4399_v1, %v5367_v34  ;;  %v1512_v11 = vsel %vm104_vm0, %v1510_v62, %v1511_v5  ;;  %v1516_v49 = vsel %vm104_vm0, %v1511_v5, %v1515_v37  ;;  %v1634_v56 = vmul.f32 %v4400_v35, %v5367_v34 }
  0xa3   :  { %v1588_v40 = vrot.slane %v1561_v61, 2  ;;  %v1536_v59 = vadd.f32 %v1512_v11, %v1463_v7  ;;  %v1538_v57 = vadd.f32 %v1516_v49, %v1465_v52  ;;  %v1585_v44 = vsel %vm178_vm1, %v1583_v30, %v1584_v54  ;;  %v4043_v7 = vld [vmem:[%s6519_s0 + $0x188] sm:$0xff]  ;;  %v4045_v52 = vld [vmem:[%s6519_s0 + $0x198] sm:$0xff] }
  0xa4   :  { %v1656_v12 = vrot.slane %v1630_v38, 3  ;;  %v1657_v43 = vrot.slane %v1632_v47, 3  ;;  %v1661_v5 = vrot.slane %v1634_v56, 3  ;;  %v5389_v37 = vrot.slane %v4038_v41, %v4514_v16  ;;  %v4056_v11 = vld [vmem:[%s6520_s1 + $0x27] ss:$8 sm:$0x3] }
  0xa5   :  { %v1589_v62 = vsel %vm178_vm1, %v1584_v54, %v1588_v40  ;;  %v1609_v61 = vadd.f32 %v1585_v44, %v1536_v59  ;;  %v5392_v19 = vrot.slane %v4038_v41, %v4517_v17  ;;  %v5401_v30 = vrot.slane %v4054_v21, %v4514_v16 }
  0xa6   :  { %v1611_v34 = vadd.f32 %v1589_v62, %v1538_v57  ;;  %v1658_v54 = vsel %vm252_vm2, %v1656_v12, %v1657_v43  ;;  %v1662_v38 = vsel %vm252_vm2, %v1657_v43, %v1661_v5  ;;  %v5406_v47 = vrot.slane %v4054_v21, %v4517_v17  ;;  %v4047_v43 = vld [vmem:[%s6519_s0 + $0x1a8] sm:$0xf] }
  0xa7   :  { %6590 = vst [vmem:[#allocation22_spill] sm:$0xff] %v5392_v19  ;;  %v5409_v41 = vrot.slane %v4055_v10, %v4514_v16  ;;  %v1682_v49 = vadd.f32 %v1658_v54, %v1609_v61  ;;  %v1703_v56 = vmul.f32 %v4398_v4, %v5392_v19  ;;  %v1705_v59 = vmul.f32 %v4399_v1, %v5392_v19 }
  0xa8   :  { %6591 = vst [vmem:[#allocation23_spill] sm:$0xff] %v5406_v47  ;;  %v1684_v40 = vadd.f32 %v1662_v38, %v1611_v34  ;;  %v1707_v21 = vmul.f32 %v4400_v35, %v5392_v19  ;;  %v1988_v57 = vmul.f32 %v4043_v7, %v5406_v47  ;;  %v1990_v44 = vmul.f32 %v4045_v52, %v5406_v47 }
  0xa9   :  { %v5423_v12 = vrot.slane %v4055_v10, %v4517_v17  ;;  %v1729_v62 = vrot.slane %v1703_v56, 4  ;;  %v1730_v5 = vrot.slane %v1705_v59, 4  ;;  %v5426_v34 = vrot.slane %v4056_v11, %v4514_v16 }
  0xaa   :  { %v5429_v4 = vrot.slane %v4056_v11, %v4517_v17  ;;  %v1734_v1 = vrot.slane %v1707_v21, 4  ;;  %v4057_v11 = vld [vmem:[%s6520_s1 + $0x34] ss:$8 sm:$0x3] }
  0xab   :  { %6592 = vst [vmem:[#allocation24_spill] sm:$0xff] %v5423_v12  ;;  %v2017_v61 = vmul.f32 %v4043_v7, %v5423_v12  ;;  %v2019_v35 = vmul.f32 %v4045_v52, %v5423_v12  ;;  %v2021_v54 = vmul.f32 %v4047_v43, %v5423_v12  ;;  %v1731_v38 = vsel %vm326_vm3, %v1729_v62, %v1730_v5  ;;  %v4058_v62 = vld [vmem:[%s6520_s1 + $0x41] ss:$8 sm:$0x3] }
  0xac   :  { %6593 = vst [vmem:[#allocation25_spill] sm:$0xff] %v5429_v4  ;;  %v2090_v10 = vmul.f32 %v4043_v7, %v5429_v4  ;;  %v2092_v56 = vmul.f32 %v4045_v52, %v5429_v4  ;;  %v2094_v59 = vmul.f32 %v4047_v43, %v5429_v4  ;;  %v1735_v21 = vsel %vm326_vm3, %v1730_v5, %v1734_v1 }
  0xad   :  { %v1755_v47 = vadd.f32 %v1731_v38, %v1682_v49  ;;  %v2043_v19 = vrot.slane %v2017_v61, 1  ;;  %v2044_v39 = vrot.slane %v2019_v35, 1  ;;  %v1757_v25 = vadd.f32 %v1735_v21, %v1684_v40 }
  0xae   :  { %v2048_v8 = vrot.slane %v2021_v54, 1  ;;  %v2116_v12 = vrot.slane %v2090_v10, 2  ;;  %v2117_v60 = vrot.slane %v2092_v56, 2  ;;  %v2121_v15 = vrot.slane %v2094_v59, 2  ;;  %v28_v59 = vld [vmem:[%s6519_s0 + $0x10] sm:$0xff] }
  0xaf   :  { %v1996_v53 = vadd.f32 %v1988_v57, %v1755_v47  ;;  %v2045_v4 = vsel %vm104_vm0, %v2043_v19, %v2044_v39  ;;  %v5447_v20 = vrot.slane %v4057_v11, %v4514_v16  ;;  %v1998_v9 = vadd.f32 %v1990_v44, %v1757_v25 }
  0xb0   :  { %v2049_v49 = vsel %vm104_vm0, %v2044_v39, %v2048_v8  ;;  %v2118_v5 = vsel %vm178_vm1, %v2116_v12, %v2117_v60  ;;  %v5452_v40 = vrot.slane %v4057_v11, %v4517_v17  ;;  %v2122_v61 = vsel %vm178_vm1, %v2117_v60, %v2121_v15  ;;  %v26_v60 = vld [vmem:[%s6519_s0] sm:$0xff] }
  0xb1   :  { %v2069_v1 = vadd.f32 %v2045_v4, %v1996_v53  ;;  %v5456_v35 = vrot.slane %v4058_v62, %v4514_v16  ;;  %v5459_v19 = vrot.slane %v4058_v62, %v4517_v17  ;;  %v2071_v47 = vadd.f32 %v2049_v49, %v1998_v9 }
  0xb2   :  { %v2163_v57 = vmul.f32 %v4043_v7, %v5452_v40  ;;  %v2165_v25 = vmul.f32 %v4045_v52, %v5452_v40  ;;  %v2167_v8 = vmul.f32 %v4047_v43, %v5452_v40  ;;  %v53_v21 = vmul.f32 %v5073_v13, %v28_v59 }
  0xb3   :  { %v2142_v39 = vadd.f32 %v2118_v5, %v2069_v1  ;;  %v2236_v44 = vmul.f32 %v4043_v7, %v5459_v19  ;;  %v2238_v53 = vmul.f32 %v4045_v52, %v5459_v19  ;;  %v2240_v15 = vmul.f32 %v4047_v43, %v5459_v19  ;;  %v30_v7 = vld [vmem:[%s6519_s0 + $0x20] sm:$0xf] }
  0xb4   :  { %v2144_v12 = vadd.f32 %v2122_v61, %v2071_v47  ;;  %v2189_v4 = vrot.slane %v2163_v57, 3  ;;  %v2190_v9 = vrot.slane %v2165_v25, 3  ;;  %v2194_v54 = vrot.slane %v2167_v8, 3 }
  0xb5   :  { %v2262_v38 = vrot.slane %v2236_v44, 4  ;;  %v2263_v10 = vrot.slane %v2238_v53, 4  ;;  %v2267_v56 = vrot.slane %v2240_v15, 4  ;;  %v51_v52 = vmul.f32 %v5073_v13, %v26_v60 }
  0xb6   :  { %v2191_v43 = vsel %vm252_vm2, %v2189_v4, %v2190_v9  ;;  %v2195_v11 = vsel %vm252_vm2, %v2190_v9, %v2194_v54  ;;  %v80_v62 = vmul.f32 %v5097_v58, %v26_v60  ;;  %v82_v47 = vmul.f32 %v5097_v58, %v28_v59 }
  0xb7   :  { %v2215_v49 = vadd.f32 %v2191_v43, %v2142_v39  ;;  %v2217_v5 = vadd.f32 %v2195_v11, %v2144_v12  ;;  %v2264_v1 = vsel %vm326_vm3, %v2262_v38, %v2263_v10  ;;  %v2268_v61 = vsel %vm326_vm3, %v2263_v10, %v2267_v56 }
  0xb8   :  { %v84_v57 = vmul.f32 %v5097_v58, %v30_v7  ;;  %v105_v25 = vrot.slane %v80_v62, 1  ;;  %v154_v8 = vmul.f32 %v5119_v36, %v26_v60  ;;  %v156_v15 = vmul.f32 %v5119_v36, %v28_v59 }
  0xb9   :  { %v2288_v44 = vadd.f32 %v2264_v1, %v2215_v49  ;;  %v2290_v53 = vadd.f32 %v2268_v61, %v2217_v5  ;;  %v158_v4 = vmul.f32 %v5119_v36, %v30_v7  ;;  %v106_v9 = vrot.slane %v82_v47, 1 }
  0xba   :  { %v111_v39 = vrot.slane %v84_v57, 1  ;;  %v179_v12 = vrot.slane %v154_v8, 2  ;;  %v228_v54 = vmul.f32 %v5137_v2, %v26_v60  ;;  %v180_v10 = vrot.slane %v156_v15, 2 }
  0xbb   :  { %v2338_v38 = vpack.c.bf16 %v2290_v53, %v2288_v44  ;;  %v185_v56 = vrot.slane %v158_v4, 2  ;;  %v230_v43 = vmul.f32 %v5137_v2, %v28_v59  ;;  %v107_v11 = vsel %vm104_vm0, %v105_v25, %v106_v9 }
  0xbc   :  { %v112_v62 = vsel %vm104_vm0, %v106_v9, %v111_v39  ;;  %v232_v49 = vmul.f32 %v5137_v2, %v30_v7  ;;  %v253_v5 = vrot.slane %v228_v54, 3  ;;  %v133_v1 = vadd.f32 %v107_v11, %v51_v52  ;;  %v4401_v39 = vld [vmem:[%s6519_s0 + $0x60] sm:$0xff] }
  0xbd   :  { %2825 = vmatprep.mubr.bf16.mxu0 %v2338_v38  ;;  %v135_v61 = vadd.f32 %v112_v62, %v53_v21  ;;  %v181_v47 = vsel %vm178_vm1, %v179_v12, %v180_v10  ;;  %v186_v57 = vsel %vm178_vm1, %v180_v10, %v185_v56  ;;  %v254_v8 = vrot.slane %v230_v43, 3 }
  0xbe   :  { %v259_v44 = vrot.slane %v232_v49, 3  ;;  %v302_v53 = vmul.f32 %v5143_v55, %v26_v60  ;;  %v304_v15 = vmul.f32 %v5143_v55, %v28_v59  ;;  %v207_v4 = vadd.f32 %v181_v47, %v133_v1  ;;  %v4402_v59 = vld [vmem:[%s6519_s0 + $0x70] sm:$0xff] }
  0xbf   :  { %v209_v25 = vadd.f32 %v186_v57, %v135_v61  ;;  %v306_v9 = vmul.f32 %v5143_v55, %v30_v7  ;;  %v389_v52 = vmul.f32 %v4401_v39, %v5177_v26  ;;  %v255_v21 = vsel %vm252_vm2, %v253_v5, %v254_v8 }
  0xc0   :  { %v260_v12 = vsel %vm252_vm2, %v254_v8, %v259_v44  ;;  %v327_v54 = vrot.slane %v302_v53, 4  ;;  %v328_v38 = vrot.slane %v304_v15, 4  ;;  %v281_v10 = vadd.f32 %v255_v21, %v207_v4 }
  0xc1   :  { %v283_v60 = vadd.f32 %v260_v12, %v209_v25  ;;  %v333_v56 = vrot.slane %v306_v9, 4  ;;  %v391_v7 = vmul.f32 %v4402_v59, %v5177_v26  ;;  %v418_v11 = vmul.f32 %v4401_v39, %v4535_v23 }
  0xc2   :  { %v329_v43 = vsel %vm326_vm3, %v327_v54, %v328_v38  ;;  %v420_v62 = vmul.f32 %v4402_v59, %v4535_v23  ;;  %v491_v49 = vmul.f32 %v4401_v39, %v4547_v27  ;;  %v493_v61 = vmul.f32 %v4402_v59, %v4547_v27 }
  0xc3   :  { %v334_v5 = vsel %vm326_vm3, %v328_v38, %v333_v56  ;;  %v355_v1 = vadd.f32 %v329_v43, %v281_v10  ;;  %v564_v47 = vmul.f32 %v4401_v39, %v4757_v18  ;;  %v442_v8 = vrot.slane %v418_v11, 1  ;;  %v6595_v43 = vld [vmem:[#allocation5_spill] sm:$0xff] }
  0xc4   :  { %v357_v57 = vadd.f32 %v334_v5, %v283_v60  ;;  %v443_v44 = vrot.slane %v420_v62, 1  ;;  %v515_v53 = vrot.slane %v491_v49, 2  ;;  %v516_v4 = vrot.slane %v493_v61, 2 }
  0xc5   :  { %v397_v15 = vadd.f32 %v389_v52, %v355_v1  ;;  %v566_v25 = vmul.f32 %v4402_v59, %v4757_v18  ;;  %v588_v9 = vrot.slane %v564_v47, 3  ;;  %v6594_v54 = vrot.slane %v4727_v48, 1  ;;  %v4403_v48 = vld [vmem:[%s6519_s0 + $0xc0] sm:$0xff] }
  0xc6   :  { %v399_v21 = vadd.f32 %v391_v7, %v357_v57  ;;  %v444_v12 = vsel %vm104_vm0, %v442_v8, %v443_v44  ;;  %v637_v10 = vmul.f32 %v4401_v39, %v4762_v22  ;;  %v517_v60 = vsel %vm178_vm1, %v515_v53, %v516_v4  ;;  %v6597_v47 = vld [vmem:[#allocation6_spill] sm:$0xff] }
  0xc7   :  { %v449_v38 = vsel %vm104_vm0, %v443_v44, %v6594_v54  ;;  %v470_v56 = vadd.f32 %v444_v12, %v397_v15  ;;  %v6596_v11 = vrot.slane %v6595_v43, 2  ;;  %v589_v62 = vrot.slane %v566_v25, 3  ;;  %v4404_v44 = vld [vmem:[%s6519_s0 + $0xd0] sm:$0xff]  ;;  %v6600_v54 = vld [vmem:[#allocation9_spill] sm:$0xff] }
  0xc8   :  { %v472_v49 = vadd.f32 %v449_v38, %v399_v21  ;;  %v639_v5 = vmul.f32 %v4402_v59, %v4762_v22  ;;  %v661_v7 = vrot.slane %v637_v10, 4  ;;  %v921_v1 = vmul.f32 %v4403_v48, %v5254_v3  ;;  %v6601_v10 = vld [vmem:[#allocation10_spill] sm:$0xff] }
  0xc9   :  { %v522_v52 = vsel %vm178_vm1, %v516_v4, %v6596_v11  ;;  %v543_v61 = vadd.f32 %v517_v60, %v470_v56  ;;  %v590_v39 = vsel %vm252_vm2, %v588_v9, %v589_v62  ;;  %v6598_v57 = vrot.slane %v6597_v47, 3  ;;  %v6599_v4 = vld [vmem:[#allocation7_spill] sm:$0xff] }
  0xca   :  { %v923_v59 = vmul.f32 %v4404_v44, %v5254_v3  ;;  %v545_v53 = vadd.f32 %v522_v52, %v472_v49  ;;  %v662_v15 = vrot.slane %v639_v5, 4  ;;  %v950_v25 = vmul.f32 %v4403_v48, %v6599_v4 }
  0xcb   :  { %v595_v8 = vsel %vm252_vm2, %v589_v62, %v6598_v57  ;;  %v952_v21 = vmul.f32 %v4404_v44, %v6599_v4  ;;  %v616_v12 = vadd.f32 %v590_v39, %v543_v61  ;;  %v1023_v38 = vmul.f32 %v4403_v48, %v6600_v54 }
  0xcc   :  { %v1025_v9 = vmul.f32 %v4404_v44, %v6600_v54  ;;  %v1053_v56 = vrot.slane %v6601_v10, 2  ;;  %v618_v60 = vadd.f32 %v595_v8, %v545_v53  ;;  %v663_v43 = vsel %vm326_vm3, %v661_v7, %v662_v15  ;;  %v4405_v8 = vld [vmem:[%s6519_s0 + $0xe0] sm:$0xf] }
  0xcd   :  { %v6602_v11 = vrot.slane %v4777_v46, 4  ;;  %v974_v52 = vrot.slane %v950_v25, 1  ;;  %v689_v49 = vadd.f32 %v663_v43, %v616_v12  ;;  %v975_v5 = vrot.slane %v952_v21, 1 }
  0xce   :  { %v1047_v47 = vrot.slane %v1023_v38, 2  ;;  %v1048_v57 = vrot.slane %v1025_v9, 2  ;;  %v1096_v61 = vmul.f32 %v4403_v48, %v5272_v32  ;;  %v1098_v39 = vmul.f32 %v4404_v44, %v5272_v32 }
  0xcf   :  { %v668_v62 = vsel %vm326_vm3, %v662_v15, %v6602_v11  ;;  %v1100_v7 = vmul.f32 %v4405_v8, %v5272_v32  ;;  %v929_v53 = vadd.f32 %v921_v1, %v689_v49  ;;  %v976_v46 = vsel %vm104_vm0, %v974_v52, %v975_v5  ;;  %v6603_v15 = vld [vmem:[#allocation8_spill] sm:$0xff] }
  0xd0   :  { %v691_v17 = vadd.f32 %v668_v62, %v618_v60  ;;  %v6604_v25 = vrot.slane %v6603_v15, 1  ;;  %v1049_v12 = vsel %vm178_vm1, %v1047_v47, %v1048_v57  ;;  %v1054_v9 = vsel %vm178_vm1, %v1048_v57, %v1053_v56  ;;  %v4408_v15 = vld [vmem:[%s6519_s0 + $0x140] sm:$0xf] }
  0xd1   :  { %v1120_v10 = vrot.slane %v1096_v61, 3  ;;  %v1121_v60 = vrot.slane %v1098_v39, 3  ;;  %v1002_v43 = vadd.f32 %v976_v46, %v929_v53  ;;  %v1126_v11 = vrot.slane %v1100_v7, 3 }
  0xd2   :  { %v981_v21 = vsel %vm104_vm0, %v975_v5, %v6604_v25  ;;  %v931_v38 = vadd.f32 %v923_v59, %v691_v17  ;;  %v1169_v62 = vmul.f32 %v4403_v48, %v5301_v29  ;;  %v1171_v16 = vmul.f32 %v4404_v44, %v5301_v29  ;;  %v4406_v5 = vld [vmem:[%s6519_s0 + $0x120] sm:$0xff]  ;;  %v4407_v44 = vld [vmem:[%s6519_s0 + $0x130] sm:$0xff] }
  0xd3   :  { %v1122_v52 = vsel %vm252_vm2, %v1120_v10, %v1121_v60  ;;  %v1173_v49 = vmul.f32 %v4405_v8, %v5301_v29  ;;  %v1454_v17 = vmul.f32 %v4406_v5, %v5322_v33  ;;  %v1075_v59 = vadd.f32 %v1049_v12, %v1002_v43 }
  0xd4   :  { %v1004_v1 = vadd.f32 %v981_v21, %v931_v38  ;;  %v1127_v56 = vsel %vm252_vm2, %v1121_v60, %v1126_v11  ;;  %v1193_v47 = vrot.slane %v1169_v62, 4  ;;  %v1194_v57 = vrot.slane %v1171_v16, 4 }
  0xd5   :  { %v1199_v48 = vrot.slane %v1173_v49, 4  ;;  %v1456_v39 = vmul.f32 %v4407_v44, %v5322_v33  ;;  %v1483_v8 = vmul.f32 %v4406_v5, %v5333_v14  ;;  %v1148_v7 = vadd.f32 %v1122_v52, %v1075_v59 }
  0xd6   :  { %v1077_v61 = vadd.f32 %v1054_v9, %v1004_v1  ;;  %v1195_v53 = vsel %vm326_vm3, %v1193_v47, %v1194_v57  ;;  %v1485_v46 = vmul.f32 %v4407_v44, %v5333_v14  ;;  %v1487_v16 = vmul.f32 %v4408_v15, %v5333_v14 }
  0xd7   :  { %v1200_v21 = vsel %vm326_vm3, %v1194_v57, %v1199_v48  ;;  %v1507_v12 = vrot.slane %v1483_v8, 1  ;;  %v1556_v38 = vmul.f32 %v4406_v5, %v5352_v0  ;;  %v1221_v9 = vadd.f32 %v1195_v53, %v1148_v7 }
  0xd8   :  { %v1150_v25 = vadd.f32 %v1127_v56, %v1077_v61  ;;  %v1508_v10 = vrot.slane %v1485_v46, 1  ;;  %v1513_v60 = vrot.slane %v1487_v16, 1  ;;  %v1558_v43 = vmul.f32 %v4407_v44, %v5352_v0 }
  0xd9   :  { %v1560_v62 = vmul.f32 %v4408_v15, %v5352_v0  ;;  %v1580_v1 = vrot.slane %v1556_v38, 2  ;;  %v1629_v52 = vmul.f32 %v4406_v5, %v5358_v51  ;;  %v1462_v49 = vadd.f32 %v1454_v17, %v1221_v9  ;;  %v4042_v17 = vld [vmem:[%s6519_s0 + $0x180] sm:$0xff]  ;;  %v4044_v38 = vld [vmem:[%s6519_s0 + $0x190] sm:$0xff] }
  0xda   :  { %v1223_v11 = vadd.f32 %v1200_v21, %v1150_v25  ;;  %v1509_v59 = vsel %vm104_vm0, %v1507_v12, %v1508_v10  ;;  %v1514_v56 = vsel %vm104_vm0, %v1508_v10, %v1513_v60  ;;  %v1581_v47 = vrot.slane %v1558_v43, 2 }
  0xdb   :  { %v1586_v61 = vrot.slane %v1560_v62, 2  ;;  %v1631_v48 = vmul.f32 %v4407_v44, %v5358_v51  ;;  %v1633_v8 = vmul.f32 %v4408_v15, %v5358_v51  ;;  %v1535_v7 = vadd.f32 %v1509_v59, %v1462_v49 }
  0xdc   :  { %v1464_v57 = vadd.f32 %v1456_v39, %v1223_v11  ;;  %v1582_v53 = vsel %vm178_vm1, %v1580_v1, %v1581_v47  ;;  %v1653_v46 = vrot.slane %v1629_v52, 3  ;;  %v1702_v16 = vmul.f32 %v4406_v5, %v5389_v37  ;;  %v4046_v5 = vld [vmem:[%s6519_s0 + $0x1a0] sm:$0xf] }
  0xdd   :  { %v1587_v21 = vsel %vm178_vm1, %v1581_v47, %v1586_v61  ;;  %v1654_v12 = vrot.slane %v1631_v48, 3  ;;  %v1659_v39 = vrot.slane %v1633_v8, 3  ;;  %v1608_v9 = vadd.f32 %v1582_v53, %v1535_v7 }
  0xde   :  { %v1537_v25 = vadd.f32 %v1514_v56, %v1464_v57  ;;  %v1704_v10 = vmul.f32 %v4407_v44, %v5389_v37  ;;  %v1706_v60 = vmul.f32 %v4408_v15, %v5389_v37  ;;  %v1726_v43 = vrot.slane %v1702_v16, 4 }
  0xdf   :  { %v1655_v62 = vsel %vm252_vm2, %v1653_v46, %v1654_v12  ;;  %v1660_v1 = vsel %vm252_vm2, %v1654_v12, %v1659_v39  ;;  %v1987_v52 = vmul.f32 %v4042_v17, %v5401_v30  ;;  %v1989_v47 = vmul.f32 %v4044_v38, %v5401_v30 }
  0xe0   :  { %v1610_v11 = vadd.f32 %v1587_v21, %v1537_v25  ;;  %v1681_v49 = vadd.f32 %v1655_v62, %v1608_v9  ;;  %v1727_v59 = vrot.slane %v1704_v10, 4  ;;  %v1732_v56 = vrot.slane %v1706_v60, 4 }
  0xe1   :  { %v2016_v15 = vmul.f32 %v4042_v17, %v5409_v41  ;;  %v2018_v57 = vmul.f32 %v4044_v38, %v5409_v41  ;;  %v2020_v61 = vmul.f32 %v4046_v5, %v5409_v41  ;;  %v2089_v7 = vmul.f32 %v4042_v17, %v5426_v34 }
  0xe2   :  { %v1683_v44 = vadd.f32 %v1660_v1, %v1610_v11  ;;  %v1728_v48 = vsel %vm326_vm3, %v1726_v43, %v1727_v59  ;;  %v1733_v8 = vsel %vm326_vm3, %v1727_v59, %v1732_v56  ;;  %v2091_v53 = vmul.f32 %v4044_v38, %v5426_v34 }
  0xe3   :  { %v1754_v46 = vadd.f32 %v1728_v48, %v1681_v49  ;;  %v2040_v25 = vrot.slane %v2016_v15, 1  ;;  %v2041_v21 = vrot.slane %v2018_v57, 1  ;;  %v2046_v12 = vrot.slane %v2020_v61, 1 }
  0xe4   :  { %v1756_v16 = vadd.f32 %v1733_v8, %v1683_v44  ;;  %v2093_v39 = vmul.f32 %v4046_v5, %v5426_v34  ;;  %v2113_v9 = vrot.slane %v2089_v7, 2  ;;  %v2114_v10 = vrot.slane %v2091_v53, 2 }
  0xe5   :  { %v1995_v60 = vadd.f32 %v1987_v52, %v1754_v46  ;;  %v2042_v62 = vsel %vm104_vm0, %v2040_v25, %v2041_v21  ;;  %v2162_v43 = vmul.f32 %v4042_v17, %v5447_v20  ;;  %v2047_v1 = vsel %vm104_vm0, %v2041_v21, %v2046_v12  ;;  %v33_v25 = vld [vmem:[%s6519_s0 + $0x38] sm:$0xff]  ;;  %v35_v21 = vld [vmem:[%s6519_s0 + $0x48] sm:$0xff] }
  0xe6   :  { %v1997_v11 = vadd.f32 %v1989_v47, %v1756_v16  ;;  %v2115_v59 = vsel %vm178_vm1, %v2113_v9, %v2114_v10  ;;  %v2119_v56 = vrot.slane %v2093_v39, 2  ;;  %v2164_v49 = vmul.f32 %v4044_v38, %v5447_v20 }
  0xe7   :  { %v2068_v44 = vadd.f32 %v2042_v62, %v1995_v60  ;;  %v2166_v57 = vmul.f32 %v4046_v5, %v5447_v20  ;;  %v2186_v61 = vrot.slane %v2162_v43, 3  ;;  %v2235_v47 = vmul.f32 %v4042_v17, %v5456_v35  ;;  %v37_v17 = vld [vmem:[%s6519_s0 + $0x58] sm:$0xf] }
  0xe8   :  { %v2070_v15 = vadd.f32 %v2047_v1, %v1997_v11  ;;  %v2120_v48 = vsel %vm178_vm1, %v2114_v10, %v2119_v56  ;;  %v2187_v52 = vrot.slane %v2164_v49, 3  ;;  %v2237_v8 = vmul.f32 %v4044_v38, %v5456_v35 }
  0xe9   :  { %v2141_v7 = vadd.f32 %v2115_v59, %v2068_v44  ;;  %v2192_v46 = vrot.slane %v2166_v57, 3  ;;  %v2239_v16 = vmul.f32 %v4046_v5, %v5456_v35  ;;  %v2259_v39 = vrot.slane %v2235_v47, 4 }
  0xea   :  { %v2143_v53 = vadd.f32 %v2120_v48, %v2070_v15  ;;  %v2188_v12 = vsel %vm252_vm2, %v2186_v61, %v2187_v52  ;;  %v2260_v9 = vrot.slane %v2237_v8, 4  ;;  %v56_v38 = vmul.f32 %v5094_v6, %v33_v25 }
  0xeb   :  { %v2193_v5 = vsel %vm252_vm2, %v2187_v52, %v2192_v46  ;;  %v2214_v10 = vadd.f32 %v2188_v12, %v2141_v7  ;;  %v2265_v60 = vrot.slane %v2239_v16, 4  ;;  %v58_v11 = vmul.f32 %v5094_v6, %v35_v21 }
  0xec   :  { %v2216_v62 = vadd.f32 %v2193_v5, %v2143_v53  ;;  %v2261_v43 = vsel %vm326_vm3, %v2259_v39, %v2260_v9  ;;  %v87_v1 = vmul.f32 %v5106_v31, %v33_v25  ;;  %v89_v59 = vmul.f32 %v5106_v31, %v35_v21 }
  0xed   :  { %v2266_v56 = vsel %vm326_vm3, %v2260_v9, %v2265_v60  ;;  %v2287_v49 = vadd.f32 %v2261_v43, %v2214_v10  ;;  %v91_v44 = vmul.f32 %v5106_v31, %v37_v17  ;;  %v161_v15 = vmul.f32 %v5134_v45, %v33_v25 }
  0xee   :  { %v2289_v57 = vadd.f32 %v2266_v56, %v2216_v62  ;;  %v118_v61 = vrot.slane %v87_v1, 1  ;;  %v119_v48 = vrot.slane %v89_v59, 1  ;;  %v163_v52 = vmul.f32 %v5134_v45, %v35_v21 }
  0xef   :  { %v123_v6 = vrot.slane %v91_v44, 1  ;;  %v165_v47 = vmul.f32 %v5134_v45, %v37_v17  ;;  %v192_v8 = vrot.slane %v161_v15, 2  ;;  %v235_v7 = vmul.f32 %v5140_v50, %v33_v25 }
  0xf0   :  { %v2337_v53 = vpack.c.bf16 %v2289_v57, %v2287_v49  ;;  %v120_v46 = vsel %vm104_vm0, %v118_v61, %v119_v48  ;;  %v193_v16 = vrot.slane %v163_v52, 2  ;;  %v237_v12 = vmul.f32 %v5140_v50, %v35_v21  ;;  %v4409_v61 = vld [vmem:[%s6519_s0 + $0x98] sm:$0xff] }
  0xf1   :  { %v124_v31 = vsel %vm104_vm0, %v119_v48, %v123_v6  ;;  %v138_v39 = vadd.f32 %v120_v46, %v56_v38  ;;  %v197_v9 = vrot.slane %v165_v47, 2  ;;  %v239_v5 = vmul.f32 %v5140_v50, %v37_v17  ;;  %v4410_v47 = vld [vmem:[%s6519_s0 + $0xa8] sm:$0xff] }
  0xf2   :  { %2826 = vmatmul.mubr.bf16.vlgmr.msra.gmra.mrb[0].mxu0 %v2337_v53  ;;  %v140_v10 = vadd.f32 %v124_v31, %v58_v11  ;;  %v194_v60 = vsel %vm178_vm1, %v192_v8, %v193_v16  ;;  %v266_v45 = vrot.slane %v235_v7, 3  ;;  %v267_v62 = vrot.slane %v237_v12, 3  ;;  %v4411_v8 = vld [vmem:[%s6519_s0 + $0xb8] sm:$0xf] }
  0xf3   :  { %v198_v43 = vsel %vm178_vm1, %v193_v16, %v197_v9  ;;  %v212_v1 = vadd.f32 %v194_v60, %v138_v39  ;;  %v271_v59 = vrot.slane %v239_v5, 3  ;;  %v309_v56 = vmul.f32 %v5174_v63, %v33_v25 }
  0xf4   :  { %v214_v49 = vadd.f32 %v198_v43, %v140_v10  ;;  %v268_v44 = vsel %vm252_vm2, %v266_v45, %v267_v62  ;;  %v311_v38 = vmul.f32 %v5174_v63, %v35_v21  ;;  %v313_v15 = vmul.f32 %v5174_v63, %v37_v17 }
  0xf5   :  { %v272_v50 = vsel %vm252_vm2, %v267_v62, %v271_v59  ;;  %v286_v11 = vadd.f32 %v268_v44, %v212_v1  ;;  %v340_v57 = vrot.slane %v309_v56, 4  ;;  %v394_v48 = vmul.f32 %v4409_v61, %v5185_v42  ;;  %v6605_v59 = vld [vmem:[#allocation11_spill] sm:$0xff] }
  0xf6   :  { %v288_v52 = vadd.f32 %v272_v50, %v214_v49  ;;  %v341_v6 = vrot.slane %v311_v38, 4  ;;  %v345_v25 = vrot.slane %v313_v15, 4  ;;  %v396_v21 = vmul.f32 %v4410_v47, %v5185_v42 }
  0xf7   :  { %v425_v63 = vmul.f32 %v4409_v61, %v4538_v24  ;;  %v427_v17 = vmul.f32 %v4410_v47, %v4538_v24  ;;  %v429_v7 = vmul.f32 %v4411_v8, %v4538_v24  ;;  %v498_v53 = vmul.f32 %v4409_v61, %v4550_v28 }
  0xf8   :  { %v342_v46 = vsel %vm326_vm3, %v340_v57, %v341_v6  ;;  %v346_v16 = vsel %vm326_vm3, %v341_v6, %v345_v25  ;;  %v500_v12 = vmul.f32 %v4410_v47, %v4550_v28  ;;  %v502_v42 = vmul.f32 %v4411_v8, %v4550_v28 }
  0xf9   :  { %v360_v31 = vadd.f32 %v342_v46, %v286_v11  ;;  %v362_v39 = vadd.f32 %v346_v16, %v288_v52  ;;  %v455_v9 = vrot.slane %v425_v63, 1  ;;  %v456_v5 = vrot.slane %v427_v17, 1  ;;  %v6607_v46 = vld [vmem:[#allocation13_spill] sm:$0xff] }
  0xfa   :  { %v460_v10 = vrot.slane %v429_v7, 1  ;;  %v528_v60 = vrot.slane %v498_v53, 2  ;;  %v529_v45 = vrot.slane %v500_v12, 2  ;;  %v533_v62 = vrot.slane %v502_v42, 2  ;;  %v4412_v53 = vld [vmem:[%s6519_s0 + $0xf8] sm:$0xff] }
  0xfb   :  { %v402_v43 = vadd.f32 %v394_v48, %v360_v31  ;;  %v404_v24 = vadd.f32 %v396_v21, %v362_v39  ;;  %v457_v1 = vsel %vm104_vm0, %v455_v9, %v456_v5  ;;  %v571_v56 = vmul.f32 %v4409_v61, %v6605_v59  ;;  %v6606_v48 = vld [vmem:[#allocation12_spill] sm:$0xff] }
  0xfc   :  { %v461_v49 = vsel %vm104_vm0, %v456_v5, %v460_v10  ;;  %v530_v44 = vsel %vm178_vm1, %v528_v60, %v529_v45  ;;  %v534_v28 = vsel %vm178_vm1, %v529_v45, %v533_v62  ;;  %v573_v38 = vmul.f32 %v4410_v47, %v6605_v59  ;;  %v6608_v5 = vld [vmem:[#allocation14_spill] sm:$0xff] }
  0xfd   :  { %v475_v15 = vadd.f32 %v457_v1, %v402_v43  ;;  %v477_v50 = vadd.f32 %v461_v49, %v404_v24  ;;  %v575_v11 = vmul.f32 %v4411_v8, %v6605_v59  ;;  %v601_v57 = vrot.slane %v571_v56, 3  ;;  %v4414_v1 = vld [vmem:[%s6519_s0 + $0x118] sm:$0xf]  ;;  %v6609_v49 = vld [vmem:[#allocation15_spill] sm:$0xff] }
  0xfe   :  { %v602_v52 = vrot.slane %v573_v38, 3  ;;  %v644_v6 = vmul.f32 %v4409_v61, %v6606_v48  ;;  %v646_v25 = vmul.f32 %v4410_v47, %v6606_v48  ;;  %v648_v21 = vmul.f32 %v4411_v8, %v6606_v48  ;;  %v4413_v47 = vld [vmem:[%s6519_s0 + $0x108] sm:$0xff]  ;;  %v6610_v48 = vld [vmem:[#allocation16_spill] sm:$0xff] }
  0xff   :  { %v548_v63 = vadd.f32 %v530_v44, %v475_v15  ;;  %v550_v17 = vadd.f32 %v534_v28, %v477_v50  ;;  %v606_v7 = vrot.slane %v575_v11, 3  ;;  %v926_v16 = vmul.f32 %v4412_v53, %v6607_v46 }
 0x100   :  { %v603_v12 = vsel %vm252_vm2, %v601_v57, %v602_v52  ;;  %v674_v42 = vrot.slane %v644_v6, 4  ;;  %v675_v31 = vrot.slane %v646_v25, 4  ;;  %v679_v39 = vrot.slane %v648_v21, 4 }
 0x101   :  { %v607_v61 = vsel %vm252_vm2, %v602_v52, %v606_v7  ;;  %v621_v9 = vadd.f32 %v603_v12, %v548_v63  ;;  %v928_v8 = vmul.f32 %v4413_v47, %v6607_v46  ;;  %v957_v10 = vmul.f32 %v4412_v53, %v6608_v5 }
 0x102   :  { %v623_v60 = vadd.f32 %v607_v61, %v550_v17  ;;  %v676_v45 = vsel %vm326_vm3, %v674_v42, %v675_v31  ;;  %v680_v62 = vsel %vm326_vm3, %v675_v31, %v679_v39  ;;  %v959_v43 = vmul.f32 %v4413_v47, %v6608_v5 }
 0x103   :  { %v694_v24 = vadd.f32 %v676_v45, %v621_v9  ;;  %v961_v59 = vmul.f32 %v4414_v1, %v6608_v5  ;;  %v987_v56 = vrot.slane %v957_v10, 1  ;;  %v1030_v44 = vmul.f32 %v4412_v53, %v6609_v49  ;;  %v6611_v10 = vld [vmem:[#allocation17_spill] sm:$0xff] }
 0x104   :  { %v696_v28 = vadd.f32 %v680_v62, %v623_v60  ;;  %v988_v38 = vrot.slane %v959_v43, 1  ;;  %v1032_v15 = vmul.f32 %v4413_v47, %v6609_v49  ;;  %v1034_v50 = vmul.f32 %v4414_v1, %v6609_v49 }
 0x105   :  { %v934_v11 = vadd.f32 %v926_v16, %v694_v24  ;;  %v992_v57 = vrot.slane %v961_v59, 1  ;;  %v1060_v52 = vrot.slane %v1030_v44, 2  ;;  %v1103_v6 = vmul.f32 %v4412_v53, %v6610_v48  ;;  %v4415_v24 = vld [vmem:[%s6519_s0 + $0x158] sm:$0xff]  ;;  %v6612_v59 = vld [vmem:[#allocation18_spill] sm:$0xff] }
 0x106   :  { %v936_v25 = vadd.f32 %v928_v8, %v696_v28  ;;  %v989_v21 = vsel %vm104_vm0, %v987_v56, %v988_v38  ;;  %v1061_v63 = vrot.slane %v1032_v15, 2  ;;  %v1065_v17 = vrot.slane %v1034_v50, 2 }
 0x107   :  { %v993_v7 = vsel %vm104_vm0, %v988_v38, %v992_v57  ;;  %v1007_v46 = vadd.f32 %v989_v21, %v934_v11  ;;  %v1105_v12 = vmul.f32 %v4413_v47, %v6610_v48  ;;  %v1107_v42 = vmul.f32 %v4414_v1, %v6610_v48  ;;  %v6613_v11 = vld [vmem:[#allocation19_spill] sm:$0xff]  ;;  %v4417_v48 = vld [vmem:[%s6519_s0 + $0x178] sm:$0xf] }
 0x108   :  { %v1009_v31 = vadd.f32 %v993_v7, %v936_v25  ;;  %v1062_v39 = vsel %vm178_vm1, %v1060_v52, %v1061_v63  ;;  %v1066_v16 = vsel %vm178_vm1, %v1061_v63, %v1065_v17  ;;  %v1133_v61 = vrot.slane %v1103_v6, 3  ;;  %v6614_v25 = vld [vmem:[#allocation20_spill] sm:$0xff] }
 0x109   :  { %v1080_v9 = vadd.f32 %v1062_v39, %v1007_v46  ;;  %v1134_v5 = vrot.slane %v1105_v12, 3  ;;  %v1138_v8 = vrot.slane %v1107_v42, 3  ;;  %v1176_v60 = vmul.f32 %v4412_v53, %v6611_v10  ;;  %v4416_v53 = vld [vmem:[%s6519_s0 + $0x168] sm:$0xff] }
 0x10a   :  { %v1082_v45 = vadd.f32 %v1066_v16, %v1009_v31  ;;  %v1178_v62 = vmul.f32 %v4413_v47, %v6611_v10  ;;  %v1180_v43 = vmul.f32 %v4414_v1, %v6611_v10  ;;  %v1459_v56 = vmul.f32 %v4415_v24, %v6612_v59 }
 0x10b   :  { %v1135_v49 = vsel %vm252_vm2, %v1133_v61, %v1134_v5  ;;  %v1139_v44 = vsel %vm252_vm2, %v1134_v5, %v1138_v8  ;;  %v1206_v28 = vrot.slane %v1176_v60, 4  ;;  %v1461_v38 = vmul.f32 %v4416_v53, %v6612_v59 }
 0x10c   :  { %v1153_v47 = vadd.f32 %v1135_v49, %v1080_v9  ;;  %v1155_v15 = vadd.f32 %v1139_v44, %v1082_v45  ;;  %v1207_v1 = vrot.slane %v1178_v62, 4  ;;  %v1211_v50 = vrot.slane %v1180_v43, 4  ;;  %v6615_v45 = vld [vmem:[#allocation21_spill] sm:$0xff] }
 0x10d   :  { %v1490_v57 = vmul.f32 %v4415_v24, %v6613_v11  ;;  %v1492_v52 = vmul.f32 %v4416_v53, %v6613_v11  ;;  %v1494_v6 = vmul.f32 %v4417_v48, %v6613_v11  ;;  %v1563_v21 = vmul.f32 %v4415_v24, %v6614_v25 }
 0x10e   :  { %v1208_v63 = vsel %vm326_vm3, %v1206_v28, %v1207_v1  ;;  %v1212_v17 = vsel %vm326_vm3, %v1207_v1, %v1211_v50  ;;  %v1565_v7 = vmul.f32 %v4416_v53, %v6614_v25  ;;  %v1567_v46 = vmul.f32 %v4417_v48, %v6614_v25  ;;  %v4049_v28 = vld [vmem:[%s6519_s0 + $0x1b8] sm:$0xff]  ;;  %v6616_v50 = vld [vmem:[#allocation22_spill] sm:$0xff] }
 0x10f   :  { %v1226_v12 = vadd.f32 %v1208_v63, %v1153_v47  ;;  %v1228_v42 = vadd.f32 %v1212_v17, %v1155_v15  ;;  %v1520_v31 = vrot.slane %v1490_v57, 1  ;;  %v1521_v39 = vrot.slane %v1492_v52, 1  ;;  %v6617_v17 = vld [vmem:[#allocation23_spill] sm:$0xff] }
 0x110   :  { %v1525_v16 = vrot.slane %v1494_v6, 1  ;;  %v1593_v61 = vrot.slane %v1563_v21, 2  ;;  %v1594_v9 = vrot.slane %v1565_v7, 2  ;;  %v1598_v5 = vrot.slane %v1567_v46, 2  ;;  %v4051_v6 = vld [vmem:[%s6519_s0 + $0x1c8] sm:$0xff] }
 0x111   :  { %v1467_v8 = vadd.f32 %v1459_v56, %v1226_v12  ;;  %v1469_v10 = vadd.f32 %v1461_v38, %v1228_v42  ;;  %v1522_v60 = vsel %vm104_vm0, %v1520_v31, %v1521_v39  ;;  %v1636_v62 = vmul.f32 %v4415_v24, %v6615_v45 }
 0x112   :  { %v1526_v43 = vsel %vm104_vm0, %v1521_v39, %v1525_v16  ;;  %v1595_v59 = vsel %vm178_vm1, %v1593_v61, %v1594_v9  ;;  %v1599_v49 = vsel %vm178_vm1, %v1594_v9, %v1598_v5  ;;  %v1638_v44 = vmul.f32 %v4416_v53, %v6615_v45  ;;  %v6618_v16 = vld [vmem:[#allocation24_spill] sm:$0xff] }
 0x113   :  { %v1540_v47 = vadd.f32 %v1522_v60, %v1467_v8  ;;  %v1542_v15 = vadd.f32 %v1526_v43, %v1469_v10  ;;  %v1640_v56 = vmul.f32 %v4417_v48, %v6615_v45  ;;  %v1666_v38 = vrot.slane %v1636_v62, 3  ;;  %v6619_v43 = vld [vmem:[#allocation25_spill] sm:$0xff] }
 0x114   :  { %v1667_v1 = vrot.slane %v1638_v44, 3  ;;  %v1709_v11 = vmul.f32 %v4415_v24, %v6616_v50  ;;  %v1711_v57 = vmul.f32 %v4416_v53, %v6616_v50  ;;  %v1713_v52 = vmul.f32 %v4417_v48, %v6616_v50  ;;  %v4053_v24 = vld [vmem:[%s6519_s0 + $0x1d8] sm:$0xf] }
 0x115   :  { %v1613_v25 = vadd.f32 %v1595_v59, %v1540_v47  ;;  %v1615_v21 = vadd.f32 %v1599_v49, %v1542_v15  ;;  %v1671_v63 = vrot.slane %v1640_v56, 3  ;;  %v1992_v7 = vmul.f32 %v4049_v28, %v6617_v17 }
 0x116   :  { %v1668_v46 = vsel %vm252_vm2, %v1666_v38, %v1667_v1  ;;  %v1739_v12 = vrot.slane %v1709_v11, 4  ;;  %v1740_v42 = vrot.slane %v1711_v57, 4  ;;  %v1744_v31 = vrot.slane %v1713_v52, 4 }
 0x117   :  { %v1672_v53 = vsel %vm252_vm2, %v1667_v1, %v1671_v63  ;;  %v1686_v48 = vadd.f32 %v1668_v46, %v1613_v25  ;;  %v1994_v39 = vmul.f32 %v4051_v6, %v6617_v17  ;;  %v2023_v61 = vmul.f32 %v4049_v28, %v6618_v16 }
 0x118   :  { %v1688_v9 = vadd.f32 %v1672_v53, %v1615_v21  ;;  %v1741_v5 = vsel %vm326_vm3, %v1739_v12, %v1740_v42  ;;  %v1745_v8 = vsel %vm326_vm3, %v1740_v42, %v1744_v31  ;;  %v2025_v10 = vmul.f32 %v4051_v6, %v6618_v16 }
 0x119   :  { %v1759_v60 = vadd.f32 %v1741_v5, %v1686_v48  ;;  %v2027_v45 = vmul.f32 %v4053_v24, %v6618_v16  ;;  %v2053_v62 = vrot.slane %v2023_v61, 1  ;;  %v2096_v59 = vmul.f32 %v4049_v28, %v6619_v43  ;;  %v32_v61 = vld [vmem:[%s6519_s0 + $0x30] sm:$0xff] }
 0x11a   :  { %v1761_v49 = vadd.f32 %v1745_v8, %v1688_v9  ;;  %v2054_v44 = vrot.slane %v2025_v10, 1  ;;  %v2098_v47 = vmul.f32 %v4051_v6, %v6619_v43  ;;  %v2100_v15 = vmul.f32 %v4053_v24, %v6619_v43  ;;  %v34_v8 = vld [vmem:[%s6519_s0 + $0x40] sm:$0xff]  ;;  %v36_v10 = vld [vmem:[%s6519_s0 + $0x50] sm:$0xf] }
 0x11b   :  { %v2000_v56 = vadd.f32 %v1992_v7, %v1759_v60  ;;  %v2058_v38 = vrot.slane %v2027_v45, 1  ;;  %v2126_v1 = vrot.slane %v2096_v59, 2  ;;  %v2169_v50 = vmul.f32 %v4049_v28, %v5452_v40 }
 0x11c   :  { %v2002_v11 = vadd.f32 %v1994_v39, %v1761_v49  ;;  %v2055_v57 = vsel %vm104_vm0, %v2053_v62, %v2054_v44  ;;  %v2127_v52 = vrot.slane %v2098_v47, 2  ;;  %v2131_v25 = vrot.slane %v2100_v15, 2 }
 0x11d   :  { %v2059_v21 = vsel %vm104_vm0, %v2054_v44, %v2058_v38  ;;  %v2073_v63 = vadd.f32 %v2055_v57, %v2000_v56  ;;  %v2171_v17 = vmul.f32 %v4051_v6, %v5452_v40  ;;  %v2173_v46 = vmul.f32 %v4053_v24, %v5452_v40 }
 0x11e   :  { %v2075_v12 = vadd.f32 %v2059_v21, %v2002_v11  ;;  %v2128_v42 = vsel %vm178_vm1, %v2126_v1, %v2127_v52  ;;  %v2132_v7 = vsel %vm178_vm1, %v2127_v52, %v2131_v25  ;;  %v2199_v31 = vrot.slane %v2169_v50, 3 }
 0x11f   :  { %v2146_v53 = vadd.f32 %v2128_v42, %v2073_v63  ;;  %v2200_v48 = vrot.slane %v2171_v17, 3  ;;  %v2204_v39 = vrot.slane %v2173_v46, 3  ;;  %v2242_v16 = vmul.f32 %v4049_v28, %v5459_v19 }
 0x120   :  { %v2148_v9 = vadd.f32 %v2132_v7, %v2075_v12  ;;  %v2244_v5 = vmul.f32 %v4051_v6, %v5459_v19  ;;  %v2246_v40 = vmul.f32 %v4053_v24, %v5459_v19  ;;  %v55_v60 = vmul.f32 %v5073_v13, %v32_v61 }
 0x121   :  { %v2201_v28 = vsel %vm252_vm2, %v2199_v31, %v2200_v48  ;;  %v2205_v45 = vsel %vm252_vm2, %v2200_v48, %v2204_v39  ;;  %v2272_v62 = vrot.slane %v2242_v16, 4  ;;  %v57_v43 = vmul.f32 %v5073_v13, %v34_v8 }
 0x122   :  { %v2219_v6 = vadd.f32 %v2201_v28, %v2146_v53  ;;  %v2221_v59 = vadd.f32 %v2205_v45, %v2148_v9  ;;  %v2273_v19 = vrot.slane %v2244_v5, 4  ;;  %v2277_v24 = vrot.slane %v2246_v40, 4 }
 0x123   :  { %v86_v49 = vmul.f32 %v5097_v58, %v32_v61  ;;  %v88_v44 = vmul.f32 %v5097_v58, %v34_v8  ;;  %v90_v47 = vmul.f32 %v5097_v58, %v36_v10  ;;  %v160_v15 = vmul.f32 %v5119_v36, %v32_v61 }
 0x124   :  { %v2274_v56 = vsel %vm326_vm3, %v2272_v62, %v2273_v19  ;;  %v2278_v38 = vsel %vm326_vm3, %v2273_v19, %v2277_v24  ;;  %v162_v1 = vmul.f32 %v5119_v36, %v34_v8  ;;  %v164_v13 = vmul.f32 %v5119_v36, %v36_v10 }
 0x125   :  { %v2292_v50 = vadd.f32 %v2274_v56, %v2219_v6  ;;  %v2294_v11 = vadd.f32 %v2278_v38, %v2221_v59  ;;  %v115_v57 = vrot.slane %v86_v49, 1  ;;  %v116_v52 = vrot.slane %v88_v44, 1  ;;  %v4418_v59 = vld [vmem:[%s6519_s0 + $0x90] sm:$0xff] }
 0x126   :  { %v121_v25 = vrot.slane %v90_v47, 1  ;;  %v189_v21 = vrot.slane %v160_v15, 2  ;;  %v190_v63 = vrot.slane %v162_v1, 2  ;;  %v195_v17 = vrot.slane %v164_v13, 2  ;;  %v4420_v38 = vld [vmem:[%s6519_s0 + $0xb0] sm:$0xf] }
 0x127   :  { %v2342_v46 = vpack.c.bf16 %v2294_v11, %v2292_v50  ;;  %v117_v58 = vsel %vm104_vm0, %v115_v57, %v116_v52  ;;  %v234_v12 = vmul.f32 %v5137_v2, %v32_v61  ;;  %v236_v42 = vmul.f32 %v5137_v2, %v34_v8 }
 0x128   :  { %v122_v7 = vsel %vm104_vm0, %v116_v52, %v121_v25  ;;  %v137_v31 = vadd.f32 %v117_v58, %v55_v60  ;;  %v191_v36 = vsel %vm178_vm1, %v189_v21, %v190_v63  ;;  %v196_v53 = vsel %vm178_vm1, %v190_v63, %v195_v17 }
 0x129   :  { %2835 = vmatprep.mubr.bf16.mxu0 %v2342_v46  ;;  %v139_v48 = vadd.f32 %v122_v7, %v57_v43  ;;  %v238_v39 = vmul.f32 %v5137_v2, %v36_v10  ;;  %v263_v16 = vrot.slane %v234_v12, 3  ;;  %v264_v9 = vrot.slane %v236_v42, 3 }
 0x12a   :  { %v211_v5 = vadd.f32 %v191_v36, %v137_v31  ;;  %v308_v40 = vmul.f32 %v5143_v55, %v32_v61  ;;  %v310_v28 = vmul.f32 %v5143_v55, %v34_v8  ;;  %v312_v45 = vmul.f32 %v5143_v55, %v36_v10  ;;  %v4419_v55 = vld [vmem:[%s6519_s0 + $0xa0] sm:$0xff] }
 0x12b   :  { %v213_v62 = vadd.f32 %v196_v53, %v139_v48  ;;  %v265_v60 = vsel %vm252_vm2, %v263_v16, %v264_v9  ;;  %v269_v6 = vrot.slane %v238_v39, 3  ;;  %v393_v43 = vmul.f32 %v4418_v59, %v5177_v26 }
 0x12c   :  { %v285_v2 = vadd.f32 %v265_v60, %v211_v5  ;;  %v337_v19 = vrot.slane %v308_v40, 4  ;;  %v338_v24 = vrot.slane %v310_v28, 4  ;;  %v343_v49 = vrot.slane %v312_v45, 4 }
 0x12d   :  { %v270_v61 = vsel %vm252_vm2, %v264_v9, %v269_v6  ;;  %v395_v8 = vmul.f32 %v4419_v55, %v5177_v26  ;;  %v424_v10 = vmul.f32 %v4418_v59, %v4535_v23  ;;  %v426_v44 = vmul.f32 %v4419_v55, %v4535_v23 }
 0x12e   :  { %v287_v47 = vadd.f32 %v270_v61, %v213_v62  ;;  %v339_v15 = vsel %vm326_vm3, %v337_v19, %v338_v24  ;;  %v344_v56 = vsel %vm326_vm3, %v338_v24, %v343_v49  ;;  %v428_v1 = vmul.f32 %v4420_v38, %v4535_v23  ;;  %v4422_v24 = vld [vmem:[%s6519_s0 + $0x100] sm:$0xff] }
 0x12f   :  { %v359_v13 = vadd.f32 %v339_v15, %v285_v2  ;;  %v452_v50 = vrot.slane %v424_v10, 1  ;;  %v453_v11 = vrot.slane %v426_v44, 1  ;;  %v497_v26 = vmul.f32 %v4418_v59, %v4547_v27 }
 0x130   :  { %v361_v57 = vadd.f32 %v344_v56, %v287_v47  ;;  %v458_v52 = vrot.slane %v428_v1, 1  ;;  %v499_v25 = vmul.f32 %v4419_v55, %v4547_v27  ;;  %v501_v21 = vmul.f32 %v4420_v38, %v4547_v27  ;;  %v4423_v47 = vld [vmem:[%s6519_s0 + $0x110] sm:$0xf] }
 0x131   :  { %v401_v63 = vadd.f32 %v393_v43, %v359_v13  ;;  %v454_v17 = vsel %vm104_vm0, %v452_v50, %v453_v11  ;;  %v525_v46 = vrot.slane %v497_v26, 2  ;;  %v570_v58 = vmul.f32 %v4418_v59, %v4757_v18 }
 0x132   :  { %v403_v12 = vadd.f32 %v395_v8, %v361_v57  ;;  %v459_v23 = vsel %vm104_vm0, %v453_v11, %v458_v52  ;;  %v526_v42 = vrot.slane %v499_v25, 2  ;;  %v531_v7 = vrot.slane %v501_v21, 2 }
 0x133   :  { %v474_v31 = vadd.f32 %v454_v17, %v401_v63  ;;  %v572_v36 = vmul.f32 %v4419_v55, %v4757_v18  ;;  %v574_v53 = vmul.f32 %v4420_v38, %v4757_v18  ;;  %v598_v48 = vrot.slane %v570_v58, 3  ;;  %v4421_v18 = vld [vmem:[%s6519_s0 + $0xf0] sm:$0xff] }
 0x134   :  { %v476_v39 = vadd.f32 %v459_v23, %v403_v12  ;;  %v527_v27 = vsel %vm178_vm1, %v525_v46, %v526_v42  ;;  %v532_v16 = vsel %vm178_vm1, %v526_v42, %v531_v7  ;;  %v643_v9 = vmul.f32 %v4418_v59, %v4762_v22 }
 0x135   :  { %v547_v5 = vadd.f32 %v527_v27, %v474_v31  ;;  %v599_v40 = vrot.slane %v572_v36, 3  ;;  %v604_v28 = vrot.slane %v574_v53, 3  ;;  %v645_v45 = vmul.f32 %v4419_v55, %v4762_v22 }
 0x136   :  { %v549_v62 = vadd.f32 %v532_v16, %v476_v39  ;;  %v647_v60 = vmul.f32 %v4420_v38, %v4762_v22  ;;  %v671_v6 = vrot.slane %v643_v9, 4  ;;  %v925_v43 = vmul.f32 %v4421_v18, %v5254_v3 }
 0x137   :  { %v600_v2 = vsel %vm252_vm2, %v598_v48, %v599_v40  ;;  %v605_v19 = vsel %vm252_vm2, %v599_v40, %v604_v28  ;;  %v672_v59 = vrot.slane %v645_v45, 4  ;;  %v927_v49 = vmul.f32 %v4422_v24, %v5254_v3  ;;  %v4424_v28 = vld [vmem:[%s6519_s0 + $0x150] sm:$0xff] }
 0x138   :  { %v620_v61 = vadd.f32 %v600_v2, %v547_v5  ;;  %v622_v22 = vadd.f32 %v605_v19, %v549_v62  ;;  %v677_v55 = vrot.slane %v647_v60, 4  ;;  %v956_v8 = vmul.f32 %v4421_v18, %v6599_v4 }
 0x139   :  { %v673_v10 = vsel %vm326_vm3, %v671_v6, %v672_v59  ;;  %v958_v44 = vmul.f32 %v4422_v24, %v6599_v4  ;;  %v960_v15 = vmul.f32 %v4423_v47, %v6599_v4  ;;  %v1029_v56 = vmul.f32 %v4421_v18, %v6600_v54  ;;  %v4425_v6 = vld [vmem:[%s6519_s0 + $0x160] sm:$0xff] }
 0x13a   :  { %v678_v38 = vsel %vm326_vm3, %v672_v59, %v677_v55  ;;  %v693_v3 = vadd.f32 %v673_v10, %v620_v61  ;;  %v984_v1 = vrot.slane %v956_v8, 1  ;;  %v1031_v13 = vmul.f32 %v4422_v24, %v6600_v54 }
 0x13b   :  { %v695_v50 = vadd.f32 %v678_v38, %v622_v22  ;;  %v985_v11 = vrot.slane %v958_v44, 1  ;;  %v990_v26 = vrot.slane %v960_v15, 1  ;;  %v1033_v57 = vmul.f32 %v4423_v47, %v6600_v54 }
 0x13c   :  { %v933_v52 = vadd.f32 %v925_v43, %v693_v3  ;;  %v1057_v25 = vrot.slane %v1029_v56, 2  ;;  %v1058_v21 = vrot.slane %v1031_v13, 2  ;;  %v1102_v63 = vmul.f32 %v4421_v18, %v5272_v32 }
 0x13d   :  { %v935_v17 = vadd.f32 %v927_v49, %v695_v50  ;;  %v986_v4 = vsel %vm104_vm0, %v984_v1, %v985_v11  ;;  %v991_v46 = vsel %vm104_vm0, %v985_v11, %v990_v26  ;;  %v1063_v58 = vrot.slane %v1033_v57, 2  ;;  %v4426_v49 = vld [vmem:[%s6519_s0 + $0x170] sm:$0xf] }
 0x13e   :  { %v1006_v12 = vadd.f32 %v986_v4, %v933_v52  ;;  %v1059_v23 = vsel %vm178_vm1, %v1057_v25, %v1058_v21  ;;  %v1104_v42 = vmul.f32 %v4422_v24, %v5272_v32  ;;  %v1106_v7 = vmul.f32 %v4423_v47, %v5272_v32 }
 0x13f   :  { %v1008_v31 = vadd.f32 %v991_v46, %v935_v17  ;;  %v1064_v54 = vsel %vm178_vm1, %v1058_v21, %v1063_v58  ;;  %v1130_v36 = vrot.slane %v1102_v63, 3  ;;  %v1175_v53 = vmul.f32 %v4421_v18, %v5301_v29  ;;  %v4050_v58 = vld [vmem:[%s6519_s0 + $0x1c0] sm:$0xff] }
 0x140   :  { %v1079_v48 = vadd.f32 %v1059_v23, %v1006_v12  ;;  %v1131_v39 = vrot.slane %v1104_v42, 3  ;;  %v1136_v27 = vrot.slane %v1106_v7, 3  ;;  %v1177_v16 = vmul.f32 %v4422_v24, %v5301_v29 }
 0x141   :  { %v1081_v9 = vadd.f32 %v1064_v54, %v1008_v31  ;;  %v1179_v5 = vmul.f32 %v4423_v47, %v5301_v29  ;;  %v1203_v40 = vrot.slane %v1175_v53, 4  ;;  %v1458_v32 = vmul.f32 %v4424_v28, %v5322_v33 }
 0x142   :  { %v1132_v45 = vsel %vm252_vm2, %v1130_v36, %v1131_v39  ;;  %v1137_v62 = vsel %vm252_vm2, %v1131_v39, %v1136_v27  ;;  %v1204_v60 = vrot.slane %v1177_v16, 4  ;;  %v1460_v18 = vmul.f32 %v4425_v6, %v5322_v33  ;;  %v4052_v36 = vld [vmem:[%s6519_s0 + $0x1d0] sm:$0xf] }
 0x143   :  { %v1152_v43 = vadd.f32 %v1132_v45, %v1079_v48  ;;  %v1154_v29 = vadd.f32 %v1137_v62, %v1081_v9  ;;  %v1209_v2 = vrot.slane %v1179_v5, 4  ;;  %v1489_v19 = vmul.f32 %v4424_v28, %v5333_v14 }
 0x144   :  { %v1205_v59 = vsel %vm326_vm3, %v1203_v40, %v1204_v60  ;;  %v1491_v24 = vmul.f32 %v4425_v6, %v5333_v14  ;;  %v1493_v61 = vmul.f32 %v4426_v49, %v5333_v14  ;;  %v1562_v22 = vmul.f32 %v4424_v28, %v5352_v0 }
 0x145   :  { %v1210_v55 = vsel %vm326_vm3, %v1204_v60, %v1209_v2  ;;  %v1225_v33 = vadd.f32 %v1205_v59, %v1152_v43  ;;  %v1517_v8 = vrot.slane %v1489_v19, 1  ;;  %v1564_v10 = vmul.f32 %v4425_v6, %v5352_v0 }
 0x146   :  { %v1227_v44 = vadd.f32 %v1210_v55, %v1154_v29  ;;  %v1518_v47 = vrot.slane %v1491_v24, 1  ;;  %v1523_v15 = vrot.slane %v1493_v61, 1  ;;  %v1566_v56 = vmul.f32 %v4426_v49, %v5352_v0  ;;  %v4048_v0 = vld [vmem:[%s6519_s0 + $0x1b0] sm:$0xff] }
 0x147   :  { %v1466_v38 = vadd.f32 %v1458_v32, %v1225_v33  ;;  %v1590_v3 = vrot.slane %v1562_v22, 2  ;;  %v1591_v1 = vrot.slane %v1564_v10, 2  ;;  %v1635_v13 = vmul.f32 %v4424_v28, %v5358_v51 }
 0x148   :  { %v1468_v50 = vadd.f32 %v1460_v18, %v1227_v44  ;;  %v1519_v14 = vsel %vm104_vm0, %v1517_v8, %v1518_v47  ;;  %v1524_v11 = vsel %vm104_vm0, %v1518_v47, %v1523_v15  ;;  %v1596_v26 = vrot.slane %v1566_v56, 2 }
 0x149   :  { %v1539_v57 = vadd.f32 %v1519_v14, %v1466_v38  ;;  %v1592_v52 = vsel %vm178_vm1, %v1590_v3, %v1591_v1  ;;  %v1637_v25 = vmul.f32 %v4425_v6, %v5358_v51  ;;  %v1639_v21 = vmul.f32 %v4426_v49, %v5358_v51  ;;  %v2909_v3 = vld [vmem:[%s6521_s4 + $0x80] sm:$0xff] }
 0x14a   :  { %v1541_v63 = vadd.f32 %v1524_v11, %v1468_v50  ;;  %v1597_v17 = vsel %vm178_vm1, %v1591_v1, %v1596_v26  ;;  %v1663_v4 = vrot.slane %v1635_v13, 3  ;;  %v1708_v46 = vmul.f32 %v4424_v28, %v5389_v37  ;;  %v2910_v1 = vld [vmem:[%s6521_s4 + $0x88] sm:$0xff] }
 0x14b   :  { %v1612_v12 = vadd.f32 %v1592_v52, %v1539_v57  ;;  %v1664_v23 = vrot.slane %v1637_v25, 3  ;;  %v1669_v42 = vrot.slane %v1639_v21, 3  ;;  %v1710_v7 = vmul.f32 %v4425_v6, %v5389_v37  ;;  %v2894_v25 = vld [vmem:[%s6521_s4 + $0x8] sm:$0xff]  ;;  %v2911_v21 = vld [vmem:[%s6521_s4 + $0x90] sm:$0xff] }
 0x14c   :  { %v1614_v51 = vadd.f32 %v1597_v17, %v1541_v63  ;;  %v1712_v31 = vmul.f32 %v4426_v49, %v5389_v37  ;;  %v1736_v54 = vrot.slane %v1708_v46, 4  ;;  %v1991_v53 = vmul.f32 %v4048_v0, %v5401_v30 }
 0x14d   :  { %v1665_v48 = vsel %vm252_vm2, %v1663_v4, %v1664_v23  ;;  %v1670_v39 = vsel %vm252_vm2, %v1664_v23, %v1669_v42  ;;  %v1737_v27 = vrot.slane %v1710_v7, 4  ;;  %v1993_v16 = vmul.f32 %v4050_v58, %v5401_v30  ;;  %v2895_v23 = vld [vmem:[%s6521_s4 + $0x10] sm:$0xff]  ;;  %v2896_v42 = vld [vmem:[%s6521_s4 + $0x18] sm:$0xff] }
 0x14e   :  { %v1685_v9 = vadd.f32 %v1665_v48, %v1612_v12  ;;  %v1687_v5 = vadd.f32 %v1670_v39, %v1614_v51  ;;  %v1742_v40 = vrot.slane %v1712_v31, 4  ;;  %v2022_v28 = vmul.f32 %v4048_v0, %v5409_v41 }
 0x14f   :  { %v1738_v37 = vsel %vm326_vm3, %v1736_v54, %v1737_v27  ;;  %v2024_v32 = vmul.f32 %v4050_v58, %v5409_v41  ;;  %v2026_v45 = vmul.f32 %v4052_v36, %v5409_v41  ;;  %v2095_v62 = vmul.f32 %v4048_v0, %v5426_v34 }
 0x150   :  { %v1743_v60 = vsel %vm326_vm3, %v1737_v27, %v1742_v40  ;;  %v1758_v6 = vadd.f32 %v1738_v37, %v1685_v9  ;;  %v2050_v18 = vrot.slane %v2022_v28, 1  ;;  %v2097_v43 = vmul.f32 %v4050_v58, %v5426_v34  ;;  %v2913_v27 = vld [vmem:[%s6521_s4 + $0xa0] sm:$0xff]  ;;  %v2898_v40 = vld [vmem:[%s6521_s4 + $0x28] sm:$0xff]  ;;  %v2915_v37 = vld [vmem:[%s6521_s4 + $0xb0] sm:$0xff] }
 0x151   :  { %v1760_v30 = vadd.f32 %v1743_v60, %v1687_v5  ;;  %v2051_v29 = vrot.slane %v2024_v32, 1  ;;  %v2056_v2 = vrot.slane %v2026_v45, 1  ;;  %v2099_v19 = vmul.f32 %v4052_v36, %v5426_v34  ;;  %v2897_v5 = vld [vmem:[%s6521_s4 + $0x20] sm:$0xff]  ;;  %v2916_v32 = vld [vmem:[%s6521_s4 + $0xb8] sm:$0xff] }
 0x152   :  { %v1999_v59 = vadd.f32 %v1991_v53, %v1758_v6  ;;  %v2123_v24 = vrot.slane %v2095_v62, 2  ;;  %v2124_v49 = vrot.slane %v2097_v43, 2  ;;  %v2168_v61 = vmul.f32 %v4048_v0, %v5447_v20  ;;  %v2899_v62 = vld [vmem:[%s6521_s4 + $0x30] sm:$0xff]  ;;  %v2900_v60 = vld [vmem:[%s6521_s4 + $0x38] sm:$0xff]  ;;  %v2918_v43 = vld [vmem:[%s6521_s4 + $0xc8] sm:$0xff] }
 0x153   :  { %v2001_v22 = vadd.f32 %v1993_v16, %v1760_v30  ;;  %v2052_v41 = vsel %vm104_vm0, %v2050_v18, %v2051_v29  ;;  %v2057_v55 = vsel %vm104_vm0, %v2051_v29, %v2056_v2  ;;  %v2129_v33 = vrot.slane %v2099_v19, 2  ;;  %v2914_v16 = vld [vmem:[%s6521_s4 + $0xa8] sm:$0xff]  ;;  %v2917_v18 = vld [vmem:[%s6521_s4 + $0xc0] sm:$0xff] }
 0x154   :  { %v2072_v8 = vadd.f32 %v2052_v41, %v1999_v59  ;;  %v2125_v10 = vsel %vm178_vm1, %v2123_v24, %v2124_v49  ;;  %v2170_v44 = vmul.f32 %v4050_v58, %v5447_v20  ;;  %v2172_v47 = vmul.f32 %v4052_v36, %v5447_v20  ;;  %v2893_v20 = vld [vmem:[%s6521_s4] sm:$0xff]  ;;  %v2902_v2 = vld [vmem:[%s6521_s4 + $0x48] sm:$0xff]  ;;  %v2919_v59 = vld [vmem:[%s6521_s4 + $0xd0] sm:$0xff] }
 0x155   :  { %v2074_v15 = vadd.f32 %v2057_v55, %v2001_v22  ;;  %v2130_v34 = vsel %vm178_vm1, %v2124_v49, %v2129_v33  ;;  %v2196_v56 = vrot.slane %v2168_v61, 3  ;;  %v2241_v38 = vmul.f32 %v4048_v0, %v5456_v35  ;;  %v2912_v0 = vld [vmem:[%s6521_s4 + $0x98] sm:$0xff]  ;;  %v2901_v29 = vld [vmem:[%s6521_s4 + $0x40] sm:$0xff]  ;;  %v2903_v61 = vld [vmem:[%s6521_s4 + $0x50] sm:$0xff] }
 0x156   :  { %v2145_v13 = vadd.f32 %v2125_v10, %v2072_v8  ;;  %v2197_v50 = vrot.slane %v2170_v44, 3  ;;  %v2202_v14 = vrot.slane %v2172_v47, 3  ;;  %v2243_v11 = vmul.f32 %v4050_v58, %v5456_v35  ;;  %v2920_v24 = vld [vmem:[%s6521_s4 + $0xd8] sm:$0xff]  ;;  %v2921_v55 = vld [vmem:[%s6521_s4 + $0xe0] sm:$0xff]  ;;  %v2922_v33 = vld [vmem:[%s6521_s4 + $0xe8] sm:$0xff] }
 0x157   :  { %v2147_v26 = vadd.f32 %v2130_v34, %v2074_v15  ;;  %v2245_v57 = vmul.f32 %v4052_v36, %v5456_v35  ;;  %v2269_v52 = vrot.slane %v2241_v38, 4  ;;  %v4192_v46 = vpack.c.bf16 %v2910_v1, %v2909_v3  ;;  %v2904_v22 = vld [vmem:[%s6521_s4 + $0x58] sm:$0xff]  ;;  %v2905_v8 = vld [vmem:[%s6521_s4 + $0x60] sm:$0xff]  ;;  %v2906_v44 = vld [vmem:[%s6521_s4 + $0x68] sm:$0xff] }
 0x158   :  { %v2198_v63 = vsel %vm252_vm2, %v2196_v56, %v2197_v50  ;;  %v2203_v17 = vsel %vm252_vm2, %v2197_v50, %v2202_v14  ;;  %v2270_v4 = vrot.slane %v2243_v11, 4  ;;  %v4194_v51 = vpack.c.bf16 %v2894_v25, %v2893_v20  ;;  %v2923_v47 = vld [vmem:[%s6521_s4 + $0xf0] sm:$0xff]  ;;  %v2924_v15 = vld [vmem:[%s6521_s4 + $0xf8] sm:$0xff]  ;;  %v4059_v20 = vld [vmem:[%s6520_s1 + $0x42] ss:$8 sm:$0x3] }
 0x159   :  { %v2218_v35 = vadd.f32 %v2198_v63, %v2145_v13  ;;  %v2220_v58 = vadd.f32 %v2203_v17, %v2147_v26  ;;  %v2275_v12 = vrot.slane %v2245_v57, 4  ;;  %4193 = vmatprep.subr.bf16.mxu1 %v4192_v46  ;;  %v4196_v31 = vpack.c.bf16 %v2912_v0, %v2911_v21  ;;  %v2907_v38 = vld [vmem:[%s6521_s4 + $0x70] sm:$0xff]  ;;  %v2908_v3 = vld [vmem:[%s6521_s4 + $0x78] sm:$0xff]  ;;  %v6620_v26 = vld [vmem:[#allocation3_spill] sm:$0xff] }
 0x15a   :  { %v2271_v7 = vsel %vm326_vm3, %v2269_v52, %v2270_v4  ;;  %4195 = vmatpush3.bf16.msra.mxu1 %v4194_v51  ;;  %v4198_v48 = vpack.c.bf16 %v2896_v42, %v2895_v23  ;;  %v4200_v9 = vpack.c.bf16 %v2914_v16, %v2913_v27  ;;  %v4202_v28 = vpack.c.bf16 %v2898_v40, %v2897_v5  ;;  %v6621_v52 = vld [vmem:[#allocation4_spill] sm:$0xff] }
 0x15b   :  { %v2276_v54 = vsel %vm326_vm3, %v2270_v4, %v2275_v12  ;;  %v2291_v36 = vadd.f32 %v2271_v7, %v2218_v35  ;;  %4197 = vmatprep.subr.bf16.mxu1 %v4196_v31  ;;  %v4204_v45 = vpack.c.bf16 %v2916_v32, %v2915_v37  ;;  %v4206_v6 = vpack.c.bf16 %v2900_v60, %v2899_v62 }
 0x15c   :  { %v2293_v53 = vadd.f32 %v2276_v54, %v2220_v58  ;;  %v4208_v30 = vpack.c.bf16 %v2918_v43, %v2917_v18  ;;  %v4210_v19 = vpack.c.bf16 %v2902_v2, %v2901_v29  ;;  %v4212_v49 = vpack.c.bf16 %v2920_v24, %v2919_v59 }
 0x15d   :  { %v4214_v41 = vpack.c.bf16 %v2904_v22, %v2903_v61  ;;  %v4216_v10 = vpack.c.bf16 %v2922_v33, %v2921_v55  ;;  %v4218_v34 = vpack.c.bf16 %v2906_v44, %v2905_v8  ;;  %v4220_v56 = vpack.c.bf16 %v2924_v15, %v2923_v47 }
 0x15e   :  { %v2341_v39 = vpack.c.bf16 %v2293_v53, %v2291_v36  ;;  %4199 = vmatpush3.bf16.msra.mxu1 %v4198_v48  ;;  %v4222_v1 = vpack.c.bf16 %v2908_v3, %v2907_v38  ;;  %v2413_v57 = vrot.slane %v4059_v20, %v6620_v26  ;;  %v2417_v25 = vrot.slane %v4059_v20, %v6621_v52  ;;  %v3019_v20 = vld [vmem:[%s6522_s5 + $0x18] sm:$0xff] }
 0x15f   :  { %4201 = vmatprep.subr.bf16.mxu1 %v4200_v9 }
 0x160   :  { %2836 = vmatmul.mubr.bf16.gmra.mrb[4].mxu0 %v2341_v39 }
 0x162   :  { %4203 = vmatpush3.bf16.msra.mxu1 %v4202_v28 }
 0x163   :  { %4205 = vmatprep.subr.bf16.mxu1 %v4204_v45 }
 0x166   :  { %4207 = vmatpush3.bf16.msra.mxu1 %v4206_v6 }
 0x167   :  { %4209 = vmatprep.subr.bf16.mxu1 %v4208_v30 }
 0x16a   :  { %4211 = vmatpush3.bf16.msra.mxu1 %v4210_v19 }
 0x16b   :  { %4213 = vmatprep.subr.bf16.mxu1 %v4212_v49 }
 0x16e   :  { %4215 = vmatpush3.bf16.msra.mxu1 %v4214_v41 }
 0x16f   :  { %4217 = vmatprep.subr.bf16.mxu1 %v4216_v10 }
 0x172   :  { %4219 = vmatpush3.bf16.msra.mxu1 %v4218_v34 }
 0x173   :  { %4221 = vmatprep.subr.bf16.mxu1 %v4220_v56 }
 0x176   :  { %4223 = vmatpush3.bf16.msra.mxu1 %v4222_v1 }
 0x1c5   :  { %v2827_v13 = vpop.f32.mrb[0].mxu0 }
 0x1c6   :  { %v2829_v50 = vpop.f32.mrb[1].mxu0  ;;  %v6043_v63 = vadd.f32 %v2827_v13, %v2413_v57 }
 0x1c7   :  { %v2831_v14 = vpop.f32.mrb[2].mxu0  ;;  %v6045_v17 = vadd.f32 %v2829_v50, %v2417_v25 }
 0x1c8   :  { %v2833_v11 = vpop.f32.mrb[3].mxu0  ;;  %v6039_v21 = vadd.f32 %v2831_v14, %v2413_v57  ;;  %v2864_v58 = vmul.f32 %v6043_v63, %v6043_v63 }
 0x1c9   :  { %v6041_v0 = vadd.f32 %v2833_v11, %v2417_v25  ;;  %v2865_v7 = vmul.f32 %v6045_v17, %v6045_v17  ;;  %v3017_v11 = vld [vmem:[%s6522_s5 + $0x8] sm:$0xff] }
 0x1ca   :  { %v2866_v4 = vmul.f32 %v6039_v21, %v6039_v21  ;;  %v2846_v12 = vadd.f32 %v6039_v21, %v6043_v63 }
 0x1cb   :  { %v2867_v46 = vmul.f32 %v6041_v0, %v6041_v0  ;;  %v2855_v51 = vadd.f32 %v6041_v0, %v6045_v17 }
 0x1cc   :  { %v2872_v36 = vadd.f32 %v2866_v4, %v2864_v58  ;;  %v3018_v4 = vld [vmem:[%s6522_s5 + $0x10] sm:$0xff]  ;;  %v4344_v58 = vld [vmem:[%s6523_s6 + $0x4] ss:$8 sps:$4 sm:$0xff]  }
 0x1cd   :  { %v2881_v16 = vadd.f32 %v2867_v46, %v2865_v7 }
 0x233   :  { %v2837_v35 = vpop.f32.mrb[4].mxu0 }
 0x234   :  { %v6055_v23 = vadd.f32 %v2837_v35, %v2413_v57  ;;  %v2839_v42 = vpop.f32.mrb[5].mxu0  ;;  %v4427_v35 = vmov 0.0  }
 0x235   :  { %v6061_v31 = vadd.f32 %v2839_v42, %v2417_v25  ;;  %v2841_v54 = vpop.f32.mrb[6].mxu0 }
 0x236   :  { %v2847_v53 = vadd.f32 %v6055_v23, %v2846_v12  ;;  %v2868_v48 = vmul.f32 %v6055_v23, %v6055_v23  ;;  %v6066_v39 = vadd.f32 %v2841_v54, %v2413_v57  ;;  %v2843_v27 = vpop.f32.mrb[7].mxu0  ;;  %v4224_v57 = vpack.c.bf16 %v3019_v20, %v3017_v11  ;;  %v4389_v11 = vld [vmem:[%s6523_s6 + $0xf4] ss:$8 sps:$4 sm:$0xff]   ;;  %v4387_v20 = vld [vmem:[%s6523_s6 + $0xf0] ss:$8 sps:$4 sm:$0xff]  }
 0x237   :  { %v2856_v9 = vadd.f32 %v6061_v31, %v2855_v51  ;;  %v2869_v5 = vmul.f32 %v6061_v31, %v6061_v31  ;;  %v6071_v40 = vadd.f32 %v2843_v27, %v2417_v25  ;;  %v3016_v25 = vld [vmem:[%s6522_s5] sm:$0xff] }
 0x238   :  { %v2873_v28 = vadd.f32 %v2872_v36, %v2868_v48  ;;  %v2848_v37 = vadd.f32 %v6066_v39, %v2847_v53  ;;  %v2870_v32 = vmul.f32 %v6066_v39, %v6066_v39  ;;  %v4226_v46 = vpack.c.bf16 %v3018_v4, %v3016_v25  ;;  %4225 = vmatprep.subr.bf16.mxu1 %v4224_v57 }
 0x239   :  { %v2882_v45 = vadd.f32 %v2881_v16, %v2869_v5  ;;  %v2857_v62 = vadd.f32 %v6071_v40, %v2856_v9  ;;  %v2871_v60 = vmul.f32 %v6071_v40, %v6071_v40  ;;  %v3002_v16 = vld [vmem:[%s6524_s3] sm:$0x1]  ;;  %v4428_v57 = vmov 1983009808  }
 0x23a   :  { %v2849_v6 = vrot.slane %v2848_v37, 4  ;;  %v2874_v18 = vadd.f32 %v2873_v28, %v2870_v32  ;;  %v3009_v28 = vld [vmem:[%s6524_s3 + $0x1] sm:$0x1]  ;;  %v3146_v25 = vunpack.c.l.s4 %v4428_v57 }
 0x23b   :  { %v2858_v43 = vrot.slane %v2857_v62, 4  ;;  %v2883_v30 = vadd.f32 %v2882_v45, %v2871_v60  ;;  %v4347_v60 = vld [vmem:[%s6523_s6 + $0x14] ss:$8 sps:$4 sm:$0xff]  }
 0x23c   :  { %v2850_v29 = vadd.f32 %v2849_v6, %v2848_v37  ;;  %v2875_v2 = vrot.slane %v2874_v18, 4  ;;  %v3147_v4 = vunpack.c.0.s8 %v3146_v25 }
 0x23d   :  { %v2859_v19 = vadd.f32 %v2858_v43, %v2857_v62  ;;  %v2884_v59 = vrot.slane %v2883_v30, 4  ;;  %v4342_v62 = vld [vmem:[%s6523_s6] ss:$8 sps:$4 sm:$0xff]   ;;  %v4350_v43 = vld [vmem:[%s6523_s6 + $0x24] ss:$8 sps:$4 sm:$0xff]  }
 0x23e   :  { %v2851_v24 = vrot.slane %v2850_v29, 2  ;;  %v2876_v49 = vadd.f32 %v2875_v2, %v2874_v18  ;;  %v4345_v18 = vld [vmem:[%s6523_s6 + $0x10] ss:$8 sps:$4 sm:$0xff]  }
 0x23f   :  { %v2860_v61 = vrot.slane %v2859_v19, 2  ;;  %v2885_v22 = vadd.f32 %v2884_v59, %v2883_v30  ;;  %v4348_v30 = vld [vmem:[%s6523_s6 + $0x20] ss:$8 sps:$4 sm:$0xff]   ;;  %v4351_v2 = vld [vmem:[%s6523_s6 + $0x30] ss:$8 sps:$4 sm:$0xff]  }
 0x240   :  { %v2852_v41 = vadd.f32 %v2851_v24, %v2850_v29  ;;  %v2877_v55 = vrot.slane %v2876_v49, 2  ;;  %v4353_v29 = vld [vmem:[%s6523_s6 + $0x34] ss:$8 sps:$4 sm:$0xff]   ;;  %v4354_v59 = vld [vmem:[%s6523_s6 + $0x40] ss:$8 sps:$4 sm:$0xff]  }
 0x241   :  { %v2861_v33 = vadd.f32 %v2860_v61, %v2859_v19  ;;  %v2886_v8 = vrot.slane %v2885_v22, 2  ;;  %v4356_v19 = vld [vmem:[%s6523_s6 + $0x44] ss:$8 sps:$4 sm:$0xff]   ;;  %v4359_v24 = vld [vmem:[%s6523_s6 + $0x54] ss:$8 sps:$4 sm:$0xff]  }
 0x242   :  { %v2878_v10 = vadd.f32 %v2877_v55, %v2876_v49  ;;  %v2853_v15 = vrot.slane %v2852_v41, 1  ;;  %v4357_v49 = vld [vmem:[%s6523_s6 + $0x50] ss:$8 sps:$4 sm:$0xff]   ;;  %v4362_v61 = vld [vmem:[%s6523_s6 + $0x64] ss:$8 sps:$4 sm:$0xff]  }
 0x243   :  { %v2862_v44 = vrot.slane %v2861_v33, 1  ;;  %v2887_v47 = vadd.f32 %v2886_v8, %v2885_v22  ;;  %v4360_v22 = vld [vmem:[%s6523_s6 + $0x60] ss:$8 sps:$4 sm:$0xff]   ;;  %v4363_v55 = vld [vmem:[%s6523_s6 + $0x70] ss:$8 sps:$4 sm:$0xff]  }
 0x244   :  { %v2879_v34 = vrot.slane %v2878_v10, 1  ;;  %v2854_v13 = vadd.f32 %v2853_v15, %v2852_v41  ;;  %v4365_v41 = vld [vmem:[%s6523_s6 + $0x74] ss:$8 sps:$4 sm:$0xff]   ;;  %v4366_v8 = vld [vmem:[%s6523_s6 + $0x80] ss:$8 sps:$4 sm:$0xff]  }
 0x245   :  { %v2888_v56 = vrot.slane %v2887_v47, 1  ;;  %v2863_v3 = vadd.f32 %v2862_v44, %v2861_v33  ;;  %v4368_v33 = vld [vmem:[%s6523_s6 + $0x84] ss:$8 sps:$4 sm:$0xff]   ;;  %v4369_v44 = vld [vmem:[%s6523_s6 + $0x90] ss:$8 sps:$4 sm:$0xff]  }
 0x246   :  { %v2880_v38 = vadd.f32 %v2879_v34, %v2878_v10  ;;  %v4371_v10 = vld [vmem:[%s6523_s6 + $0x94] ss:$8 sps:$4 sm:$0xff]   ;;  %v4374_v15 = vld [vmem:[%s6523_s6 + $0xa4] ss:$8 sps:$4 sm:$0xff]  }
 0x247   :  { %v2889_v1 = vadd.f32 %v2888_v56, %v2887_v47  ;;  %v4372_v47 = vld [vmem:[%s6523_s6 + $0xa0] ss:$8 sps:$4 sm:$0xff]   ;;  %v4377_v34 = vld [vmem:[%s6523_s6 + $0xb4] ss:$8 sps:$4 sm:$0xff]   ;;  %v4375_v56 = vld [vmem:[%s6523_s6 + $0xb0] ss:$8 sps:$4 sm:$0xff]  }
 0x248   :  { %v2891_v14 = vsel %vm2890_vm4, %v2854_v13, %v2880_v38  ;;  %v4380_v38 = vld [vmem:[%s6523_s6 + $0xc4] ss:$8 sps:$4 sm:$0xff]   ;;  %v4381_v13 = vld [vmem:[%s6523_s6 + $0xd0] ss:$8 sps:$4 sm:$0xff]  }
 0x249   :  { %v2892_v50 = vsel %vm2890_vm4, %v2863_v3, %v2889_v1  ;;  %v4378_v3 = vld [vmem:[%s6523_s6 + $0xc0] ss:$8 sps:$4 sm:$0xff]   ;;  %v4383_v1 = vld [vmem:[%s6523_s6 + $0xd4] ss:$8 sps:$4 sm:$0xff]  }
 0x24a   :  { %2989 = vmatprep.mubr.f32.mxu1 %v2892_v50  ;;  %v4386_v50 = vld [vmem:[%s6523_s6 + $0xe4] ss:$8 sps:$4 sm:$0xff]  }
 0x24b   :  { %2990 = vmatmul.mubr.f32.vlgmr.msra.gmra.mrb[0].mxu1 %v2891_v14  ;;  %v4384_v14 = vld [vmem:[%s6523_s6 + $0xe0] ss:$8 sps:$4 sm:$0xff]  }
 0x24c   :  { %4227 = vmatpush1.bf16.msra.mxu1 %v4226_v46  ;;  %3088 = vmatprep.mubr.f32.mxu1 %v4427_v35 }
 0x24d   :  { %3927 = vmatprep.subr.bf16.mxu1 %v4344_v58 }
 0x31e   :  { %v4189_v12 = vpop.f32.mrb[0].mxu1 }
 0x31f   :  { %v4190_v42 = vpop.f32.mrb[1].mxu1 }
 0x320   :  { %v4191_v7 = vadd.f32 %v4190_v42, %v4189_v12 }
 0x322   :  { %v2996_v51 = vmul.f32 0.001953125, %v4191_v7 }
 0x324   :  { %v2997_v54 = vmul.f32 %v2996_v51, %v2996_v51 }
 0x326   :  { %v2999_v36 = vrot.slane %v2997_v54, 7 }
 0x328   :  { %v3001_v53 = vsub.f32 %v2996_v51, %v2999_v36 }
 0x32a   :  { %v3003_v48 = vadd.f32 1e-05, %v3001_v53 }
 0x32c   :  { %4390 = vrsqrt.f32 %v3003_v48 }
 0x336   :  { %v4391_v27 = vpop.eup %4390 }
 0x337   :  { %v3006_v9 = vrot.slane %v4391_v27, 1 }
 0x339   :  { %v3008_v5 = vmul.f32 %v3006_v9, %v3002_v16 }
 0x33b   :  { %v3010_v37 = vmul.f32 %v3008_v5, %v2996_v51  ;;  %v6622_v51 = vld [vmem:[#allocation2_spill] sm:$0xff] }
 0x33c   :  { %v6201_v54 = vsub.s32 %v3147_v4, %v6622_v51 }
 0x33d   :  { %v3011_v32 = vsub.f32 %v3009_v28, %v3010_v37 }
 0x33f   :  { %v3013_v45 = vrot.slane %v3011_v32, 7 }
 0x341   :  { %v3015_v6 = vsel %vm2890_vm4, %v3008_v5, %v3013_v45 }
 0x342   :  { %4124 = vmatmul.mubr.msk.f32.vlgmr.msra.gmra.mrb[2].mxu1 %vm3020_vm5, %v3015_v6 }
 0x343   :  { %3928 = vmatpush1.bf16.msra.mxu1 %v4342_v62 }
 0x344   :  { %3929 = vmatprep.subr.bf16.mxu1 %v4347_v60 }
 0x347   :  { %3930 = vmatpush1.bf16.msra.mxu1 %v4345_v18 }
 0x348   :  { %3931 = vmatprep.subr.bf16.mxu1 %v4350_v43 }
 0x34b   :  { %3932 = vmatpush1.bf16.msra.mxu1 %v4348_v30 }
 0x34c   :  { %3933 = vmatprep.subr.bf16.mxu1 %v4353_v29 }
 0x34f   :  { %3934 = vmatpush1.bf16.msra.mxu1 %v4351_v2 }
 0x350   :  { %3935 = vmatprep.subr.bf16.mxu1 %v4356_v19 }
 0x353   :  { %3936 = vmatpush1.bf16.msra.mxu1 %v4354_v59 }
 0x354   :  { %3937 = vmatprep.subr.bf16.mxu1 %v4359_v24 }
 0x357   :  { %3938 = vmatpush1.bf16.msra.mxu1 %v4357_v49 }
 0x358   :  { %3939 = vmatprep.subr.bf16.mxu1 %v4362_v61 }
 0x35b   :  { %3940 = vmatpush1.bf16.msra.mxu1 %v4360_v22 }
 0x35c   :  { %3941 = vmatprep.subr.bf16.mxu1 %v4365_v41 }
 0x35f   :  { %3942 = vmatpush1.bf16.msra.mxu1 %v4363_v55 }
 0x360   :  { %3943 = vmatprep.subr.bf16.mxu1 %v4368_v33 }
 0x363   :  { %3944 = vmatpush1.bf16.msra.mxu1 %v4366_v8 }
 0x364   :  { %3945 = vmatprep.subr.bf16.mxu1 %v4371_v10 }
 0x367   :  { %3946 = vmatpush1.bf16.msra.mxu1 %v4369_v44 }
 0x368   :  { %3947 = vmatprep.subr.bf16.mxu1 %v4374_v15 }
 0x36b   :  { %3948 = vmatpush1.bf16.msra.mxu1 %v4372_v47 }
 0x36c   :  { %3949 = vmatprep.subr.bf16.mxu1 %v4377_v34 }
 0x36f   :  { %3950 = vmatpush1.bf16.msra.mxu1 %v4375_v56 }
 0x370   :  { %3951 = vmatprep.subr.bf16.mxu1 %v4380_v38 }
 0x373   :  { %3952 = vmatpush1.bf16.msra.mxu1 %v4378_v3 }
 0x374   :  { %3953 = vmatprep.subr.bf16.mxu1 %v4383_v1 }
 0x377   :  { %3954 = vmatpush1.bf16.msra.mxu1 %v4381_v13 }
 0x378   :  { %3955 = vmatprep.subr.bf16.mxu1 %v4386_v50 }
 0x37b   :  { %3956 = vmatpush1.bf16.msra.mxu1 %v4384_v14 }
 0x37c   :  { %3957 = vmatprep.subr.bf16.mxu1 %v4389_v11 }
 0x37f   :  { %3958 = vmatpush1.bf16.msra.mxu1 %v4387_v20 }
 0x415   :  { %v3090_v46 = vpop.f32.mrb[2].mxu1 }
 0x416   :  { %v3098_v35 = vrot.slane %v3090_v46, %v6620_v26  ;;  %v3092_v58 = vpop.f32.mrb[3].mxu1  ;;  %v3114_v12 = vrot.slane %v3090_v46, %v6621_v52 }
 0x417   :  { %v3102_v42 = vrot.slane %v3092_v58, %v6620_v26  ;;  %v3118_v7 = vrot.slane %v3092_v58, %v6621_v52 }
 0x418   :  { %v3103_v36 = vmul.f32 %v6043_v63, %v3098_v35  ;;  %v3105_v53 = vmul.f32 %v6039_v21, %v3098_v35  ;;  %v3107_v48 = vmul.f32 %v6055_v23, %v3098_v35  ;;  %v3109_v27 = vmul.f32 %v6066_v39, %v3098_v35 }
 0x419   :  { %v3104_v16 = vmul.f32 %v6045_v17, %v3102_v42  ;;  %v3106_v9 = vmul.f32 %v6041_v0, %v3102_v42  ;;  %v3108_v5 = vmul.f32 %v6061_v31, %v3102_v42  ;;  %v3110_v26 = vmul.f32 %v6071_v40, %v3102_v42 }
 0x41a   :  { %v3119_v52 = vadd.f32 %v3114_v12, %v3103_v36  ;;  %v3121_v28 = vadd.f32 %v3114_v12, %v3105_v53  ;;  %v3123_v37 = vadd.f32 %v3114_v12, %v3107_v48  ;;  %v3125_v32 = vadd.f32 %v3114_v12, %v3109_v27 }
 0x41b   :  { %v3120_v45 = vadd.f32 %v3118_v7, %v3104_v16  ;;  %v3122_v63 = vadd.f32 %v3118_v7, %v3106_v9  ;;  %v3124_v62 = vadd.f32 %v3118_v7, %v3108_v5  ;;  %v3126_v21 = vadd.f32 %v3118_v7, %v3110_v26 }
 0x41c   :  { %v3127_v60 = vmax.f32 %v3119_v52, 0.0  ;;  %v3129_v23 = vmax.f32 %v3121_v28, 0.0  ;;  %v3131_v6 = vmax.f32 %v3123_v37, 0.0  ;;  %v3133_v39 = vmax.f32 %v3125_v32, 0.0 }
 0x41d   :  { %v3128_v18 = vmax.f32 %v3120_v45, 0.0  ;;  %v3130_v17 = vmax.f32 %v3122_v63, 0.0  ;;  %v3132_v43 = vmax.f32 %v3124_v62, 0.0  ;;  %v3134_v0 = vmax.f32 %v3126_v21, 0.0 }
 0x41f   :  { %v3143_v30 = vcombine.low %v3127_v60, %v3128_v18  ;;  %v3144_v31 = vcombine.high %v3127_v60, %v3128_v18  ;;  %v3161_v29 = vcombine.low %v3129_v23, %v3130_v17  ;;  %v3162_v40 = vcombine.high %v3129_v23, %v3130_v17 }
 0x420   :  { %v3179_v2 = vcombine.low %v3131_v6, %v3132_v43  ;;  %v3180_v19 = vcombine.high %v3131_v6, %v3132_v43  ;;  %v3197_v59 = vcombine.low %v3133_v39, %v3134_v0  ;;  %v3198_v24 = vcombine.high %v3133_v39, %v3134_v0 }
 0x421   :  { %v3151_v49 = vrot.slane %v3143_v30, %v6201_v54  ;;  %v3158_v61 = vrot.slane %v3144_v31, %v6201_v54  ;;  %v3169_v22 = vrot.slane %v3161_v29, %v6201_v54  ;;  %v3176_v41 = vrot.slane %v3162_v40, %v6201_v54 }
 0x422   :  { %v3187_v55 = vrot.slane %v3179_v2, %v6201_v54  ;;  %v3194_v33 = vrot.slane %v3180_v19, %v6201_v54  ;;  %v3205_v8 = vrot.slane %v3197_v59, %v6201_v54  ;;  %v3212_v10 = vrot.slane %v3198_v24, %v6201_v54 }
 0x423   :  { %v3159_v44 = vcombine.high %v3151_v49, %v3151_v49  ;;  %v3160_v47 = vcombine.high %v3158_v61, %v3158_v61  ;;  %v3177_v15 = vcombine.high %v3169_v22, %v3169_v22  ;;  %v3178_v34 = vcombine.high %v3176_v41, %v3176_v41 }
 0x424   :  { %v3195_v56 = vcombine.high %v3187_v55, %v3187_v55  ;;  %v3196_v38 = vcombine.high %v3194_v33, %v3194_v33  ;;  %v3221_v3 = vrot.slane %v3151_v49, %v6201_v54  ;;  %v3237_v13 = vrot.slane %v3158_v61, %v6201_v54 }
 0x425   :  { %v3229_v1 = vrot.slane %v3159_v44, %v6201_v54  ;;  %v3245_v50 = vrot.slane %v3160_v47, %v6201_v54  ;;  %v3213_v14 = vcombine.high %v3205_v8, %v3205_v8  ;;  %v6224_v11 = vrot.slane %v3169_v22, %v6201_v54 }
 0x426   :  { %v6227_v20 = vrot.slane %v3177_v15, %v6201_v54  ;;  %v6230_v57 = vrot.slane %v3176_v41, %v6201_v54  ;;  %v3214_v25 = vcombine.high %v3212_v10, %v3212_v10  ;;  %v3222_v4 = vcombine.high %v3221_v3, %v3221_v3 }
 0x427   :  { %v3230_v46 = vcombine.high %v3229_v1, %v3229_v1  ;;  %v6233_v35 = vrot.slane %v3178_v34, %v6201_v54  ;;  %v3238_v58 = vcombine.high %v3237_v13, %v3237_v13  ;;  %v3246_v12 = vcombine.high %v3245_v50, %v3245_v50 }
 0x428   :  { %v3254_v42 = vcombine.high %v6224_v11, %v6224_v11  ;;  %v6238_v7 = vrot.slane %v3187_v55, %v6201_v54  ;;  %v6241_v51 = vrot.slane %v3195_v56, %v6201_v54  ;;  %v6244_v36 = vrot.slane %v3194_v33, %v6201_v54 }
 0x429   :  { %v6247_v53 = vrot.slane %v3196_v38, %v6201_v54  ;;  %v6250_v48 = vrot.slane %v3205_v8, %v6201_v54  ;;  %v3262_v27 = vcombine.high %v6227_v20, %v6227_v20  ;;  %v3270_v16 = vcombine.high %v6230_v57, %v6230_v57 }
 0x42a   :  { %v3286_v9 = vcombine.high %v6238_v7, %v6238_v7  ;;  %v6259_v5 = vrot.slane %v3213_v14, %v6201_v54  ;;  %v3294_v26 = vcombine.high %v6241_v51, %v6241_v51  ;;  %v3302_v52 = vcombine.high %v6244_v36, %v6244_v36 }
 0x42b   :  { %v6266_v28 = vrot.slane %v3212_v10, %v6201_v54  ;;  %v6269_v37 = vrot.slane %v3214_v25, %v6201_v54  ;;  %v3310_v32 = vcombine.high %v6247_v53, %v6247_v53  ;;  %v3318_v45 = vcombine.high %v6250_v48, %v6250_v48 }
 0x42c   :  { %v3376_v63 = vsel %vm3375_vm6, %v3221_v3, -inf  ;;  %v3383_v62 = vsel %vm3375_vm6, %v3222_v4, -inf  ;;  %v3390_v23 = vsel %vm3375_vm6, %v3229_v1, -inf  ;;  %v3397_v6 = vsel %vm3375_vm6, %v3230_v46, -inf }
 0x42d   :  { %v3377_v21 = vrot.slane %v3376_v63, 4  ;;  %v3384_v60 = vrot.slane %v3383_v62, 4  ;;  %v3391_v39 = vrot.slane %v3390_v23, 4  ;;  %v3398_v18 = vrot.slane %v3397_v6, 4 }
 0x42e   :  { %v3404_v54 = vsel %vm3375_vm6, %v3237_v13, -inf  ;;  %v3411_v17 = vsel %vm3375_vm6, %v3238_v58, -inf  ;;  %v3418_v2 = vsel %vm3375_vm6, %v3245_v50, -inf  ;;  %v3425_v19 = vsel %vm3375_vm6, %v3246_v12, -inf }
 0x42f   :  { %v3378_v43 = vmax.f32 %v3376_v63, %v3377_v21  ;;  %v3385_v0 = vmax.f32 %v3383_v62, %v3384_v60  ;;  %v3405_v30 = vrot.slane %v3404_v54, 4  ;;  %v3412_v31 = vrot.slane %v3411_v17, 4 }
 0x430   :  { %v3392_v29 = vmax.f32 %v3390_v23, %v3391_v39  ;;  %v3399_v40 = vmax.f32 %v3397_v6, %v3398_v18  ;;  %v3419_v55 = vrot.slane %v3418_v2, 4  ;;  %v3426_v33 = vrot.slane %v3425_v19, 4 }
 0x431   :  { %v3379_v59 = vrot.slane %v3378_v43, 2  ;;  %v3386_v24 = vrot.slane %v3385_v0, 2  ;;  %v3406_v49 = vmax.f32 %v3404_v54, %v3405_v30  ;;  %v3413_v61 = vmax.f32 %v3411_v17, %v3412_v31 }
 0x432   :  { %v3393_v22 = vrot.slane %v3392_v29, 2  ;;  %v3400_v41 = vrot.slane %v3399_v40, 2  ;;  %v3326_v15 = vcombine.high %v6259_v5, %v6259_v5  ;;  %v3334_v34 = vcombine.high %v6266_v28, %v6266_v28 }
 0x433   :  { %v3380_v8 = vmax.f32 %v3378_v43, %v3379_v59  ;;  %v6283_v10 = vmax.f32 %v3385_v0, %v3386_v24  ;;  %v3407_v44 = vrot.slane %v3406_v49, 2  ;;  %v3414_v47 = vrot.slane %v3413_v61, 2 }
 0x434   :  { %v3394_v56 = vmax.f32 %v3392_v29, %v3393_v22  ;;  %v3420_v38 = vmax.f32 %v3418_v2, %v3419_v55  ;;  %v6289_v1 = vmax.f32 %v3399_v40, %v3400_v41  ;;  %v6291_v50 = vmax.f32 %v3425_v19, %v3426_v33 }
 0x435   :  { %v3381_v3 = vrot.slane %v3380_v8, 1  ;;  %v3408_v13 = vmax.f32 %v3406_v49, %v3407_v44  ;;  %v3432_v4 = vsel %vm3375_vm6, %v6224_v11, -inf  ;;  %v6296_v46 = vsel %vm3375_vm6, %v3254_v42, -inf }
 0x436   :  { %v3395_v14 = vrot.slane %v3394_v56, 1  ;;  %v3421_v25 = vrot.slane %v3420_v38, 2  ;;  %v3388_v58 = vrot.slane %v6283_v10, 1  ;;  %v6299_v63 = vmax.f32 %v3413_v61, %v3414_v47 }
 0x437   :  { %v3409_v12 = vrot.slane %v3408_v13, 1  ;;  %v3433_v62 = vrot.slane %v3432_v4, 4  ;;  %v6301_v21 = vmax.f32 %v3380_v8, %v3381_v3  ;;  %v3440_v60 = vrot.slane %v6296_v46, 4 }
 0x438   :  { %v3446_v23 = vsel %vm3375_vm6, %v6227_v20, -inf  ;;  %v3460_v6 = vsel %vm3375_vm6, %v6230_v57, -inf  ;;  %v6308_v11 = vmax.f32 %v3394_v56, %v3395_v14  ;;  %v6310_v42 = vmax.f32 %v3420_v38, %v3421_v25 }
 0x439   :  { %v3434_v39 = vmax.f32 %v3432_v4, %v3433_v62  ;;  %v3447_v18 = vrot.slane %v3446_v23, 4  ;;  %v3488_v54 = vsel %vm3375_vm6, %v6238_v7, -inf  ;;  %v3495_v17 = vsel %vm3375_vm6, %v3286_v9, -inf }
 0x43a   :  { %v3502_v43 = vsel %vm3375_vm6, %v6241_v51, -inf  ;;  %v3509_v0 = vsel %vm3375_vm6, %v3294_v26, -inf  ;;  %v6324_v30 = vmax.f32 %v3408_v13, %v3409_v12  ;;  %v3461_v29 = vrot.slane %v3460_v6, 4 }
 0x43b   :  { %v3435_v31 = vrot.slane %v3434_v39, 2  ;;  %v3489_v40 = vrot.slane %v3488_v54, 4  ;;  %v3496_v2 = vrot.slane %v3495_v17, 4  ;;  %v3503_v19 = vrot.slane %v3502_v43, 4 }
 0x43c   :  { %v3510_v59 = vrot.slane %v3509_v0, 4  ;;  %v3516_v7 = vsel %vm3375_vm6, %v6244_v36, -inf  ;;  %v6328_v9 = vmax.f32 %v3446_v23, %v3447_v18  ;;  %v3523_v51 = vsel %vm3375_vm6, %v3302_v52, -inf }
 0x43d   :  { %v3490_v24 = vmax.f32 %v3488_v54, %v3489_v40  ;;  %v3517_v49 = vrot.slane %v3516_v7, 4  ;;  %v3497_v26 = vmax.f32 %v3495_v17, %v3496_v2  ;;  %v3504_v61 = vmax.f32 %v3502_v43, %v3503_v19 }
 0x43e   :  { %v3511_v22 = vmax.f32 %v3509_v0, %v3510_v59  ;;  %v3524_v41 = vrot.slane %v3523_v51, 4  ;;  %v3530_v8 = vsel %vm3375_vm6, %v6247_v53, -inf  ;;  %v3537_v44 = vsel %vm3375_vm6, %v3310_v32, -inf }
 0x43f   :  { %v3491_v55 = vrot.slane %v3490_v24, 2  ;;  %v3518_v33 = vmax.f32 %v3516_v7, %v3517_v49  ;;  %v3498_v47 = vrot.slane %v3497_v26, 2  ;;  %v3505_v56 = vrot.slane %v3504_v61, 2 }
 0x440   :  { %v3512_v38 = vrot.slane %v3511_v22, 2  ;;  %v3525_v36 = vmax.f32 %v3523_v51, %v3524_v41  ;;  %v3531_v13 = vrot.slane %v3530_v8, 4  ;;  %v3538_v14 = vrot.slane %v3537_v44, 4 }
 0x441   :  { %v3492_v3 = vmax.f32 %v3490_v24, %v3491_v55  ;;  %v3519_v52 = vrot.slane %v3518_v33, 2  ;;  %v6340_v25 = vmax.f32 %v3434_v39, %v3435_v31  ;;  %v6342_v4 = vmax.f32 %v3460_v6, %v3461_v29 }
 0x442   :  { %v6344_v12 = vmax.f32 %v3497_v26, %v3498_v47  ;;  %v3506_v62 = vmax.f32 %v3504_v61, %v3505_v56  ;;  %v3526_v53 = vrot.slane %v3525_v36, 2  ;;  %v3532_v54 = vmax.f32 %v3530_v8, %v3531_v13 }
 0x443   :  { %v3493_v23 = vrot.slane %v3492_v3, 1  ;;  %v3520_v18 = vmax.f32 %v3518_v33, %v3519_v52  ;;  %v3513_v17 = vmax.f32 %v3511_v22, %v3512_v38  ;;  %v6346_v43 = vmax.f32 %v3537_v44, %v3538_v14 }
 0x444   :  { %v3507_v32 = vrot.slane %v3506_v62, 1  ;;  %v3544_v0 = vsel %vm3375_vm6, %v6250_v48, -inf  ;;  %v3533_v39 = vrot.slane %v3532_v54, 2  ;;  %v3551_v29 = vsel %vm3375_vm6, %v3318_v45, -inf }
 0x445   :  { %v3494_v40 = vmax.f32 %v3492_v3, %v3493_v23  ;;  %v3521_v2 = vrot.slane %v3520_v18, 1  ;;  %v3545_v31 = vrot.slane %v3544_v0, 4  ;;  %v3558_v19 = vsel %vm3375_vm6, %v6259_v5, -inf }
 0x446   :  { %v6350_v6 = vmax.f32 %v3506_v62, %v3507_v32  ;;  %v3572_v59 = vsel %vm3375_vm6, %v6266_v28, -inf  ;;  %v3500_v7 = vrot.slane %v6344_v12, 1  ;;  %v3527_v49 = vmax.f32 %v3525_v36, %v3526_v53 }
 0x447   :  { %v6361_v24 = vmax.f32 %v3520_v18, %v3521_v2  ;;  %v3546_v51 = vmax.f32 %v3544_v0, %v3545_v31  ;;  %v3559_v26 = vrot.slane %v3558_v19, 4  ;;  %v3573_v61 = vrot.slane %v3572_v59, 4 }
 0x448   :  { %v3600_v22 = vpack.c.bf16 %v6301_v21, %v6301_v21  ;;  %v3602_v48 = vpack.c.bf16 %v6308_v11, %v6308_v11  ;;  %v6367_v45 = vmax.f32 %v3532_v54, %v3533_v39  ;;  %v3552_v55 = vrot.slane %v3551_v29, 4 }
 0x449   :  { %v3547_v41 = vrot.slane %v3546_v51, 2  ;;  %v3616_v33 = vpack.c.bf16 %v3494_v40, %v3494_v40  ;;  %v6369_v8 = vmax.f32 %v3558_v19, %v3559_v26  ;;  %v6371_v44 = vmax.f32 %v3572_v59, %v3573_v61 }
 0x44a   :  { %v3604_v47 = vpack.c.bf16 %v6324_v30, %v6324_v30  ;;  %v3618_v56 = vpack.c.bf16 %v6350_v6, %v6350_v6  ;;  %v3620_v21 = vpack.c.bf16 %v6361_v24, %v6361_v24  ;;  %v6381_v11 = vunpack.c.l.b16 %v3600_v22 }
 0x44b   :  { %v6377_v38 = vmax.f32 %v3546_v51, %v3547_v41  ;;  %v6383_v36 = vunpack.c.l.b16 %v3602_v48  ;;  %v6385_v3 = vunpack.c.l.b16 %v3616_v33  ;;  %v3278_v52 = vcombine.high %v6233_v35, %v6233_v35 }
 0x44c   :  { %v3342_v13 = vcombine.high %v6269_v37, %v6269_v37  ;;  %v3402_v14 = vrot.slane %v6289_v1, 1  ;;  %v3416_v62 = vrot.slane %v6299_v63, 1  ;;  %v3428_v23 = vrot.slane %v6291_v50, 2 }
 0x44d   :  { %v3441_v18 = vmax.f32 %v6296_v46, %v3440_v60  ;;  %v3453_v53 = vsel %vm3375_vm6, %v3262_v27, -inf  ;;  %v6404_v54 = vmax.f32 %v6283_v10, %v3388_v58  ;;  %v3467_v0 = vsel %vm3375_vm6, %v3270_v16, -inf }
 0x44e   :  { %v3454_v32 = vrot.slane %v3453_v53, 4  ;;  %v3481_v40 = vsel %vm3375_vm6, %v3278_v52, -inf  ;;  %v6412_v46 = vmax.f32 %v6289_v1, %v3402_v14  ;;  %v3429_v20 = vmax.f32 %v6291_v50, %v3428_v23 }
 0x44f   :  { %v3442_v60 = vrot.slane %v3441_v18, 2  ;;  %v3468_v27 = vrot.slane %v3467_v0, 4  ;;  %v6416_v2 = vmax.f32 %v6299_v63, %v3416_v62  ;;  %v3482_v58 = vrot.slane %v3481_v40, 4 }
 0x450   :  { %v3455_v10 = vmax.f32 %v3453_v53, %v3454_v32  ;;  %v3514_v39 = vrot.slane %v3513_v17, 1  ;;  %v3430_v31 = vrot.slane %v3429_v20, 1  ;;  %v3528_v59 = vrot.slane %v3527_v49, 1 }
 0x451   :  { %v3443_v19 = vmax.f32 %v3441_v18, %v3442_v60  ;;  %v3469_v57 = vmax.f32 %v3467_v0, %v3468_v27  ;;  %v3483_v51 = vmax.f32 %v3481_v40, %v3482_v58  ;;  %v6419_v26 = vmax.f32 %v6344_v12, %v3500_v7 }
 0x452   :  { %v3456_v16 = vrot.slane %v3455_v10, 2  ;;  %v3540_v1 = vrot.slane %v6346_v43, 2  ;;  %v6422_v50 = vmax.f32 %v3429_v20, %v3430_v31  ;;  %v6424_v63 = vmax.f32 %v3513_v17, %v3514_v39 }
 0x453   :  { %v3444_v61 = vrot.slane %v3443_v19, 1  ;;  %v3470_v22 = vrot.slane %v3469_v57, 2  ;;  %v3484_v41 = vrot.slane %v3483_v51, 2  ;;  %v3553_v52 = vmax.f32 %v3551_v29, %v3552_v55 }
 0x454   :  { %v3457_v48 = vmax.f32 %v3455_v10, %v3456_v16  ;;  %v3541_v33 = vmax.f32 %v6346_v43, %v3540_v1  ;;  %v6427_v62 = vmax.f32 %v3527_v49, %v3528_v59  ;;  %v3565_v12 = vsel %vm3375_vm6, %v3326_v15, -inf }
 0x455   :  { %v3471_v14 = vmax.f32 %v3469_v57, %v3470_v22  ;;  %v3579_v7 = vsel %vm3375_vm6, %v3334_v34, -inf  ;;  %v3485_v23 = vmax.f32 %v3483_v51, %v3484_v41  ;;  %v3554_v53 = vrot.slane %v3553_v52, 2 }
 0x456   :  { %v3458_v17 = vrot.slane %v3457_v48, 1  ;;  %v3542_v18 = vrot.slane %v3541_v33, 1  ;;  %v3566_v43 = vrot.slane %v3565_v12, 4  ;;  %v3580_v29 = vrot.slane %v3579_v7, 4 }
 0x457   :  { %v3472_v32 = vrot.slane %v3471_v14, 1  ;;  %v3593_v49 = vsel %vm3375_vm6, %v3342_v13, -inf  ;;  %v3445_v55 = vmax.f32 %v3443_v19, %v3444_v61  ;;  %v3486_v40 = vrot.slane %v3485_v23, 1 }
 0x458   :  { %v3459_v0 = vmax.f32 %v3457_v48, %v3458_v17  ;;  %v3555_v5 = vmax.f32 %v3553_v52, %v3554_v53  ;;  %v3543_v20 = vmax.f32 %v3541_v33, %v3542_v18  ;;  %v3567_v15 = vmax.f32 %v3565_v12, %v3566_v43 }
 0x459   :  { %v3581_v60 = vmax.f32 %v3579_v7, %v3580_v29  ;;  %v3594_v27 = vrot.slane %v3593_v49, 4  ;;  %v3473_v28 = vmax.f32 %v3471_v14, %v3472_v32  ;;  %v3487_v10 = vmax.f32 %v3485_v23, %v3486_v40 }
 0x45a   :  { %v3556_v34 = vrot.slane %v3555_v5, 1  ;;  %v3601_v58 = vpack.c.bf16 %v6404_v54, %v6404_v54  ;;  %v3568_v39 = vrot.slane %v3567_v15, 2  ;;  %v3603_v13 = vpack.c.bf16 %v6412_v46, %v6412_v46 }
 0x45b   :  { %v3582_v31 = vrot.slane %v3581_v60, 2  ;;  %v3595_v57 = vmax.f32 %v3593_v49, %v3594_v27  ;;  %v3605_v59 = vpack.c.bf16 %v6416_v2, %v6416_v2  ;;  %v3607_v16 = vpack.c.bf16 %v6422_v50, %v6422_v50 }
 0x45c   :  { %v3557_v19 = vmax.f32 %v3555_v5, %v3556_v34  ;;  %v3609_v51 = vpack.c.bf16 %v3445_v55, %v3445_v55  ;;  %v3569_v1 = vmax.f32 %v3567_v15, %v3568_v39  ;;  %v3611_v48 = vpack.c.bf16 %v3459_v0, %v3459_v0 }
 0x45d   :  { %v3583_v61 = vmax.f32 %v3581_v60, %v3582_v31  ;;  %v3596_v22 = vrot.slane %v3595_v57, 2  ;;  %v3613_v54 = vpack.c.bf16 %v3473_v28, %v3473_v28  ;;  %v3615_v41 = vpack.c.bf16 %v3487_v10, %v3487_v10 }
 0x45e   :  { %v3617_v33 = vpack.c.bf16 %v6419_v26, %v6419_v26  ;;  %v3619_v46 = vpack.c.bf16 %v6424_v63, %v6424_v63  ;;  %v3570_v2 = vrot.slane %v3569_v1, 1  ;;  %v3621_v50 = vpack.c.bf16 %v6427_v62, %v6427_v62 }
 0x45f   :  { %v3584_v52 = vrot.slane %v3583_v61, 1  ;;  %v3597_v14 = vmax.f32 %v3595_v57, %v3596_v22  ;;  %v3623_v12 = vpack.c.bf16 %v3543_v20, %v3543_v20  ;;  %v3625_v7 = vpack.c.bf16 %v3557_v19, %v3557_v19 }
 0x460   :  { %v3697_v17 = vunpack.c.l.b16 %v3601_v58  ;;  %v3699_v23 = vunpack.c.l.b16 %v3603_v13  ;;  %v3571_v18 = vmax.f32 %v3569_v1, %v3570_v2  ;;  %v3701_v26 = vunpack.c.l.b16 %v3605_v59 }
 0x461   :  { %v3585_v53 = vmax.f32 %v3583_v61, %v3584_v52  ;;  %v3598_v32 = vrot.slane %v3597_v14, 1  ;;  %v3703_v43 = vunpack.c.l.b16 %v3607_v16  ;;  %v3705_v63 = vunpack.c.l.b16 %v3609_v51 }
 0x462   :  { %v3707_v29 = vunpack.c.l.b16 %v3611_v48  ;;  %v3709_v49 = vunpack.c.l.b16 %v3613_v54  ;;  %v3627_v0 = vpack.c.bf16 %v3571_v18, %v3571_v18  ;;  %v3711_v62 = vunpack.c.l.b16 %v3615_v41 }
 0x463   :  { %v3599_v55 = vmax.f32 %v3597_v14, %v3598_v32  ;;  %v3629_v40 = vpack.c.bf16 %v3585_v53, %v3585_v53  ;;  %v3713_v5 = vunpack.c.l.b16 %v3617_v33  ;;  %v3715_v20 = vunpack.c.l.b16 %v3619_v46 }
 0x464   :  { %v3717_v15 = vunpack.c.l.b16 %v3621_v50  ;;  %v3719_v60 = vunpack.c.l.b16 %v3623_v12  ;;  %v3721_v28 = vunpack.c.l.b16 %v3625_v7  ;;  %v3723_v10 = vunpack.c.l.b16 %v3627_v0 }
 0x465   :  { %v3631_v27 = vpack.c.bf16 %v3599_v55, %v3599_v55  ;;  %v3742_v34 = vsel %vm3728_vm7, %v3699_v23, %v3697_v17  ;;  %v3725_v58 = vunpack.c.l.b16 %v3629_v40  ;;  %v3756_v31 = vsel %vm3728_vm7, %v3715_v20, %v3713_v5 }
 0x466   :  { %v3743_v39 = vsel %vm3730_vm8, %v3701_v26, %v3742_v34  ;;  %v3423_v57 = vrot.slane %v6310_v42, 1  ;;  %v3757_v19 = vsel %vm3730_vm8, %v3717_v15, %v3756_v31  ;;  %v3437_v59 = vrot.slane %v6340_v25, 1 }
 0x467   :  { %v3744_v13 = vsel %vm3732_vm9, %v3703_v43, %v3743_v39  ;;  %v3449_v16 = vrot.slane %v6328_v9, 2  ;;  %v3727_v51 = vunpack.c.l.b16 %v3631_v27  ;;  %v3758_v61 = vsel %vm3732_vm9, %v3719_v60, %v3757_v19 }
 0x468   :  { %v3745_v1 = vsel %vm3734_vm10, %v3705_v63, %v3744_v13  ;;  %v3424_v22 = vmax.f32 %v6310_v42, %v3423_v57  ;;  %v3759_v54 = vsel %vm3734_vm10, %v3721_v28, %v3758_v61  ;;  %v3463_v33 = vrot.slane %v6342_v4, 2 }
 0x469   :  { %v3746_v48 = vsel %vm3736_vm11, %v3707_v29, %v3745_v1  ;;  %v3450_v41 = vmax.f32 %v6328_v9, %v3449_v16  ;;  %v3760_v2 = vsel %vm3736_vm11, %v3723_v10, %v3759_v54  ;;  %v3474_v52 = vsel %vm3375_vm6, %v6233_v35, -inf }
 0x46a   :  { %v3747_v46 = vsel %vm3738_vm12, %v3709_v49, %v3746_v48  ;;  %v3535_v14 = vrot.slane %v6367_v45, 1  ;;  %v3761_v42 = vsel %vm3738_vm12, %v3725_v58, %v3760_v2  ;;  %v3464_v7 = vmax.f32 %v6342_v4, %v3463_v33 }
 0x46b   :  { %v3748_v50 = vsel %vm3740_vm13, %v3711_v62, %v3747_v46  ;;  %v3451_v12 = vrot.slane %v3450_v41, 1  ;;  %v3762_v9 = vsel %vm3740_vm13, %v3727_v51, %v3761_v42  ;;  %v3438_v17 = vmax.f32 %v6340_v25, %v3437_v59 }
 0x46c   :  { %v3475_v23 = vrot.slane %v3474_v52, 4  ;;  %v3549_v18 = vrot.slane %v6377_v38, 1  ;;  %v3764_v53 = vpack.c.b16 %v3762_v9, %v3748_v50  ;;  %v3465_v26 = vrot.slane %v3464_v7, 1 }
 0x46d   :  { %v3452_v32 = vmax.f32 %v3450_v41, %v3451_v12  ;;  %v3561_v35 = vrot.slane %v6369_v8, 2  ;;  %v3536_v63 = vmax.f32 %v6367_v45, %v3535_v14  ;;  %v3575_v29 = vrot.slane %v6371_v44, 2 }
 0x46e   :  { %v3476_v43 = vmax.f32 %v3474_v52, %v3475_v23  ;;  %v3586_v4 = vsel %vm3375_vm6, %v6269_v37, -inf  ;;  %3959 = vmatprep.mubr.bf16.mxu1 %v3764_v53  ;;  %v3466_v49 = vmax.f32 %v3464_v7, %v3465_v26  ;;  %v3550_v25 = vmax.f32 %v6377_v38, %v3549_v18 }
 0x46f   :  { %v3562_v55 = vmax.f32 %v6369_v8, %v3561_v35  ;;  %v3587_v0 = vrot.slane %v3586_v4, 4  ;;  %v3576_v62 = vmax.f32 %v6371_v44, %v3575_v29  ;;  %v3606_v5 = vpack.c.bf16 %v3424_v22, %v3424_v22 }
 0x470   :  { %v3477_v40 = vrot.slane %v3476_v43, 2  ;;  %v3608_v20 = vpack.c.bf16 %v3438_v17, %v3438_v17  ;;  %v3610_v45 = vpack.c.bf16 %v3452_v32, %v3452_v32  ;;  %v3612_v27 = vpack.c.bf16 %v3466_v49, %v3466_v49 }
 0x471   :  { %v3563_v15 = vrot.slane %v3562_v55, 1  ;;  %v3588_v60 = vmax.f32 %v3586_v4, %v3587_v0  ;;  %v3714_v37 = vunpack.c.l.b16 %v3618_v56  ;;  %v3577_v10 = vrot.slane %v3576_v62, 1 }
 0x472   :  { %v3478_v28 = vmax.f32 %v3476_v43, %v3477_v40  ;;  %v3622_v34 = vpack.c.bf16 %v3536_v63, %v3536_v63  ;;  %v3624_v8 = vpack.c.bf16 %v3550_v25, %v3550_v25  ;;  %v3700_v44 = vunpack.c.l.b16 %v3604_v47 }
 0x473   :  { %v3564_v38 = vmax.f32 %v3562_v55, %v3563_v15  ;;  %v3589_v58 = vrot.slane %v3588_v60, 2  ;;  %v3578_v31 = vmax.f32 %v3576_v62, %v3577_v10  ;;  %v3702_v57 = vunpack.c.l.b16 %v3606_v5 }
 0x474   :  { %v3479_v39 = vrot.slane %v3478_v28, 1  ;;  %v3704_v13 = vunpack.c.l.b16 %v3608_v20  ;;  %v3706_v16 = vunpack.c.l.b16 %v3610_v45  ;;  %v3708_v51 = vunpack.c.l.b16 %v3612_v27 }
 0x475   :  { %v3590_v19 = vmax.f32 %v3588_v60, %v3589_v58  ;;  %v3626_v59 = vpack.c.bf16 %v3564_v38, %v3564_v38  ;;  %v3628_v56 = vpack.c.bf16 %v3578_v31, %v3578_v31  ;;  %v3716_v1 = vunpack.c.l.b16 %v3620_v21 }
 0x476   :  { %v3480_v6 = vmax.f32 %v3478_v28, %v3479_v39  ;;  %v3729_v61 = vsel %vm3728_vm7, %v6383_v36, %v6381_v11  ;;  %v3718_v47 = vunpack.c.l.b16 %v3622_v34  ;;  %v3749_v48 = vsel %vm3728_vm7, %v3714_v37, %v6385_v3 }
 0x477   :  { %v3591_v30 = vrot.slane %v3590_v19, 1  ;;  %v3731_v22 = vsel %vm3730_vm8, %v3700_v44, %v3729_v61  ;;  %v3720_v41 = vunpack.c.l.b16 %v3624_v8  ;;  %v3750_v46 = vsel %vm3730_vm8, %v3716_v1, %v3749_v48 }
 0x478   :  { %v3614_v54 = vpack.c.bf16 %v3480_v6, %v3480_v6  ;;  %v3733_v33 = vsel %vm3732_vm9, %v3702_v57, %v3731_v22  ;;  %v3722_v24 = vunpack.c.l.b16 %v3626_v59  ;;  %v3751_v52 = vsel %vm3732_vm9, %v3718_v47, %v3750_v46 }
 0x479   :  { %v3592_v2 = vmax.f32 %v3590_v19, %v3591_v30  ;;  %v3735_v21 = vsel %vm3734_vm10, %v3704_v13, %v3733_v33  ;;  %v3724_v36 = vunpack.c.l.b16 %v3628_v56  ;;  %v3752_v50 = vsel %vm3734_vm10, %v3720_v41, %v3751_v52 }
 0x47a   :  { %v3710_v11 = vunpack.c.l.b16 %v3614_v54  ;;  %v3737_v14 = vsel %vm3736_vm11, %v3706_v16, %v3735_v21  ;;  %v3753_v12 = vsel %vm3736_vm11, %v3722_v24, %v3752_v50 }
 0x47b   :  { %v3630_v42 = vpack.c.bf16 %v3592_v2, %v3592_v2  ;;  %v3739_v3 = vsel %vm3738_vm12, %v3708_v51, %v3737_v14  ;;  %v3754_v9 = vsel %vm3738_vm12, %v3724_v36, %v3753_v12 }
 0x47c   :  { %v3741_v7 = vsel %vm3740_vm13, %v3710_v11, %v3739_v3 }
 0x47d   :  { %v3726_v17 = vunpack.c.l.b16 %v3630_v42 }
 0x47f   :  { %v3755_v23 = vsel %vm3740_vm13, %v3726_v17, %v3754_v9 }
 0x480   :  { %v3763_v18 = vpack.c.b16 %v3755_v23, %v3741_v7 }
 0x482   :  { %3960 = vmatmul.mubr.bf16.vlgmr.msra.gmra.mrb[4].mxu1 %v3763_v18 }
 0x555   :  { %v3961_v53 = vpop.f32.mrb[4].mxu1 }
 0x556   :  { %v3963_v32 = vpop.f32.mrb[5].mxu1 }
 0x557   :  { %v3970_v26 = vmax.f32 %v3961_v53, %v3963_v32  ;;  %v3965_v35 = vpop.f32.mrb[6].mxu1 }
 0x558   :  { %v3967_v43 = vpop.f32.mrb[7].mxu1 }
 0x559   :  { %3972 = vst [vmem:[%s6525_s7] sm:$0xff] %v3970_v26  ;;  %v3971_v63 = vmax.f32 %v3965_v35, %v3967_v43 }
 0x55b   :  { %3973 = vst [vmem:[%s6525_s7 + $0x8] sm:$0xff] %v3971_v63 }

</bundles_post_ra>
